<compile_context>
chip_gen: v7x
topology: tpu7x:2x2x1
jax: 0.10.0
libtpu: 0.0.40
codegen_flags: <defaults>
</compile_context>

<pallas_src>
import functools

import jax
import jax.numpy as jnp
from jax import lax
from jax.experimental import pallas as pl
from jax.experimental.pallas import tpu as pltpu

# ---- small-run hyper-parameters (module defaults: d=512, p=12) --------------
D = 128          # hidden size
P = 4            # number of MAC cells / reasoning steps
VOCAB = 16       # vocab size
N_LABELS = 4     # number of answer candidates
B = 2            # batch
S_CTX = 8        # context sequence length
S_Q = 6          # question sequence length


def _softmax_lastdim(x):
    m = jnp.max(x, axis=-1, keepdims=True)
    e = jnp.exp(x - m)
    return e / jnp.sum(e, axis=-1, keepdims=True)


# ============================== fused kernel =================================

def _mac_fused_kernel(
        # grid-invariant inputs (DMA'd once; block index constant over grid)
        ctx_ref, qemb_ref, c0_ref, m0_ref,
        w_in_ref, w_qproj_ref, w_out_ref, b_o_ref, cand_t_ref,
        # per-step stacked weights (pipelined over grid axis)
        w_qi_ref, w_cq_ref, w_mwm_ref, w_ki2_ref, w_i1_ref, w_wr_ref,
        w_m12_ref, gates_ref,
        # output
        out_ref,
        # VMEM scratch, persistent across grid iterations
        k_s, cws_s, q_s, cp_s, mp_s):

    i = pl.program_id(0)
    last = pl.num_programs(0) - 1
    dot = functools.partial(jnp.dot, preferred_element_type=jnp.float32)

    bb, ss, dd = k_s.shape

    # --------------------------- input unit (step 0) --------------------------
    @pl.when(i == 0)
    def _():
        ctx = ctx_ref[...]                                    # (B*S, D)
        kc = dot(ctx, w_in_ref[...])                          # (B*S, 2D) = [K | cws]
        k_s[...] = kc[:, :dd].reshape(bb, ss, dd)
        cws_s[...] = kc[:, dd:].reshape(bb, ss, dd)
        q_s[...] = dot(qemb_ref[...], w_qproj_ref[...])       # (B, D)
        cp_s[...] = jnp.zeros_like(cp_s)
        mp_s[...] = jnp.zeros_like(mp_s)
        cp_s[0] = c0_ref[...]
        mp_s[0] = m0_ref[...]

    # ------------------------------ MAC cell step -----------------------------
    K = k_s[...]               # (B, S, D)
    cws = cws_s[...]           # (B, S, D)
    q = q_s[...]               # (B, D)
    c_prev = cp_s[i]           # (B, D)   (dynamic leading-axis read)
    m_prev = mp_s[i]           # (B, D)
    b, s, d = K.shape

    g = gates_ref[0]           # (8, D): rows [b_qi, w_ca, w_ra, w_sa, pad...]
    b_qi = g[0:1]
    w_ca = g[1:2]
    w_ra = g[2:3]
    w_sa = g[3:4]

    # control unit
    q_i = dot(q, w_qi_ref[0]) + b_qi                                     # (B, D)
    cq = dot(jnp.concatenate([c_prev, q_i], axis=-1), w_cq_ref[0])       # (B, D)
    ca_logits = jnp.einsum('bqd,bsd->bqs', (cq * w_ca)[:, None, :], cws,
                           preferred_element_type=jnp.float32)[:, 0, :]  # (B, S)
    ca = _softmax_lastdim(ca_logits)
    c_i = jnp.einsum('bqs,bsd->bqd', ca[:, None, :], cws,
                     preferred_element_type=jnp.float32)[:, 0, :]        # (B, D)

    # read unit
    m_both = dot(m_prev, w_mwm_ref[0])                                   # (B, 2D)
    m_proj = m_both[:, :d]                                               # m_prev @ w_m
    m_wm = m_both[:, d:]                                                 # m_prev @ w_w_m
    K2 = K.reshape(b * s, d)
    k_both = dot(K2, w_ki2_ref[0])                                       # (B*S, 2D)
    K_proj = k_both[:, :d].reshape(b, s, d)                              # K @ w_k
    K_i2 = k_both[:, d:].reshape(b, s, d)                                # K @ w_i2
    inter = m_proj[:, None, :] * K_proj                                  # (B, S, D)
    inter2 = dot(inter.reshape(b * s, d), w_i1_ref[0]).reshape(b, s, d) + K_i2
    ra_logits = jnp.einsum('bqd,bsd->bqs', (c_i * w_ra)[:, None, :], inter2,
                           preferred_element_type=jnp.float32)[:, 0, :]  # (B, S)
    ra = _softmax_lastdim(ra_logits)
    r = jnp.einsum('bqs,bsd->bqd', ra[:, None, :], K,
                   preferred_element_type=jnp.float32)[:, 0, :]          # (B, D)

    # write unit (self-attention over past controls / memories)
    m_new = dot(r, w_wr_ref[0]) + m_wm                                   # (B, D)
    Cp = cp_s[...]                                                       # (P+1, B, D)
    Mp = mp_s[...]                                                       # (P+1, B, D)
    sa_logits = jnp.sum((c_i * w_sa)[None, :, :] * Cp, axis=-1)          # (P+1, B)
    step_ids = lax.broadcasted_iota(jnp.int32, sa_logits.shape, 0)
    sa_logits = jnp.where(step_ids <= i, sa_logits,
                          jnp.full_like(sa_logits, -1e30))
    smax = jnp.max(sa_logits, axis=0, keepdims=True)
    e = jnp.exp(sa_logits - smax)
    sa = e / jnp.sum(e, axis=0, keepdims=True)                           # (P+1, B)
    m_sa = jnp.sum(sa[:, :, None] * Mp, axis=0)                          # (B, D)
    m_i = dot(jnp.concatenate([m_new, m_sa], axis=-1), w_m12_ref[0])     # (B, D)

    cp_s[i + 1] = c_i
    mp_s[i + 1] = m_i

    # ------------------------- output unit (last step) -------------------------
    @pl.when(i == last)
    def _():
        h = dot(jnp.concatenate([m_i, q], axis=-1), w_out_ref[...]) + b_o_ref[...]
        h = jnp.where(h > 0, h, jnp.exp(jnp.minimum(h, 0.0)) - 1.0)      # ELU
        out_ref[...] = dot(h, cand_t_ref[...])                           # (B, L)


# =========================== parameters & forward ============================

def init_params(key):
    keys = jax.random.split(key, 40)
    ki = iter(keys)

    def w(shape, scale=0.05):
        return scale * jax.random.normal(next(ki), shape, dtype=jnp.float32)

    params = {
        "emb": w((VOCAB, D), 0.1),
        "w_K": w((D, D)), "w_cws": w((D, D)), "w_q": w((D, D)),
        "label_cand": w((N_LABELS, D), 0.1),
        "w_o_m": w((D, D)), "w_o_q": w((D, D)),
        "b_o": jnp.zeros((1, D), jnp.float32),
    }
    # per-step MAC cell weights (each of the p MacCells has its own params)
    cell = {}
    for name in ["w_qi", "w_cq_c", "w_cq_q", "w_m", "w_k", "w_i1", "w_i2",
                 "w_w_r", "w_w_m", "w_m1", "w_m2"]:
        cell[name] = w((P, D, D))
    for name in ["w_ca", "w_ra", "w_sa"]:
        cell[name] = w((P, 1, D))
    cell["b_qi"] = w((P, 1, D))
    params["cell"] = cell
    return params


def mac_network_forward(params, context_ids, question_ids, m0, c0):
    # ------------------------------ embeddings -------------------------------
    emb = params["emb"]
    ctx_emb = jnp.take(emb, context_ids, axis=0)                      # (B, S, D)
    q_emb = jnp.mean(jnp.take(emb, question_ids, axis=0), axis=1)     # (B, D)
    b, s, d = ctx_emb.shape
    p = P

    cell = params["cell"]
    # Weight concatenation -> wider MXU matmuls (N = 2d or K = 2d).
    w_in = jnp.concatenate([params["w_K"], params["w_cws"]], axis=1)      # (D, 2D)
    w_out = jnp.concatenate([params["w_o_m"], params["w_o_q"]], axis=0)   # (2D, D)
    cand_t = params["label_cand"].T                                       # (D, L)
    w_cq = jnp.concatenate([cell["w_cq_c"], cell["w_cq_q"]], axis=1)      # (P, 2D, D)
    w_mwm = jnp.concatenate([cell["w_m"], cell["w_w_m"]], axis=2)         # (P, D, 2D)
    w_ki2 = jnp.concatenate([cell["w_k"], cell["w_i2"]], axis=2)          # (P, D, 2D)
    w_m12 = jnp.concatenate([cell["w_m1"], cell["w_m2"]], axis=1)         # (P, 2D, D)
    gates = jnp.concatenate(
        [cell["b_qi"], cell["w_ca"], cell["w_ra"], cell["w_sa"],
         jnp.zeros((p, 4, d), jnp.float32)], axis=1)                      # (P, 8, D)

    def const_spec(shape):
        return pl.BlockSpec(shape, lambda i: (0, 0))

    def step_spec(shape):
        return pl.BlockSpec((1,) + shape, lambda i: (i, 0, 0))

    grid_spec = pltpu.PrefetchScalarGridSpec(
        num_scalar_prefetch=0,
        grid=(p,),
        in_specs=[
            const_spec((b * s, d)),        # ctx_emb (flattened)
            const_spec((b, d)),            # q_emb
            const_spec((b, d)),            # c0
            const_spec((b, d)),            # m0
            const_spec((d, 2 * d)),        # w_in   = [w_K | w_cws]
            const_spec((d, d)),            # w_q
            const_spec((2 * d, d)),        # w_out  = [w_o_m ; w_o_q]
            const_spec((1, d)),            # b_o
            const_spec((d, N_LABELS)),     # label candidates (transposed)
            step_spec((d, d)),             # w_qi
            step_spec((2 * d, d)),         # w_cq   = [w_cq_c ; w_cq_q]
            step_spec((d, 2 * d)),         # w_mwm  = [w_m | w_w_m]
            step_spec((d, 2 * d)),         # w_ki2  = [w_k | w_i2]
            step_spec((d, d)),             # w_i1
            step_spec((d, d)),             # w_w_r
            step_spec((2 * d, d)),         # w_m12  = [w_m1 ; w_m2]
            step_spec((8, d)),             # gates  = [b_qi, w_ca, w_ra, w_sa, pad]
        ],
        out_specs=pl.BlockSpec((b, N_LABELS), lambda i: (0, 0)),
        scratch_shapes=[
            pltpu.VMEM((b, s, d), jnp.float32),        # K
            pltpu.VMEM((b, s, d), jnp.float32),        # cws
            pltpu.VMEM((b, d), jnp.float32),           # q
            pltpu.VMEM((p + 1, b, d), jnp.float32),    # C_past
            pltpu.VMEM((p + 1, b, d), jnp.float32),    # M_past
        ],
    )

    logits = pl.pallas_call(
        _mac_fused_kernel,
        out_shape=jax.ShapeDtypeStruct((b, N_LABELS), jnp.float32),
        grid_spec=grid_spec,
        compiler_params=pltpu.CompilerParams(
            dimension_semantics=("arbitrary",),      # recurrence over steps
            vmem_limit_bytes=64 * 1024 * 1024),
    )(ctx_emb.reshape(b * s, d), q_emb, c0, m0,
      w_in, params["w_q"], w_out, params["b_o"], cand_t,
      cell["w_qi"], w_cq, w_mwm, w_ki2, cell["w_i1"], cell["w_w_r"],
      w_m12, gates)
    return logits


# ================================== main =====================================

if __name__ == "__main__":
    key = jax.random.PRNGKey(0)
    k_par, k_ctx, k_q, k_m0, k_c0 = jax.random.split(key, 5)

    params = init_params(k_par)
    context = jax.random.randint(k_ctx, (B, S_CTX), 0, VOCAB, dtype=jnp.int32)
    question = jax.random.randint(k_q, (B, S_Q), 0, VOCAB, dtype=jnp.int32)
    # init_hidden(): m0, c0 ~ U[0, 1)
    m0 = jax.random.uniform(k_m0, (B, D), dtype=jnp.float32)
    c0 = jax.random.uniform(k_c0, (B, D), dtype=jnp.float32)

    logits = jax.jit(mac_network_forward)(params, context, question, m0, c0)
    logits = jax.block_until_ready(logits)

    assert logits.shape == (B, N_LABELS), logits.shape
    assert bool(jnp.all(jnp.isfinite(logits)))
    print("KERNEL_OK")
</pallas_src>

<mosaic_0001>
module attributes {stable_mosaic.version = 11 : i64} {
  func.func @_mac_fused_kernel(%arg0: i32, %arg1: memref<16x128xf32, #tpu.memory_space<vmem>>, %arg2: memref<2x128xf32, #tpu.memory_space<vmem>>, %arg3: memref<2x128xf32, #tpu.memory_space<vmem>>, %arg4: memref<2x128xf32, #tpu.memory_space<vmem>>, %arg5: memref<128x256xf32, #tpu.memory_space<vmem>>, %arg6: memref<128x128xf32, #tpu.memory_space<vmem>>, %arg7: memref<256x128xf32, #tpu.memory_space<vmem>>, %arg8: memref<1x128xf32, #tpu.memory_space<vmem>>, %arg9: memref<128x4xf32, #tpu.memory_space<vmem>>, %arg10: memref<1x128x128xf32, #tpu.memory_space<vmem>>, %arg11: memref<1x256x128xf32, #tpu.memory_space<vmem>>, %arg12: memref<1x128x256xf32, #tpu.memory_space<vmem>>, %arg13: memref<1x128x256xf32, #tpu.memory_space<vmem>>, %arg14: memref<1x128x128xf32, #tpu.memory_space<vmem>>, %arg15: memref<1x128x128xf32, #tpu.memory_space<vmem>>, %arg16: memref<1x256x128xf32, #tpu.memory_space<vmem>>, %arg17: memref<1x8x128xf32, #tpu.memory_space<vmem>>, %arg18: memref<2x4xf32, #tpu.memory_space<vmem>>, %arg19: memref<2x8x128xf32, #tpu.memory_space<vmem>>, %arg20: memref<2x8x128xf32, #tpu.memory_space<vmem>>, %arg21: memref<2x128xf32, #tpu.memory_space<vmem>>, %arg22: memref<5x2x128xf32, #tpu.memory_space<vmem>>, %arg23: memref<5x2x128xf32, #tpu.memory_space<vmem>>) attributes {dimension_semantics = [#tpu.dimension_semantics<arbitrary>], iteration_bounds = array<i64: 4>, scalar_prefetch = 0 : i64, scratch_operands = 5 : i64, tpu.core_type = #tpu.core_type<tc>, window_params = [{pipeline_mode = #tpu.pipeline_mode<synchronous>, transform_indices = @transform_0, window_bounds = array<i64: 16, 128>}, {pipeline_mode = #tpu.pipeline_mode<synchronous>, transform_indices = @transform_1, window_bounds = array<i64: 2, 128>}, {pipeline_mode = #tpu.pipeline_mode<synchronous>, transform_indices = @transform_2, window_bounds = array<i64: 2, 128>}, {pipeline_mode = #tpu.pipeline_mode<synchronous>, transform_indices = @transform_3, window_bounds = array<i64: 2, 128>}, {pipeline_mode = #tpu.pipeline_mode<synchronous>, transform_indices = @transform_4, window_bounds = array<i64: 128, 256>}, {pipeline_mode = #tpu.pipeline_mode<synchronous>, transform_indices = @transform_5, window_bounds = array<i64: 128, 128>}, {pipeline_mode = #tpu.pipeline_mode<synchronous>, transform_indices = @transform_6, window_bounds = array<i64: 256, 128>}, {pipeline_mode = #tpu.pipeline_mode<synchronous>, transform_indices = @transform_7, window_bounds = array<i64: 1, 128>}, {pipeline_mode = #tpu.pipeline_mode<synchronous>, transform_indices = @transform_8, window_bounds = array<i64: 128, 4>}, {transform_indices = @transform_9, window_bounds = array<i64: 1, 128, 128>}, {transform_indices = @transform_10, window_bounds = array<i64: 1, 256, 128>}, {transform_indices = @transform_11, window_bounds = array<i64: 1, 128, 256>}, {transform_indices = @transform_12, window_bounds = array<i64: 1, 128, 256>}, {transform_indices = @transform_13, window_bounds = array<i64: 1, 128, 128>}, {transform_indices = @transform_14, window_bounds = array<i64: 1, 128, 128>}, {transform_indices = @transform_15, window_bounds = array<i64: 1, 256, 128>}, {transform_indices = @transform_16, window_bounds = array<i64: 1, 8, 128>}, {pipeline_mode = #tpu.pipeline_mode<synchronous>, transform_indices = @transform_17, window_bounds = array<i64: 2, 4>}]} {
    %c0_i32 = arith.constant 0 : i32
    %0 = arith.cmpi eq, %arg0, %c0_i32 : i32
    %1 = arith.extui %0 : i1 to i32
    %c0_i32_0 = arith.constant 0 : i32
    %2 = arith.cmpi ne, %1, %c0_i32_0 : i32
    scf.if %2 {
      %c0_67 = arith.constant 0 : index
      %c0_68 = arith.constant 0 : index
      %130 = vector.load %arg1[%c0_67, %c0_68] : memref<16x128xf32, #tpu.memory_space<vmem>>, vector<16x128xf32>
      %c0_69 = arith.constant 0 : index
      %c0_70 = arith.constant 0 : index
      %131 = vector.load %arg5[%c0_69, %c0_70] : memref<128x256xf32, #tpu.memory_space<vmem>>, vector<128x256xf32>
      %cst_71 = arith.constant dense<0.000000e+00> : vector<16x256xf32>
      %132 = tpu.matmul %130, %131, %cst_71 {dimension_numbers = #tpu.dot_dimension_numbers<[1], [0], [0], [1], [0, 0, 1, 1], [], []>} : vector<16x128xf32>, vector<128x256xf32>, vector<16x256xf32> -> vector<16x256xf32>
      %133 = vector.extract_strided_slice %132 {offsets = [0, 0], sizes = [16, 128], strides = [1, 1]} : vector<16x256xf32> to vector<16x128xf32>
      %134 = vector.shape_cast %133 : vector<16x128xf32> to vector<2x8x128xf32>
      %c0_72 = arith.constant 0 : index
      %c0_73 = arith.constant 0 : index
      %c0_74 = arith.constant 0 : index
      %135 = vector.load %arg19[%c0_72, %c0_73, %c0_74] : memref<2x8x128xf32, #tpu.memory_space<vmem>>, vector<2x8x128xf32>
      tpu.vector_store %arg19[%c0_72, %c0_73, %c0_74], %134 {strides = array<i32>} : memref<2x8x128xf32, #tpu.memory_space<vmem>>, vector<2x8x128xf32>,
      %136 = vector.extract_strided_slice %132 {offsets = [0, 128], sizes = [16, 128], strides = [1, 1]} : vector<16x256xf32> to vector<16x128xf32>
      %137 = vector.shape_cast %136 : vector<16x128xf32> to vector<2x8x128xf32>
      %c0_75 = arith.constant 0 : index
      %c0_76 = arith.constant 0 : index
      %c0_77 = arith.constant 0 : index
      %138 = vector.load %arg20[%c0_75, %c0_76, %c0_77] : memref<2x8x128xf32, #tpu.memory_space<vmem>>, vector<2x8x128xf32>
      tpu.vector_store %arg20[%c0_75, %c0_76, %c0_77], %137 {strides = array<i32>} : memref<2x8x128xf32, #tpu.memory_space<vmem>>, vector<2x8x128xf32>,
      %c0_78 = arith.constant 0 : index
      %c0_79 = arith.constant 0 : index
      %139 = vector.load %arg2[%c0_78, %c0_79] : memref<2x128xf32, #tpu.memory_space<vmem>>, vector<2x128xf32>
      %c0_80 = arith.constant 0 : index
      %c0_81 = arith.constant 0 : index
      %140 = vector.load %arg6[%c0_80, %c0_81] : memref<128x128xf32, #tpu.memory_space<vmem>>, vector<128x128xf32>
      %cst_82 = arith.constant dense<0.000000e+00> : vector<2x128xf32>
      %141 = tpu.matmul %139, %140, %cst_82 {dimension_numbers = #tpu.dot_dimension_numbers<[1], [0], [0], [1], [0, 0, 1, 1], [], []>} : vector<2x128xf32>, vector<128x128xf32>, vector<2x128xf32> -> vector<2x128xf32>
      %c0_83 = arith.constant 0 : index
      %c0_84 = arith.constant 0 : index
      %142 = vector.load %arg21[%c0_83, %c0_84] : memref<2x128xf32, #tpu.memory_space<vmem>>, vector<2x128xf32>
      tpu.vector_store %arg21[%c0_83, %c0_84], %141 {strides = array<i32>} : memref<2x128xf32, #tpu.memory_space<vmem>>, vector<2x128xf32>,
      %cst_85 = arith.constant 0.000000e+00 : f32
      %143 = vector.broadcast %cst_85 : f32 to vector<5x2x128xf32>
      %c0_86 = arith.constant 0 : index
      %c0_87 = arith.constant 0 : index
      %c0_88 = arith.constant 0 : index
      %144 = vector.load %arg22[%c0_86, %c0_87, %c0_88] : memref<5x2x128xf32, #tpu.memory_space<vmem>>, vector<5x2x128xf32>
      tpu.vector_store %arg22[%c0_86, %c0_87, %c0_88], %143 {strides = array<i32>} : memref<5x2x128xf32, #tpu.memory_space<vmem>>, vector<5x2x128xf32>,
      %cst_89 = arith.constant 0.000000e+00 : f32
      %145 = vector.broadcast %cst_89 : f32 to vector<5x2x128xf32>
      %c0_90 = arith.constant 0 : index
      %c0_91 = arith.constant 0 : index
      %c0_92 = arith.constant 0 : index
      %146 = vector.load %arg23[%c0_90, %c0_91, %c0_92] : memref<5x2x128xf32, #tpu.memory_space<vmem>>, vector<5x2x128xf32>
      tpu.vector_store %arg23[%c0_90, %c0_91, %c0_92], %145 {strides = array<i32>} : memref<5x2x128xf32, #tpu.memory_space<vmem>>, vector<5x2x128xf32>,
      %c0_93 = arith.constant 0 : index
      %c0_94 = arith.constant 0 : index
      %147 = vector.load %arg3[%c0_93, %c0_94] : memref<2x128xf32, #tpu.memory_space<vmem>>, vector<2x128xf32>
      %c0_95 = arith.constant 0 : index
      %c0_96 = arith.constant 0 : index
      %c0_97 = arith.constant 0 : index
      %148 = vector.load %arg22[%c0_95, %c0_96, %c0_97] : memref<5x2x128xf32, #tpu.memory_space<vmem>>, vector<1x2x128xf32>
      %149 = vector.shape_cast %148 : vector<1x2x128xf32> to vector<2x128xf32>
      %150 = vector.shape_cast %147 : vector<2x128xf32> to vector<1x2x128xf32>
      tpu.vector_store %arg22[%c0_95, %c0_96, %c0_97], %150 {strides = array<i32>} : memref<5x2x128xf32, #tpu.memory_space<vmem>>, vector<1x2x128xf32>,
      %c0_98 = arith.constant 0 : index
      %c0_99 = arith.constant 0 : index
      %151 = vector.load %arg4[%c0_98, %c0_99] : memref<2x128xf32, #tpu.memory_space<vmem>>, vector<2x128xf32>
      %c0_100 = arith.constant 0 : index
      %c0_101 = arith.constant 0 : index
      %c0_102 = arith.constant 0 : index
      %152 = vector.load %arg23[%c0_100, %c0_101, %c0_102] : memref<5x2x128xf32, #tpu.memory_space<vmem>>, vector<1x2x128xf32>
      %153 = vector.shape_cast %152 : vector<1x2x128xf32> to vector<2x128xf32>
      %154 = vector.shape_cast %151 : vector<2x128xf32> to vector<1x2x128xf32>
      tpu.vector_store %arg23[%c0_100, %c0_101, %c0_102], %154 {strides = array<i32>} : memref<5x2x128xf32, #tpu.memory_space<vmem>>, vector<1x2x128xf32>,
    } else {
    }
    %c0 = arith.constant 0 : index
    %c0_1 = arith.constant 0 : index
    %c0_2 = arith.constant 0 : index
    %3 = vector.load %arg19[%c0, %c0_1, %c0_2] : memref<2x8x128xf32, #tpu.memory_space<vmem>>, vector<2x8x128xf32>
    %c0_3 = arith.constant 0 : index
    %c0_4 = arith.constant 0 : index
    %c0_5 = arith.constant 0 : index
    %4 = vector.load %arg20[%c0_3, %c0_4, %c0_5] : memref<2x8x128xf32, #tpu.memory_space<vmem>>, vector<2x8x128xf32>
    %c0_6 = arith.constant 0 : index
    %c0_7 = arith.constant 0 : index
    %5 = vector.load %arg21[%c0_6, %c0_7] : memref<2x128xf32, #tpu.memory_space<vmem>>, vector<2x128xf32>
    %6 = arith.index_cast %arg0 : i32 to index
    %c0_8 = arith.constant 0 : index
    %c0_9 = arith.constant 0 : index
    %7 = vector.load %arg22[%6, %c0_8, %c0_9] : memref<5x2x128xf32, #tpu.memory_space<vmem>>, vector<1x2x128xf32>
    %8 = vector.shape_cast %7 : vector<1x2x128xf32> to vector<2x128xf32>
    %9 = arith.index_cast %arg0 : i32 to index
    %c0_10 = arith.constant 0 : index
    %c0_11 = arith.constant 0 : index
    %10 = vector.load %arg23[%9, %c0_10, %c0_11] : memref<5x2x128xf32, #tpu.memory_space<vmem>>, vector<1x2x128xf32>
    %11 = vector.shape_cast %10 : vector<1x2x128xf32> to vector<2x128xf32>
    %c0_12 = arith.constant 0 : index
    %c0_13 = arith.constant 0 : index
    %c0_14 = arith.constant 0 : index
    %12 = vector.load %arg17[%c0_12, %c0_13, %c0_14] : memref<1x8x128xf32, #tpu.memory_space<vmem>>, vector<1x8x128xf32>
    %13 = vector.shape_cast %12 : vector<1x8x128xf32> to vector<8x128xf32>
    %14 = vector.extract_strided_slice %13 {offsets = [0, 0], sizes = [1, 128], strides = [1, 1]} : vector<8x128xf32> to vector<1x128xf32>
    %15 = vector.extract_strided_slice %13 {offsets = [1, 0], sizes = [1, 128], strides = [1, 1]} : vector<8x128xf32> to vector<1x128xf32>
    %16 = vector.extract_strided_slice %13 {offsets = [2, 0], sizes = [1, 128], strides = [1, 1]} : vector<8x128xf32> to vector<1x128xf32>
    %17 = vector.extract_strided_slice %13 {offsets = [3, 0], sizes = [1, 128], strides = [1, 1]} : vector<8x128xf32> to vector<1x128xf32>
    %c0_15 = arith.constant 0 : index
    %c0_16 = arith.constant 0 : index
    %c0_17 = arith.constant 0 : index
    %18 = vector.load %arg10[%c0_15, %c0_16, %c0_17] : memref<1x128x128xf32, #tpu.memory_space<vmem>>, vector<1x128x128xf32>
    %19 = vector.shape_cast %18 : vector<1x128x128xf32> to vector<128x128xf32>
    %cst = arith.constant dense<0.000000e+00> : vector<2x128xf32>
    %20 = tpu.matmul %5, %19, %cst {dimension_numbers = #tpu.dot_dimension_numbers<[1], [0], [0], [1], [0, 0, 1, 1], [], []>} : vector<2x128xf32>, vector<128x128xf32>, vector<2x128xf32> -> vector<2x128xf32>
    %21 = vector.broadcast %14 : vector<1x128xf32> to vector<2x128xf32>
    %22 = arith.addf %20, %21 : vector<2x128xf32>
    %23 = tpu.concatenate %8, %22 in 1 : vector<2x128xf32>, vector<2x128xf32> -> vector<2x256xf32>
    %c0_18 = arith.constant 0 : index
    %c0_19 = arith.constant 0 : index
    %c0_20 = arith.constant 0 : index
    %24 = vector.load %arg11[%c0_18, %c0_19, %c0_20] : memref<1x256x128xf32, #tpu.memory_space<vmem>>, vector<1x256x128xf32>
    %25 = vector.shape_cast %24 : vector<1x256x128xf32> to vector<256x128xf32>
    %cst_21 = arith.constant dense<0.000000e+00> : vector<2x128xf32>
    %26 = tpu.matmul %23, %25, %cst_21 {dimension_numbers = #tpu.dot_dimension_numbers<[1], [0], [0], [1], [0, 0, 1, 1], [], []>} : vector<2x256xf32>, vector<256x128xf32>, vector<2x128xf32> -> vector<2x128xf32>
    %27 = vector.broadcast %15 : vector<1x128xf32> to vector<2x128xf32>
    %28 = arith.mulf %26, %27 : vector<2x128xf32>
    %29 = vector.shape_cast %28 : vector<2x128xf32> to vector<2x1x128xf32>
    "tpu.trace_start"() <{level = 10 : i32, message = "bqd,bsd->bqs"}> : () -> ()
    %cst_22 = arith.constant dense<0.000000e+00> : vector<2x1x8xf32>
    %30 = tpu.matmul %29, %4, %cst_22 {dimension_numbers = #tpu.dot_dimension_numbers<[2], [2], [1], [1], [0, 0, 0, 1, 1, 1], [0], [0]>} : vector<2x1x128xf32>, vector<2x8x128xf32>, vector<2x1x8xf32> -> vector<2x1x8xf32>
    "tpu.trace_stop"() : () -> ()
    %31 = vector.shape_cast %30 : vector<2x1x8xf32> to vector<2x8xf32>
    %cst_23 = arith.constant dense<0xFF800000> : vector<2xf32>
    %32 = vector.multi_reduction <maximumf>, %31, %cst_23 [1] : vector<2x8xf32> to vector<2xf32>
    %33 = vector.shape_cast %32 : vector<2xf32> to vector<2x1xf32>
    %34 = vector.broadcast %33 : vector<2x1xf32> to vector<2x8xf32>
    %35 = arith.subf %31, %34 : vector<2x8xf32>
    %36 = math.exp %35 : vector<2x8xf32>
    %cst_24 = arith.constant dense<0.000000e+00> : vector<2xf32>
    %37 = vector.multi_reduction <add>, %36, %cst_24 [1] : vector<2x8xf32> to vector<2xf32>
    %38 = vector.shape_cast %37 : vector<2xf32> to vector<2x1xf32>
    %39 = vector.broadcast %38 : vector<2x1xf32> to vector<2x8xf32>
    %40 = arith.divf %36, %39 : vector<2x8xf32>
    %41 = vector.shape_cast %40 : vector<2x8xf32> to vector<2x1x8xf32>
    "tpu.trace_start"() <{level = 10 : i32, message = "bqs,bsd->bqd"}> : () -> ()
    %cst_25 = arith.constant dense<0.000000e+00> : vector<2x1x128xf32>
    %42 = tpu.matmul %41, %4, %cst_25 {dimension_numbers = #tpu.dot_dimension_numbers<[2], [1], [1], [2], [0, 0, 0, 1, 1, 2], [0], [0]>} : vector<2x1x8xf32>, vector<2x8x128xf32>, vector<2x1x128xf32> -> vector<2x1x128xf32>
    "tpu.trace_stop"() : () -> ()
    %43 = vector.shape_cast %42 : vector<2x1x128xf32> to vector<2x128xf32>
    %c0_26 = arith.constant 0 : index
    %c0_27 = arith.constant 0 : index
    %c0_28 = arith.constant 0 : index
    %44 = vector.load %arg12[%c0_26, %c0_27, %c0_28] : memref<1x128x256xf32, #tpu.memory_space<vmem>>, vector<1x128x256xf32>
    %45 = vector.shape_cast %44 : vector<1x128x256xf32> to vector<128x256xf32>
    %cst_29 = arith.constant dense<0.000000e+00> : vector<2x256xf32>
    %46 = tpu.matmul %11, %45, %cst_29 {dimension_numbers = #tpu.dot_dimension_numbers<[1], [0], [0], [1], [0, 0, 1, 1], [], []>} : vector<2x128xf32>, vector<128x256xf32>, vector<2x256xf32> -> vector<2x256xf32>
    %47 = vector.extract_strided_slice %46 {offsets = [0, 0], sizes = [2, 128], strides = [1, 1]} : vector<2x256xf32> to vector<2x128xf32>
    %48 = vector.extract_strided_slice %46 {offsets = [0, 128], sizes = [2, 128], strides = [1, 1]} : vector<2x256xf32> to vector<2x128xf32>
    %49 = vector.shape_cast %3 : vector<2x8x128xf32> to vector<16x128xf32>
    %c0_30 = arith.constant 0 : index
    %c0_31 = arith.constant 0 : index
    %c0_32 = arith.constant 0 : index
    %50 = vector.load %arg13[%c0_30, %c0_31, %c0_32] : memref<1x128x256xf32, #tpu.memory_space<vmem>>, vector<1x128x256xf32>
    %51 = vector.shape_cast %50 : vector<1x128x256xf32> to vector<128x256xf32>
    %cst_33 = arith.constant dense<0.000000e+00> : vector<16x256xf32>
    %52 = tpu.matmul %49, %51, %cst_33 {dimension_numbers = #tpu.dot_dimension_numbers<[1], [0], [0], [1], [0, 0, 1, 1], [], []>} : vector<16x128xf32>, vector<128x256xf32>, vector<16x256xf32> -> vector<16x256xf32>
    %53 = vector.extract_strided_slice %52 {offsets = [0, 0], sizes = [16, 128], strides = [1, 1]} : vector<16x256xf32> to vector<16x128xf32>
    %54 = vector.shape_cast %53 : vector<16x128xf32> to vector<2x8x128xf32>
    %55 = vector.extract_strided_slice %52 {offsets = [0, 128], sizes = [16, 128], strides = [1, 1]} : vector<16x256xf32> to vector<16x128xf32>
    %56 = vector.shape_cast %55 : vector<16x128xf32> to vector<2x8x128xf32>
    %57 = vector.shape_cast %47 : vector<2x128xf32> to vector<2x1x128xf32>
    %58 = vector.broadcast %57 : vector<2x1x128xf32> to vector<2x8x128xf32>
    %59 = arith.mulf %58, %54 : vector<2x8x128xf32>
    %60 = vector.shape_cast %59 : vector<2x8x128xf32> to vector<16x128xf32>
    %c0_34 = arith.constant 0 : index
    %c0_35 = arith.constant 0 : index
    %c0_36 = arith.constant 0 : index
    %61 = vector.load %arg14[%c0_34, %c0_35, %c0_36] : memref<1x128x128xf32, #tpu.memory_space<vmem>>, vector<1x128x128xf32>
    %62 = vector.shape_cast %61 : vector<1x128x128xf32> to vector<128x128xf32>
    %cst_37 = arith.constant dense<0.000000e+00> : vector<16x128xf32>
    %63 = tpu.matmul %60, %62, %cst_37 {dimension_numbers = #tpu.dot_dimension_numbers<[1], [0], [0], [1], [0, 0, 1, 1], [], []>} : vector<16x128xf32>, vector<128x128xf32>, vector<16x128xf32> -> vector<16x128xf32>
    %64 = vector.shape_cast %63 : vector<16x128xf32> to vector<2x8x128xf32>
    %65 = arith.addf %64, %56 : vector<2x8x128xf32>
    %66 = vector.broadcast %16 : vector<1x128xf32> to vector<2x128xf32>
    %67 = arith.mulf %43, %66 : vector<2x128xf32>
    %68 = vector.shape_cast %67 : vector<2x128xf32> to vector<2x1x128xf32>
    "tpu.trace_start"() <{level = 10 : i32, message = "bqd,bsd->bqs"}> : () -> ()
    %cst_38 = arith.constant dense<0.000000e+00> : vector<2x1x8xf32>
    %69 = tpu.matmul %68, %65, %cst_38 {dimension_numbers = #tpu.dot_dimension_numbers<[2], [2], [1], [1], [0, 0, 0, 1, 1, 1], [0], [0]>} : vector<2x1x128xf32>, vector<2x8x128xf32>, vector<2x1x8xf32> -> vector<2x1x8xf32>
    "tpu.trace_stop"() : () -> ()
    %70 = vector.shape_cast %69 : vector<2x1x8xf32> to vector<2x8xf32>
    %cst_39 = arith.constant dense<0xFF800000> : vector<2xf32>
    %71 = vector.multi_reduction <maximumf>, %70, %cst_39 [1] : vector<2x8xf32> to vector<2xf32>
    %72 = vector.shape_cast %71 : vector<2xf32> to vector<2x1xf32>
    %73 = vector.broadcast %72 : vector<2x1xf32> to vector<2x8xf32>
    %74 = arith.subf %70, %73 : vector<2x8xf32>
    %75 = math.exp %74 : vector<2x8xf32>
    %cst_40 = arith.constant dense<0.000000e+00> : vector<2xf32>
    %76 = vector.multi_reduction <add>, %75, %cst_40 [1] : vector<2x8xf32> to vector<2xf32>
    %77 = vector.shape_cast %76 : vector<2xf32> to vector<2x1xf32>
    %78 = vector.broadcast %77 : vector<2x1xf32> to vector<2x8xf32>
    %79 = arith.divf %75, %78 : vector<2x8xf32>
    %80 = vector.shape_cast %79 : vector<2x8xf32> to vector<2x1x8xf32>
    "tpu.trace_start"() <{level = 10 : i32, message = "bqs,bsd->bqd"}> : () -> ()
    %cst_41 = arith.constant dense<0.000000e+00> : vector<2x1x128xf32>
    %81 = tpu.matmul %80, %3, %cst_41 {dimension_numbers = #tpu.dot_dimension_numbers<[2], [1], [1], [2], [0, 0, 0, 1, 1, 2], [0], [0]>} : vector<2x1x8xf32>, vector<2x8x128xf32>, vector<2x1x128xf32> -> vector<2x1x128xf32>
    "tpu.trace_stop"() : () -> ()
    %82 = vector.shape_cast %81 : vector<2x1x128xf32> to vector<2x128xf32>
    %c0_42 = arith.constant 0 : index
    %c0_43 = arith.constant 0 : index
    %c0_44 = arith.constant 0 : index
    %83 = vector.load %arg15[%c0_42, %c0_43, %c0_44] : memref<1x128x128xf32, #tpu.memory_space<vmem>>, vector<1x128x128xf32>
    %84 = vector.shape_cast %83 : vector<1x128x128xf32> to vector<128x128xf32>
    %cst_45 = arith.constant dense<0.000000e+00> : vector<2x128xf32>
    %85 = tpu.matmul %82, %84, %cst_45 {dimension_numbers = #tpu.dot_dimension_numbers<[1], [0], [0], [1], [0, 0, 1, 1], [], []>} : vector<2x128xf32>, vector<128x128xf32>, vector<2x128xf32> -> vector<2x128xf32>
    %86 = arith.addf %85, %48 : vector<2x128xf32>
    %c0_46 = arith.constant 0 : index
    %c0_47 = arith.constant 0 : index
    %c0_48 = arith.constant 0 : index
    %87 = vector.load %arg22[%c0_46, %c0_47, %c0_48] : memref<5x2x128xf32, #tpu.memory_space<vmem>>, vector<5x2x128xf32>
    %c0_49 = arith.constant 0 : index
    %c0_50 = arith.constant 0 : index
    %c0_51 = arith.constant 0 : index
    %88 = vector.load %arg23[%c0_49, %c0_50, %c0_51] : memref<5x2x128xf32, #tpu.memory_space<vmem>>, vector<5x2x128xf32>
    %89 = vector.broadcast %17 : vector<1x128xf32> to vector<2x128xf32>
    %90 = arith.mulf %43, %89 : vector<2x128xf32>
    %91 = vector.shape_cast %90 : vector<2x128xf32> to vector<1x2x128xf32>
    %92 = vector.broadcast %91 : vector<1x2x128xf32> to vector<5x2x128xf32>
    %93 = arith.mulf %92, %87 : vector<5x2x128xf32>
    %cst_52 = arith.constant dense<0.000000e+00> : vector<5x2xf32>
    %94 = vector.multi_reduction <add>, %93, %cst_52 [2] : vector<5x2x128xf32> to vector<5x2xf32>
    %95 = tpu.iota {dimensions = array<i32: 0>} : vector<5x2xi32>
    %96 = vector.broadcast %arg0 : i32 to vector<5x2xi32>
    %97 = arith.cmpi sle, %95, %96 : vector<5x2xi32>
    %cst_53 = arith.constant -1.000000e+30 : f32
    %98 = vector.broadcast %cst_53 : f32 to vector<5x2xf32>
    %99 = arith.select %97, %94, %98 : vector<5x2xi1>, vector<5x2xf32>
    %cst_54 = arith.constant dense<0xFF800000> : vector<2xf32>
    %100 = vector.multi_reduction <maximumf>, %99, %cst_54 [0] : vector<5x2xf32> to vector<2xf32>
    %101 = vector.shape_cast %100 : vector<2xf32> to vector<1x2xf32>
    %102 = vector.broadcast %101 : vector<1x2xf32> to vector<5x2xf32>
    %103 = arith.subf %99, %102 : vector<5x2xf32>
    %104 = math.exp %103 : vector<5x2xf32>
    %cst_55 = arith.constant dense<0.000000e+00> : vector<2xf32>
    %105 = vector.multi_reduction <add>, %104, %cst_55 [0] : vector<5x2xf32> to vector<2xf32>
    %106 = vector.shape_cast %105 : vector<2xf32> to vector<1x2xf32>
    %107 = vector.broadcast %106 : vector<1x2xf32> to vector<5x2xf32>
    %108 = arith.divf %104, %107 : vector<5x2xf32>
    %109 = vector.shape_cast %108 : vector<5x2xf32> to vector<5x2x1xf32>
    %110 = vector.broadcast %109 : vector<5x2x1xf32> to vector<5x2x128xf32>
    %111 = arith.mulf %110, %88 : vector<5x2x128xf32>
    %cst_56 = arith.constant dense<0.000000e+00> : vector<2x128xf32>
    %112 = vector.multi_reduction <add>, %111, %cst_56 [0] : vector<5x2x128xf32> to vector<2x128xf32>
    %113 = tpu.concatenate %86, %112 in 1 : vector<2x128xf32>, vector<2x128xf32> -> vector<2x256xf32>
    %c0_57 = arith.constant 0 : index
    %c0_58 = arith.constant 0 : index
    %c0_59 = arith.constant 0 : index
    %114 = vector.load %arg16[%c0_57, %c0_58, %c0_59] : memref<1x256x128xf32, #tpu.memory_space<vmem>>, vector<1x256x128xf32>
    %115 = vector.shape_cast %114 : vector<1x256x128xf32> to vector<256x128xf32>
    %cst_60 = arith.constant dense<0.000000e+00> : vector<2x128xf32>
    %116 = tpu.matmul %113, %115, %cst_60 {dimension_numbers = #tpu.dot_dimension_numbers<[1], [0], [0], [1], [0, 0, 1, 1], [], []>} : vector<2x256xf32>, vector<256x128xf32>, vector<2x128xf32> -> vector<2x128xf32>
    %c1_i32 = arith.constant 1 : i32
    %117 = arith.addi %arg0, %c1_i32 : i32
    %118 = arith.index_cast %117 : i32 to index
    %c0_61 = arith.constant 0 : index
    %c0_62 = arith.constant 0 : index
    %119 = vector.load %arg22[%118, %c0_61, %c0_62] : memref<5x2x128xf32, #tpu.memory_space<vmem>>, vector<1x2x128xf32>
    %120 = vector.shape_cast %119 : vector<1x2x128xf32> to vector<2x128xf32>
    %121 = vector.shape_cast %43 : vector<2x128xf32> to vector<1x2x128xf32>
    tpu.vector_store %arg22[%118, %c0_61, %c0_62], %121 {strides = array<i32>} : memref<5x2x128xf32, #tpu.memory_space<vmem>>, vector<1x2x128xf32>,
    %c1_i32_63 = arith.constant 1 : i32
    %122 = arith.addi %arg0, %c1_i32_63 : i32
    %123 = arith.index_cast %122 : i32 to index
    %c0_64 = arith.constant 0 : index
    %c0_65 = arith.constant 0 : index
    %124 = vector.load %arg23[%123, %c0_64, %c0_65] : memref<5x2x128xf32, #tpu.memory_space<vmem>>, vector<1x2x128xf32>
    %125 = vector.shape_cast %124 : vector<1x2x128xf32> to vector<2x128xf32>
    %126 = vector.shape_cast %116 : vector<2x128xf32> to vector<1x2x128xf32>
    tpu.vector_store %arg23[%123, %c0_64, %c0_65], %126 {strides = array<i32>} : memref<5x2x128xf32, #tpu.memory_space<vmem>>, vector<1x2x128xf32>,
    %c3_i32 = arith.constant 3 : i32
    %127 = arith.cmpi eq, %arg0, %c3_i32 : i32
    %128 = arith.extui %127 : i1 to i32
    %c0_i32_66 = arith.constant 0 : i32
    %129 = arith.cmpi ne, %128, %c0_i32_66 : i32
    scf.if %129 {
      %130 = tpu.concatenate %116, %5 in 1 : vector<2x128xf32>, vector<2x128xf32> -> vector<2x256xf32>
      %c0_67 = arith.constant 0 : index
      %c0_68 = arith.constant 0 : index
      %131 = vector.load %arg7[%c0_67, %c0_68] : memref<256x128xf32, #tpu.memory_space<vmem>>, vector<256x128xf32>
      %cst_69 = arith.constant dense<0.000000e+00> : vector<2x128xf32>
      %132 = tpu.matmul %130, %131, %cst_69 {dimension_numbers = #tpu.dot_dimension_numbers<[1], [0], [0], [1], [0, 0, 1, 1], [], []>} : vector<2x256xf32>, vector<256x128xf32>, vector<2x128xf32> -> vector<2x128xf32>
      %c0_70 = arith.constant 0 : index
      %c0_71 = arith.constant 0 : index
      %133 = vector.load %arg8[%c0_70, %c0_71] : memref<1x128xf32, #tpu.memory_space<vmem>>, vector<1x128xf32>
      %134 = vector.broadcast %133 : vector<1x128xf32> to vector<2x128xf32>
      %135 = arith.addf %132, %134 : vector<2x128xf32>
      %cst_72 = arith.constant 0.000000e+00 : f32
      %136 = vector.broadcast %cst_72 : f32 to vector<2x128xf32>
      %137 = arith.cmpf ogt, %135, %136 : vector<2x128xf32>
      %cst_73 = arith.constant 0.000000e+00 : f32
      %138 = vector.broadcast %cst_73 : f32 to vector<2x128xf32>
      %139 = arith.minimumf %135, %138 : vector<2x128xf32>
      %140 = math.exp %139 : vector<2x128xf32>
      %cst_74 = arith.constant 1.000000e+00 : f32
      %141 = vector.broadcast %cst_74 : f32 to vector<2x128xf32>
      %142 = arith.subf %140, %141 : vector<2x128xf32>
      %143 = arith.select %137, %135, %142 : vector<2x128xi1>, vector<2x128xf32>
      %c0_75 = arith.constant 0 : index
      %c0_76 = arith.constant 0 : index
      %144 = vector.load %arg9[%c0_75, %c0_76] : memref<128x4xf32, #tpu.memory_space<vmem>>, vector<128x4xf32>
      %cst_77 = arith.constant dense<0.000000e+00> : vector<2x4xf32>
      %145 = tpu.matmul %143, %144, %cst_77 {dimension_numbers = #tpu.dot_dimension_numbers<[1], [0], [0], [1], [0, 0, 1, 1], [], []>} : vector<2x128xf32>, vector<128x4xf32>, vector<2x4xf32> -> vector<2x4xf32>
      %c0_78 = arith.constant 0 : index
      %c0_79 = arith.constant 0 : index
      %146 = vector.load %arg18[%c0_78, %c0_79] : memref<2x4xf32, #tpu.memory_space<vmem>>, vector<2x4xf32>
      tpu.vector_store %arg18[%c0_78, %c0_79], %145 {strides = array<i32>} : memref<2x4xf32, #tpu.memory_space<vmem>>, vector<2x4xf32>,
    } else {
    }
    return
  }
  func.func @transform_0(%arg0: i32) -> (i32, i32) {
    %c0_i32 = arith.constant 0 : i32
    %c0_i32_0 = arith.constant 0 : i32
    %c0_i32_1 = arith.constant 0 : i32
    return %c0_i32, %c0_i32_0 : i32, i32
  }
  func.func @transform_1(%arg0: i32) -> (i32, i32) {
    %c0_i32 = arith.constant 0 : i32
    %c0_i32_0 = arith.constant 0 : i32
    %c0_i32_1 = arith.constant 0 : i32
    return %c0_i32, %c0_i32_0 : i32, i32
  }
  func.func @transform_2(%arg0: i32) -> (i32, i32) {
    %c0_i32 = arith.constant 0 : i32
    %c0_i32_0 = arith.constant 0 : i32
    %c0_i32_1 = arith.constant 0 : i32
    return %c0_i32, %c0_i32_0 : i32, i32
  }
  func.func @transform_3(%arg0: i32) -> (i32, i32) {
    %c0_i32 = arith.constant 0 : i32
    %c0_i32_0 = arith.constant 0 : i32
    %c0_i32_1 = arith.constant 0 : i32
    return %c0_i32, %c0_i32_0 : i32, i32
  }
  func.func @transform_4(%arg0: i32) -> (i32, i32) {
    %c0_i32 = arith.constant 0 : i32
    %c0_i32_0 = arith.constant 0 : i32
    %c0_i32_1 = arith.constant 0 : i32
    return %c0_i32, %c0_i32_0 : i32, i32
  }
  func.func @transform_5(%arg0: i32) -> (i32, i32) {
    %c0_i32 = arith.constant 0 : i32
    %c0_i32_0 = arith.constant 0 : i32
    %c0_i32_1 = arith.constant 0 : i32
    return %c0_i32, %c0_i32_0 : i32, i32
  }
  func.func @transform_6(%arg0: i32) -> (i32, i32) {
    %c0_i32 = arith.constant 0 : i32
    %c0_i32_0 = arith.constant 0 : i32
    %c0_i32_1 = arith.constant 0 : i32
    return %c0_i32, %c0_i32_0 : i32, i32
  }
  func.func @transform_7(%arg0: i32) -> (i32, i32) {
    %c0_i32 = arith.constant 0 : i32
    %c0_i32_0 = arith.constant 0 : i32
    %c0_i32_1 = arith.constant 0 : i32
    return %c0_i32, %c0_i32_0 : i32, i32
  }
  func.func @transform_8(%arg0: i32) -> (i32, i32) {
    %c0_i32 = arith.constant 0 : i32
    %c0_i32_0 = arith.constant 0 : i32
    %c0_i32_1 = arith.constant 0 : i32
    return %c0_i32, %c0_i32_0 : i32, i32
  }
  func.func @transform_9(%arg0: i32) -> (i32, i32, i32) {
    %c0_i32 = arith.constant 0 : i32
    %c0_i32_0 = arith.constant 0 : i32
    %c0_i32_1 = arith.constant 0 : i32
    return %arg0, %c0_i32, %c0_i32_0 : i32, i32, i32
  }
  func.func @transform_10(%arg0: i32) -> (i32, i32, i32) {
    %c0_i32 = arith.constant 0 : i32
    %c0_i32_0 = arith.constant 0 : i32
    %c0_i32_1 = arith.constant 0 : i32
    return %arg0, %c0_i32, %c0_i32_0 : i32, i32, i32
  }
  func.func @transform_11(%arg0: i32) -> (i32, i32, i32) {
    %c0_i32 = arith.constant 0 : i32
    %c0_i32_0 = arith.constant 0 : i32
    %c0_i32_1 = arith.constant 0 : i32
    return %arg0, %c0_i32, %c0_i32_0 : i32, i32, i32
  }
  func.func @transform_12(%arg0: i32) -> (i32, i32, i32) {
    %c0_i32 = arith.constant 0 : i32
    %c0_i32_0 = arith.constant 0 : i32
    %c0_i32_1 = arith.constant 0 : i32
    return %arg0, %c0_i32, %c0_i32_0 : i32, i32, i32
  }
  func.func @transform_13(%arg0: i32) -> (i32, i32, i32) {
    %c0_i32 = arith.constant 0 : i32
    %c0_i32_0 = arith.constant 0 : i32
    %c0_i32_1 = arith.constant 0 : i32
    return %arg0, %c0_i32, %c0_i32_0 : i32, i32, i32
  }
  func.func @transform_14(%arg0: i32) -> (i32, i32, i32) {
    %c0_i32 = arith.constant 0 : i32
    %c0_i32_0 = arith.constant 0 : i32
    %c0_i32_1 = arith.constant 0 : i32
    return %arg0, %c0_i32, %c0_i32_0 : i32, i32, i32
  }
  func.func @transform_15(%arg0: i32) -> (i32, i32, i32) {
    %c0_i32 = arith.constant 0 : i32
    %c0_i32_0 = arith.constant 0 : i32
    %c0_i32_1 = arith.constant 0 : i32
    return %arg0, %c0_i32, %c0_i32_0 : i32, i32, i32
  }
  func.func @transform_16(%arg0: i32) -> (i32, i32, i32) {
    %c0_i32 = arith.constant 0 : i32
    %c0_i32_0 = arith.constant 0 : i32
    %c0_i32_1 = arith.constant 0 : i32
    return %arg0, %c0_i32, %c0_i32_0 : i32, i32, i32
  }
  func.func @transform_17(%arg0: i32) -> (i32, i32) {
    %c0_i32 = arith.constant 0 : i32
    %c0_i32_0 = arith.constant 0 : i32
    %c0_i32_1 = arith.constant 0 : i32
    return %c0_i32, %c0_i32_0 : i32, i32
  }
}

</mosaic_0001>

<bundles_post_ra>
// kernel: mac_network_forward.1
= control target key start
LH: loop header
LB: loop body
LE: loop exit
PB: predicated region body
PF: predicated region fallthrough
CT: control target
= control target key end

     0   :  { %s6074_s0 = inlined_call_operand.hbm [shape: f32[16,128], index: 0, kind: input, shape index: {}]   ;;  %s6075_s1 = inlined_call_operand.hbm [shape: f32[2,128], index: 1, kind: input, shape index: {}]   ;;  %s6076_s2 = inlined_call_operand.hbm [shape: f32[2,128], index: 2, kind: input, shape index: {}]   ;;  %s6077_s3 = inlined_call_operand.hbm [shape: f32[2,128], index: 3, kind: input, shape index: {}]   ;;  %s6078_s4 = inlined_call_operand.hbm [shape: f32[128,256], index: 4, kind: input, shape index: {}]   ;;  %s6079_s5 = inlined_call_operand.hbm [shape: f32[128,128], index: 5, kind: input, shape index: {}]   ;;  %s6080_s6 = inlined_call_operand.hbm [shape: f32[256,128], index: 6, kind: input, shape index: {}]   ;;  %s6081_s7 = inlined_call_operand.hbm [shape: f32[1,128], index: 7, kind: input, shape index: {}]   ;;  %s6082_s8 = inlined_call_operand.hbm [shape: f32[128,4], index: 8, kind: input, shape index: {}]   ;;  %s6083_s9 = inlined_call_operand.hbm [shape: f32[4,128,128], index: 9, kind: input, shape index: {}]   ;;  %s6084_s10 = inlined_call_operand.hbm [shape: f32[4,256,128], index: 10, kind: input, shape index: {}]   ;;  %s6085_s11 = inlined_call_operand.hbm [shape: f32[4,128,256], index: 11, kind: input, shape index: {}]   ;;  %s6086_s12 = inlined_call_operand.hbm [shape: f32[4,128,256], index: 12, kind: input, shape index: {}]   ;;  %s6087_s13 = inlined_call_operand.hbm [shape: f32[4,128,128], index: 13, kind: input, shape index: {}]   ;;  %s6088_s14 = inlined_call_operand.hbm [shape: f32[4,128,128], index: 14, kind: input, shape index: {}]   ;;  %s6089_s15 = inlined_call_operand.hbm [shape: f32[4,256,128], index: 15, kind: input, shape index: {}]   ;;  %s6090_s16 = inlined_call_operand.hbm [shape: f32[4,8,128], index: 16, kind: input, shape index: {}]   ;;  %s6091_s17 = inlined_call_operand.hbm [shape: f32[2,4], index: 17, kind: output, shape index: {}]  }
   0x1   :  { %6135 = sst [smem:[#allocation52_spill]] %s6074_s0 }
   0x2   :  { %6136 = sst [smem:[#allocation53_spill]] %s6075_s1 }
   0x3   :  { %6137 = sst [smem:[#allocation54_spill]] %s6076_s2 }
   0x4   :  { %6138 = sst [smem:[#allocation55_spill]] %s6077_s3 }
   0x5   :  { %6139 = sst [smem:[#allocation56_spill]] %s6079_s5 }
   0x6   :  { %6140 = sst [smem:[#allocation57_spill]] %s6081_s7 }
   0x7   :  { %6141 = sst [smem:[#allocation58_spill]] %s6083_s9 }
   0x8   :  { %6142 = sst [smem:[#allocation59_spill]] %s6084_s10 }
   0x9   :  { %6143 = sst [smem:[#allocation60_spill]] %s6085_s11 }
   0xa   :  { %6144 = sst [smem:[#allocation61_spill]] %s6086_s12 }
   0xb   :  { %6145 = sst [smem:[#allocation62_spill]] %s6087_s13 }
   0xc   :  { %6146 = sst [smem:[#allocation63_spill]] %s6088_s14 }
   0xd   :  { %6147 = sst [smem:[#allocation64_spill]] %s6089_s15 }
   0xe   :  { %6148 = sst [smem:[#allocation65_spill]] %s6090_s16 }
   0xf   :  { %6149 = sst [smem:[#allocation66_spill]] %s6091_s17 }
  0x10   :  { %22 = vsyncpa [#allocation8], 0 }
  0x11   :  { %23 = vsyncpa [#allocation11], 0 }
  0x12   :  { %24 = vsyncpa [#allocation14], 0 }
  0x13   :  { %25 = vsyncpa [#allocation17], 0 }
  0x14   :  { %26 = vsyncpa [#allocation20], 0 }
  0x15   :  { %27 = vsyncpa [#allocation23], 0 }
  0x16   :  { %29 = vsyncpa [#allocation23 + $0x1], 0 }
  0x17   :  { %30 = vsyncpa [#allocation26], 0 }
  0x18   :  { %32 = vsyncpa [#allocation26 + $0x1], 0 }
  0x19   :  { %33 = vsyncpa [#allocation29], 0 }
  0x1a   :  { %35 = vsyncpa [#allocation29 + $0x1], 0 }
  0x1b   :  { %36 = vsyncpa [#allocation32], 0 }
  0x1c   :  { %38 = vsyncpa [#allocation32 + $0x1], 0 }
  0x1d   :  { %39 = vsyncpa [#allocation9], 0  ;;  %s5036_s24 = smov 0   ;;  %s5038_s25 = smov 0  }
  0x1e   :  { %s5040_s26 = smov 0   ;;  %s5042_s27 = smov 0  }
  0x1f LB: > { %6150 = sst [smem:[#allocation45_spill]] %s4904_s25  ;;  %s4914_s28 = smov [#allocation10]   ;;  %s4912_s27 = sphi %s5042_s27, %s6212_s27   ;;  %s4908_s26 = sphi %s5040_s26, %s6215_s26   ;;  %s4904_s25 = sphi %s5038_s25, %s6214_s25   ;;  %s4900_s24 = sphi %s5036_s24, %s6213_s24  }
  0x20   : > { %6151 = sst [smem:[#allocation46_spill]] %s4908_s26  ;;  %s494_s29 = sshll.u32 %s4914_s28, 4  ;;  %s495_s29 = int_to_ptr.vmem [resolvable:$true] %s494_s29 }
  0x21   : > { %s5057_s0 = sadd.s32 4294967295, %s4912_s27   ;;  %p3298_p0 = scmp.ge.s32.totalorder %s4912_s27, 1 }
  0x22   : > { %6152 = sst [smem:[#allocation47_spill]] %s5057_s0  ;;  %p6098_p1 = scmp.eq.s32.totalorder %s5057_s0, 0 }
  0x23   : > { %p468_p2 = scmp.lt.s32.totalorder %s4912_s27, 5  ;;  %s4915_s18 = smov [#allocation13]  }
  0x24   : > { %s516_s19 = sshll.u32 %s4915_s18, 4  ;;  %s4916_s20 = smov [#allocation16]   ;;  %s5069_s19 = int_to_ptr.vmem [resolvable:$true] %s516_s19 }
  0x25   : > { %p5063_p4 = pnand %p3298_p0, %p468_p2  ;;  %s539_s21 = sshll.u32 %s4916_s20, 4  ;;  %s5077_s21 = int_to_ptr.vmem [resolvable:$true] %s539_s21 }
  0x26   : > { %s6156_s28 = sld [smem:[#allocation53_spill]] }
  0x27   : > { %s6153_s30 = scalar_select %p5063_p4, 1, 0 }
  0x28   : > { %p4172_p5 = pneg %p5063_p4 }
  0x29   : > { %6154 = sst [smem:[#allocation48_spill]] %s6153_s30 }
  0x2a   : > { %p5073_p6 = pnand %p4172_p5, %p6098_p1 }
  0x2c   : > { %s6155_s1 = scalar_select %p5073_p6, 1, 0 }
  0x2d   : > { %s4324_s17 = scalar_lea.hbm %s6156_s28, 32  ;;  %p5087_p8 = pneg %p5073_p6 }
  0x2e   : > { %p4325_p7 = scmp.ne.s32.totalorder %s6156_s28, %s4324_s17  ;;  %p4331_p11 = scmp.lt.u32.totalorder %s4324_s17, %s6156_s28 }
  0x2f   : > { %s6157_s18 = scalar_select %p5087_p8, 1, 0 }
  0x30   : > { %p4327_p9 = pnand %p5087_p8, %p4325_p7 }
  0x32   : > { %p4328_p10 = pneg %p4327_p9 }
  0x34   : > { %p4333_p12 = pnand %p4331_p11, %p4328_p10 }
  0x36   : > { %4336 = shalt.err (!%p4333_p12)
}
  0x37   : > { %s4337_s22 = scalar_lea.vmem %s495_s29, 32  ;;  %p4345_p5 = scmp.lt.s32.totalorder %s495_s29, %s495_s29 }
  0x38   : > { %p4338_p13 = scmp.ne.s32.totalorder %s495_s29, %s4337_s22  ;;  %p4346_p3 = scmp.lt.s32.totalorder %s4337_s22, %s4337_s22 }
  0x3a   : > { %p4340_p0 = pnand %p4338_p13, %p5087_p8  ;;  %p4347_p1 = por %p4346_p3, %p4345_p5 }
  0x3c   : > { %p4341_p2 = pneg %p4340_p0 }
  0x3e   : > { %p4348_p4 = pnand %p4347_p1, %p4341_p2 }
  0x40   : > { %4351 = shalt.err (!%p4348_p4)
}
  0x41   : > { %4178 = dma.hbm_to_vmem [thread:$0]  (!%p5073_p6), %s6156_s28, 32, %s495_s29, [#allocation11]  }
  0x42   : > { %s6158_s3 = sld [smem:[#allocation55_spill]] }
  0x48   : > { %s4352_s23 = scalar_lea.hbm %s6158_s3, 32 }
  0x49   : > { %p4353_p7 = scmp.ne.s32.totalorder %s6158_s3, %s4352_s23  ;;  %p4359_p1 = scmp.lt.u32.totalorder %s4352_s23, %s6158_s3 }
  0x4b   : > { %p4355_p9 = pnand %p4353_p7, %p5087_p8 }
  0x4d   : > { %p4356_p3 = pneg %p4355_p9 }
  0x4f   : > { %p4361_p4 = pnand %p4359_p1, %p4356_p3 }
  0x51   : > { %4364 = shalt.err (!%p4361_p4)
}
  0x52   : > { %s4365_s29 = scalar_lea.vmem %s5069_s19, 32  ;;  %p4373_p13 = scmp.lt.s32.totalorder %s5069_s19, %s5069_s19 }
  0x53   : > { %p4366_p10 = scmp.ne.s32.totalorder %s5069_s19, %s4365_s29  ;;  %p4374_p0 = scmp.lt.s32.totalorder %s4365_s29, %s4365_s29 }
  0x55   : > { %p4368_p11 = pnand %p4366_p10, %p5087_p8  ;;  %p4375_p2 = por %p4374_p0, %p4373_p13 }
  0x57   : > { %p4369_p12 = pneg %p4368_p11 }
  0x59   : > { %p4376_p5 = pnand %p4375_p2, %p4369_p12 }
  0x5b   : > { %4379 = shalt.err (!%p4376_p5)
}
  0x5c   : > { %4184 = dma.hbm_to_vmem [thread:$0]  (!%p5073_p6), %s6158_s3, 32, %s5069_s19, [#allocation14]  }
  0x5d   : > { %s6159_s5 = sld [smem:[#allocation56_spill]] }
  0x63   : > { %s4380_s14 = scalar_lea.hbm %s6159_s5, 2048 }
  0x64   : > { %p4381_p7 = scmp.ne.s32.totalorder %s6159_s5, %s4380_s14  ;;  %p4387_p1 = scmp.lt.u32.totalorder %s4380_s14, %s6159_s5 }
  0x66   : > { %p4383_p9 = pnand %p4381_p7, %p5087_p8 }
  0x68   : > { %p4384_p3 = pneg %p4383_p9 }
  0x6a   : > { %p4389_p4 = pnand %p4387_p1, %p4384_p3 }
  0x6c   : > { %4392 = shalt.err (!%p4389_p4)
}
  0x6d   : > { %s4393_s19 = scalar_lea.vmem %s5077_s21, 2048  ;;  %p4401_p13 = scmp.lt.s32.totalorder %s5077_s21, %s5077_s21 }
  0x6e   : > { %p4394_p10 = scmp.ne.s32.totalorder %s5077_s21, %s4393_s19  ;;  %p4402_p0 = scmp.lt.s32.totalorder %s4393_s19, %s4393_s19 }
  0x70   : > { %p4396_p11 = pnand %p4394_p10, %p5087_p8  ;;  %p4403_p2 = por %p4402_p0, %p4401_p13 }
  0x72   : > { %p4397_p12 = pneg %p4396_p11 }
  0x74   : > { %p4404_p5 = pnand %p4403_p2, %p4397_p12 }
  0x76   : > { %4407 = shalt.err (!%p4404_p5)
}
  0x77   : > { %s6103_s29 = smov 128   ;;  %s6105_s10 = smov 8  }
  0x78   : > { %4190 = dma.hbm_to_vmem [thread:$0]  (!%p5073_p6), %s6159_s5, 2048, %s5077_s21, [#allocation17], %s6103_s29, %s6103_s29, %s6105_s10  }
  0x79   : > { %s4919_s30 = smov [#allocation19]   ;;  %s6160_s7 = sld [smem:[#allocation57_spill]] }
  0x7a   : > { %s566_s14 = sshll.u32 %s4919_s30, 4  ;;  %s567_s14 = int_to_ptr.vmem [resolvable:$true] %s566_s14 }
  0x7f   : > { %s4408_s20 = scalar_lea.hbm %s6160_s7, 16 }
  0x80   : > { %p4409_p7 = scmp.ne.s32.totalorder %s6160_s7, %s4408_s20  ;;  %p4415_p1 = scmp.lt.u32.totalorder %s4408_s20, %s6160_s7 }
  0x82   : > { %p4411_p9 = pnand %p4409_p7, %p5087_p8 }
  0x84   : > { %p4412_p3 = pneg %p4411_p9 }
  0x86   : > { %p4417_p4 = pnand %p4415_p1, %p4412_p3 }
  0x88   : > { %4420 = shalt.err (!%p4417_p4)
}
  0x89   : > { %s4421_s21 = scalar_lea.vmem %s567_s14, 16  ;;  %s4428_s12 = scalar_lea.vmem %s567_s14, 32 }
  0x8a   : > { %p4422_p10 = scmp.ne.s32.totalorder %s567_s14, %s4421_s21  ;;  %p4429_p13 = scmp.lt.s32.totalorder %s567_s14, %s567_s14 }
  0x8b   : > { %p4430_p0 = scmp.lt.s32.totalorder %s4428_s12, %s4421_s21 }
  0x8c   : > { %p4424_p11 = pnand %p4422_p10, %p5087_p8 }
  0x8d   : > { %p4431_p2 = por %p4430_p0, %p4429_p13 }
  0x8e   : > { %p4425_p12 = pneg %p4424_p11 }
  0x90   : > { %p4432_p5 = pnand %p4431_p2, %p4425_p12 }
  0x92   : > { %4435 = shalt.err (!%p4432_p5)
}
  0x93   : > { %4196 = dma.hbm_to_vmem [thread:$0]  (!%p5073_p6), %s6160_s7, 16, %s567_s14, [#allocation20]  }
  0x94   : > { %s5171_s3 = sadd.s32 1, %s4912_s27   ;;  %s241_s28 = sadd.s32 1, %s4908_s26 }
  0x95   : > { %6161 = sst [smem:[#allocation49_spill]] %s5171_s3  ;;  %s238_s17 = ssub.s32 %s4912_s27, %s5171_s3 }
  0x96   : > { %p248_p7 = scmp.ne.s32.totalorder %s4908_s26, %s4904_s25  ;;  %p239_p9 = scmp.eq.s32.totalorder %s238_s17, 0 }
  0x97   : > { %p249_p3 = scmp.eq.s32.totalorder %s4912_s27, 0  ;;  %p254_p1 = scmp.ne.s32.totalorder %s4904_s25, %s4900_s24 }
  0x98   : > { %p4234_p4 = scmp.lt.s32.totalorder %s4912_s27, 4  ;;  %p6163_p11 = scmp.eq.s32.totalorder %s5057_s0, 0 }
  0x99   : > { %s5183_s23 = scalar_select %p239_p9, %s4908_s26, %s241_s28  }
  0x9a   : > { %p250_p10 = por %p249_p3, %p248_p7  ;;  %p5187_p12 = por %p6163_p11, %p254_p1 }
  0x9b   : > { %6162 = sst [smem:[#allocation50_spill]] %s5183_s23  ;;  %s5192_s22 = sand.u32 1, %s4912_s27  }
  0x9c   : > { %s6164_s20 = scalar_select %p5187_p12, 1, 0 }
  0x9d   : > { %s5195_s14 = sand.u32 1, %s4908_s26   ;;  %s5201_s24 = sshll.u32 %s4912_s27, 11 }
  0x9e   : > { %6165 = sst [smem:[#allocation51_spill]] %s6164_s20  ;;  %s5198_s19 = sshll.u32 %s5195_s14, 7 }
  0x9f   : > { %s6166_s9 = sld [smem:[#allocation58_spill]]  ;;  %s594_s30 = scalar_lea.vmem [#allocation22], %s5198_s19 }
  0xa0   : > { %s601_s28 = sshll.u32 %s594_s30, 4  ;;  %p5212_p13 = pnand %p4234_p4, %p250_p10  ;;  %s5210_s28 = int_to_ptr.vmem [resolvable:$true] %s601_s28 }
  0xa1   : > { %s5217_s29 = sshll.u32 %s5195_s14, 8 }
  0xa2   : > { %s6167_s17 = scalar_select %p5212_p13, 1, 0 }
  0xa3   : > { %p5224_p2 = pneg %p5212_p13 }
  0xa5   : > { %s5207_s16 = scalar_lea.hbm %s6166_s9, %s5201_s24  ;;  %s4441_s7 = scalar_lea.hbm %s6166_s9, 8192 }
  0xa6   : > { %s4436_s5 = scalar_lea.hbm %s5207_s16, 2048  ;;  %p4442_p9 = scmp.lt.u32.totalorder %s5207_s16, %s6166_s9 }
  0xa7   : > { %p4437_p0 = scmp.ne.s32.totalorder %s5207_s16, %s4436_s5  ;;  %p4443_p3 = scmp.lt.u32.totalorder %s4441_s7, %s4436_s5 }
  0xa8   : > { %s6168_s21 = scalar_select %p5224_p2, 1, 0 }
  0xa9   : > { %p4439_p5 = pnand %p5224_p2, %p4437_p0  ;;  %p4444_p1 = por %p4443_p3, %p4442_p9 }
  0xaa   : > { %p4445_p4 = scmp.lt.u32.totalorder %s4436_s5, %s5207_s16 }
  0xab   : > { %p4440_p7 = pneg %p4439_p5 }
  0xac   : > { %p4446_p10 = por %p4445_p4, %p4444_p1 }
  0xae   : > { %p4447_p11 = pnand %p4446_p10, %p4440_p7 }
  0xb0   : > { %4450 = shalt.err (!%p4447_p11)
}
  0xb1   : > { %s4451_s10 = scalar_lea.vmem %s5210_s28, 2048  ;;  %s4920_s12 = smov [#allocation22]  }
  0xb2   : > { %p4452_p0 = scmp.ne.s32.totalorder %s5210_s28, %s4451_s10  ;;  %s4456_s30 = sshll.u32 %s4920_s12, 4  ;;  %s4457_s30 = int_to_ptr.vmem [resolvable:$false] %s4456_s30 }
  0xb3   : > { %s4458_s26 = scalar_lea.vmem %s4457_s30, 4096  ;;  %p4459_p6 = scmp.lt.s32.totalorder %s5210_s28, %s4457_s30 }
  0xb4   : > { %p4454_p5 = pnand %p4452_p0, %p5224_p2  ;;  %p4460_p8 = scmp.lt.s32.totalorder %s4458_s26, %s4451_s10 }
  0xb6   : > { %p4455_p12 = pneg %p4454_p5  ;;  %p4461_p9 = por %p4460_p8, %p4459_p6 }
  0xb8   : > { %p4462_p3 = pnand %p4461_p9, %p4455_p12 }
  0xba   : > { %4465 = shalt.err (!%p4462_p3)
}
  0xbb   : > { %s6169_s5 = smov 8   ;;  %s6170_s7 = smov 128  }
  0xbc   : > { %s6171_s23 = scalar_lea.sflag [#allocation23], %s5192_s22  ;;  %s5253_s12 = sshll.u32 %s4912_s27, 12 }
  0xbd   : > { %4203 = dma.hbm_to_vmem [thread:$0]  (!%p5212_p13), %s5207_s16, 2048, %s5210_s28, %s6171_s23, %s6170_s7, %s6170_s7, %s6169_s5  }
  0xbe   : > { %s6172_s11 = sld [smem:[#allocation60_spill]]  ;;  %s636_s9 = scalar_lea.vmem [#allocation25], %s5217_s29 }
  0xbf   : > { %s643_s3 = sshll.u32 %s636_s9, 4  ;;  %s6122_s20 = scalar_lea.sflag [#allocation26], %s5192_s22  ;;  %s5262_s3 = int_to_ptr.vmem [resolvable:$true] %s643_s3 }
  0xc4   : > { %s5259_s26 = scalar_lea.hbm %s6172_s11, %s5253_s12  ;;  %s4471_s23 = scalar_lea.hbm %s6172_s11, 16384 }
  0xc5   : > { %s4466_s25 = scalar_lea.hbm %s5259_s26, 4096  ;;  %p4472_p7 = scmp.lt.u32.totalorder %s5259_s26, %s6172_s11 }
  0xc6   : > { %p4467_p6 = scmp.ne.s32.totalorder %s5259_s26, %s4466_s25  ;;  %p4473_p1 = scmp.lt.u32.totalorder %s4471_s23, %s4466_s25 }
  0xc7   : > { %p4475_p10 = scmp.lt.u32.totalorder %s4466_s25, %s5259_s26 }
  0xc8   : > { %p4469_p8 = pnand %p4467_p6, %p5224_p2  ;;  %p4474_p4 = por %p4473_p1, %p4472_p7 }
  0xca   : > { %p4470_p12 = pneg %p4469_p8  ;;  %p4476_p11 = por %p4475_p10, %p4474_p4 }
  0xcc   : > { %p4477_p0 = pnand %p4476_p11, %p4470_p12 }
  0xce   : > { %4480 = shalt.err (!%p4477_p0)
}
  0xcf   : > { %s4481_s9 = scalar_lea.vmem %s5262_s3, 4096  ;;  %s4921_s16 = smov [#allocation25]  }
  0xd0   : > { %p4482_p5 = scmp.ne.s32.totalorder %s5262_s3, %s4481_s9  ;;  %s4486_s28 = sshll.u32 %s4921_s16, 4  ;;  %s4487_s28 = int_to_ptr.vmem [resolvable:$false] %s4486_s28 }
  0xd1   : > { %s4488_s10 = scalar_lea.vmem %s4487_s28, 8192  ;;  %p4489_p6 = scmp.lt.s32.totalorder %s5262_s3, %s4487_s28 }
  0xd2   : > { %p4484_p9 = pnand %p4482_p5, %p5224_p2  ;;  %p4490_p8 = scmp.lt.s32.totalorder %s4488_s10, %s4481_s9 }
  0xd4   : > { %p4485_p3 = pneg %p4484_p9  ;;  %p4491_p7 = por %p4490_p8, %p4489_p6 }
  0xd6   : > { %p4492_p1 = pnand %p4491_p7, %p4485_p3 }
  0xd8   : > { %4495 = shalt.err (!%p4492_p1)
}
  0xd9   : > { %s6123_s25 = smov 256   ;;  %s6125_s23 = smov 16  }
  0xda   : > { %4209 = dma.hbm_to_vmem [thread:$0]  (!%p5212_p13), %s5259_s26, 4096, %s5262_s3, %s6122_s20, %s6123_s25, %s6123_s25, %s6125_s23  }
  0xdb   : > { %s6173_s13 = sld [smem:[#allocation62_spill]]  ;;  %s678_s28 = scalar_lea.vmem [#allocation28], %s5198_s19 }
  0xdc   : > { %s685_s10 = sshll.u32 %s678_s28, 4  ;;  %s6127_s11 = scalar_lea.sflag [#allocation29], %s5192_s22  ;;  %s5298_s10 = int_to_ptr.vmem [resolvable:$true] %s685_s10 }
  0xe1   : > { %s5295_s16 = scalar_lea.hbm %s6173_s13, %s5201_s24  ;;  %s4501_s30 = scalar_lea.hbm %s6173_s13, 8192 }
  0xe2   : > { %s4496_s0 = scalar_lea.hbm %s5295_s16, 2048  ;;  %p4502_p11 = scmp.lt.u32.totalorder %s5295_s16, %s6173_s13 }
  0xe3   : > { %p4497_p12 = scmp.ne.s32.totalorder %s5295_s16, %s4496_s0  ;;  %p4503_p0 = scmp.lt.u32.totalorder %s4501_s30, %s4496_s0 }
  0xe4   : > { %p4505_p9 = scmp.lt.u32.totalorder %s4496_s0, %s5295_s16 }
  0xe5   : > { %p4499_p4 = pnand %p4497_p12, %p5224_p2  ;;  %p4504_p5 = por %p4503_p0, %p4502_p11 }
  0xe7   : > { %p4500_p10 = pneg %p4499_p4  ;;  %p4506_p3 = por %p4505_p9, %p4504_p5 }
  0xe9   : > { %p4507_p6 = pnand %p4506_p3, %p4500_p10 }
  0xeb   : > { %4510 = shalt.err (!%p4507_p6)
}
  0xec   : > { %s4511_s28 = scalar_lea.vmem %s5298_s10, 2048  ;;  %s4924_s3 = smov [#allocation28]  }
  0xed   : > { %p4512_p8 = scmp.ne.s32.totalorder %s5298_s10, %s4511_s28  ;;  %s4516_s26 = sshll.u32 %s4924_s3, 4  ;;  %s4517_s26 = int_to_ptr.vmem [resolvable:$false] %s4516_s26 }
  0xee   : > { %s4518_s20 = scalar_lea.vmem %s4517_s26, 4096  ;;  %p4519_p12 = scmp.lt.s32.totalorder %s5298_s10, %s4517_s26 }
  0xef   : > { %p4514_p7 = pnand %p4512_p8, %p5224_p2  ;;  %p4520_p4 = scmp.lt.s32.totalorder %s4518_s20, %s4511_s28 }
  0xf1   : > { %p4515_p1 = pneg %p4514_p7  ;;  %p4521_p11 = por %p4520_p4, %p4519_p12 }
  0xf3   : > { %p4522_p0 = pnand %p4521_p11, %p4515_p1 }
  0xf5   : > { %4525 = shalt.err (!%p4522_p0)
}
  0xf6   : > { %4215 = dma.hbm_to_vmem [thread:$0]  (!%p5212_p13), %s5295_s16, 2048, %s5298_s10, %s6127_s11, %s6170_s7, %s6170_s7, %s6169_s5  }
  0xf7   : > { %s6174_s15 = sld [smem:[#allocation64_spill]]  ;;  %s720_s28 = scalar_lea.vmem [#allocation31], %s5217_s29 }
  0xf8   : > { %s727_s3 = sshll.u32 %s720_s28, 4  ;;  %s4925_s26 = smov [#allocation7]   ;;  %s5334_s3 = int_to_ptr.vmem [resolvable:$true] %s727_s3 }
  0xf9   : > { %s5336_s20 = sshll.u32 %s4925_s26, 4  ;;  %s6130_s25 = scalar_lea.sflag [#allocation32], %s5192_s22  ;;  %s481_s20 = int_to_ptr.vmem [resolvable:$true] %s5336_s20 }
  0xfd   : > { %s5331_s9 = scalar_lea.hbm %s6174_s15, %s5253_s12  ;;  %s4531_s0 = scalar_lea.hbm %s6174_s15, 16384 }
  0xfe   : > { %s4526_s23 = scalar_lea.hbm %s5331_s9, 4096  ;;  %p4532_p3 = scmp.lt.u32.totalorder %s5331_s9, %s6174_s15 }
  0xff   : > { %p4527_p10 = scmp.ne.s32.totalorder %s5331_s9, %s4526_s23  ;;  %p4533_p6 = scmp.lt.u32.totalorder %s4531_s0, %s4526_s23 }
 0x100   : > { %p4535_p7 = scmp.lt.u32.totalorder %s4526_s23, %s5331_s9 }
 0x101   : > { %p4529_p5 = pnand %p4527_p10, %p5224_p2  ;;  %p4534_p8 = por %p4533_p6, %p4532_p3 }
 0x103   : > { %p4530_p9 = pneg %p4529_p5  ;;  %p4536_p1 = por %p4535_p7, %p4534_p8 }
 0x105   : > { %p4537_p12 = pnand %p4536_p1, %p4530_p9 }
 0x107   : > { %4540 = shalt.err (!%p4537_p12)
}
 0x108   : > { %s4541_s28 = scalar_lea.vmem %s5334_s3, 4096  ;;  %s4926_s26 = smov [#allocation31]  }
 0x109   : > { %p4542_p4 = scmp.ne.s32.totalorder %s5334_s3, %s4541_s28  ;;  %s4546_s16 = sshll.u32 %s4926_s26, 4  ;;  %s4547_s16 = int_to_ptr.vmem [resolvable:$false] %s4546_s16 }
 0x10a   : > { %s4548_s11 = scalar_lea.vmem %s4547_s16, 8192  ;;  %p4549_p10 = scmp.lt.s32.totalorder %s5334_s3, %s4547_s16 }
 0x10b   : > { %p4544_p11 = pnand %p4542_p4, %p5224_p2  ;;  %p4550_p5 = scmp.lt.s32.totalorder %s4548_s11, %s4541_s28 }
 0x10d   : > { %p4545_p0 = pneg %p4544_p11  ;;  %p4551_p3 = por %p4550_p5, %p4549_p10 }
 0x10f   : > { %p4552_p6 = pnand %p4551_p3, %p4545_p0 }
 0x111   : > { %4555 = shalt.err (!%p4552_p6)
}
 0x112   : > { %4221 = dma.hbm_to_vmem [thread:$0]  (!%p5212_p13), %s5331_s9, 4096, %s5334_s3, %s6130_s25, %s6170_s7, %s6170_s7, %s6169_s5  }
 0x113   : > { %s6175_s0 = sld [smem:[#allocation52_spill]]  ;;  %p6176_p8 = scmp.ne.s32.totalorder %s6157_s18, 0 }
 0x119   : > { %s4556_s30 = scalar_lea.hbm %s6175_s0, 256 }
 0x11a   : > { %p4557_p9 = scmp.ne.s32.totalorder %s6175_s0, %s4556_s30  ;;  %p4563_p12 = scmp.lt.u32.totalorder %s4556_s30, %s6175_s0 }
 0x11c   : > { %p4559_p7 = pnand %p4557_p9, %p6176_p8 }
 0x11e   : > { %p4560_p1 = pneg %p4559_p7 }
 0x120   : > { %p4565_p4 = pnand %p4563_p12, %p4560_p1 }
 0x122   : > { %4568 = shalt.err (!%p4565_p4)
}
 0x123   : > { %s4569_s13 = scalar_lea.vmem %s481_s20, 256  ;;  %p4577_p5 = scmp.lt.s32.totalorder %s481_s20, %s481_s20 }
 0x124   : > { %p4570_p11 = scmp.ne.s32.totalorder %s481_s20, %s4569_s13  ;;  %p4578_p3 = scmp.lt.s32.totalorder %s4569_s13, %s4569_s13 }
 0x126   : > { %p4572_p0 = pnand %p4570_p11, %p6176_p8  ;;  %p4579_p6 = por %p4578_p3, %p4577_p5 }
 0x128   : > { %p4573_p10 = pneg %p4572_p0 }
 0x12a   : > { %p4580_p13 = pnand %p4579_p6, %p4573_p10 }
 0x12c   : > { %4583 = shalt.err (!%p4580_p13)
}
 0x12d   : > { %p6177_p9 = scmp.ne.s32.totalorder %s6155_s1, 0  ;;  %s4927_s23 = smov [#allocation12]  }
 0x12e   : > { %s505_s10 = sshll.u32 %s4927_s23, 4  ;;  %s4928_s30 = smov [#allocation15]   ;;  %s506_s10 = int_to_ptr.vmem [resolvable:$true] %s505_s10 }
 0x12f   : > { %4175 = dma.hbm_to_vmem [thread:$0]  (!%p6177_p9), %s6175_s0, 256, %s481_s20, [#allocation8], %s6170_s7, %s6170_s7, %s6169_s5  }
 0x130   : > { %s526_s28 = sshll.u32 %s4928_s30, 4  ;;  %s6178_s2 = sld [smem:[#allocation54_spill]]  ;;  %s527_s28 = int_to_ptr.vmem [resolvable:$true] %s526_s28 }
 0x136   : > { %s4584_s16 = scalar_lea.hbm %s6178_s2, 32 }
 0x137   : > { %p4585_p13 = scmp.ne.s32.totalorder %s6178_s2, %s4584_s16  ;;  %p4591_p12 = scmp.lt.u32.totalorder %s4584_s16, %s6178_s2 }
 0x139   : > { %p4587_p7 = pnand %p4585_p13, %p6176_p8 }
 0x13b   : > { %p4588_p1 = pneg %p4587_p7 }
 0x13d   : > { %p4593_p4 = pnand %p4591_p12, %p4588_p1 }
 0x13f   : > { %4596 = shalt.err (!%p4593_p4)
}
 0x140   : > { %s4597_s20 = scalar_lea.vmem %s506_s10, 32  ;;  %p4605_p5 = scmp.lt.s32.totalorder %s506_s10, %s506_s10 }
 0x141   : > { %p4598_p11 = scmp.ne.s32.totalorder %s506_s10, %s4597_s20  ;;  %p4606_p3 = scmp.lt.s32.totalorder %s4597_s20, %s4597_s20 }
 0x143   : > { %p4600_p0 = pnand %p4598_p11, %p6176_p8  ;;  %p4607_p6 = por %p4606_p3, %p4605_p5 }
 0x145   : > { %p4601_p10 = pneg %p4600_p0 }
 0x147   : > { %p4608_p2 = pnand %p4607_p6, %p4601_p10 }
 0x149   : > { %4611 = shalt.err (!%p4608_p2)
}
 0x14a   : > { %4181 = dma.hbm_to_vmem [thread:$0]  (!%p6177_p9), %s6178_s2, 32, %s506_s10, [#allocation11]  }
 0x14b   : > { %s4612_s30 = scalar_lea.hbm %s6078_s4, 4096 }
 0x14c   : > { %p4613_p13 = scmp.ne.s32.totalorder %s6078_s4, %s4612_s30  ;;  %p4619_p2 = scmp.lt.u32.totalorder %s4612_s30, %s6078_s4 }
 0x14e   : > { %p4615_p7 = pnand %p4613_p13, %p6176_p8 }
 0x150   : > { %p4616_p1 = pneg %p4615_p7 }
 0x152   : > { %p4621_p12 = pnand %p4619_p2, %p4616_p1 }
 0x154   : > { %4624 = shalt.err (!%p4621_p12)
}
 0x155   : > { %s4625_s9 = scalar_lea.vmem %s527_s28, 4096  ;;  %p4633_p10 = scmp.lt.s32.totalorder %s527_s28, %s527_s28 }
 0x156   : > { %p4626_p4 = scmp.ne.s32.totalorder %s527_s28, %s4625_s9  ;;  %p4634_p5 = scmp.lt.s32.totalorder %s4625_s9, %s4625_s9 }
 0x158   : > { %p4628_p11 = pnand %p4626_p4, %p6176_p8  ;;  %p4635_p3 = por %p4634_p5, %p4633_p10 }
 0x15a   : > { %p4629_p0 = pneg %p4628_p11 }
 0x15c   : > { %p4636_p6 = pnand %p4635_p3, %p4629_p0 }
 0x15e   : > { %4639 = shalt.err (!%p4636_p6)
}
 0x15f   : > { %s6179_s10 = smov 16   ;;  %s6180_s20 = smov 256  }
 0x160   : > { %4187 = dma.hbm_to_vmem [thread:$0]  (!%p6177_p9), %s6078_s4, 4096, %s527_s28, [#allocation14], %s6180_s20, %s6180_s20, %s6179_s10  }
 0x161   : > { %s4929_s15 = smov [#allocation18]   ;;  %s4930_s30 = smov [#allocation21]  }
 0x162   : > { %s552_s23 = sshll.u32 %s4929_s15, 4  ;;  %s576_s26 = sshll.u32 %s4930_s30, 4  ;;  %s553_s23 = int_to_ptr.vmem [resolvable:$true] %s552_s23  ;;  %s577_s26 = int_to_ptr.vmem [resolvable:$true] %s576_s26 }
 0x163   : > { %s4640_s11 = scalar_lea.hbm %s6080_s6, 4096 }
 0x164   : > { %p4641_p13 = scmp.ne.s32.totalorder %s6080_s6, %s4640_s11  ;;  %p4647_p2 = scmp.lt.u32.totalorder %s4640_s11, %s6080_s6 }
 0x166   : > { %p4643_p7 = pnand %p4641_p13, %p6176_p8 }
 0x168   : > { %p4644_p1 = pneg %p4643_p7 }
 0x16a   : > { %p4649_p12 = pnand %p4647_p2, %p4644_p1 }
 0x16c   : > { %4652 = shalt.err (!%p4649_p12)
}
 0x16d   : > { %s4653_s28 = scalar_lea.vmem %s553_s23, 4096  ;;  %p4661_p10 = scmp.lt.s32.totalorder %s553_s23, %s553_s23 }
 0x16e   : > { %p4654_p4 = scmp.ne.s32.totalorder %s553_s23, %s4653_s28  ;;  %p4662_p5 = scmp.lt.s32.totalorder %s4653_s28, %s4653_s28 }
 0x170   : > { %p4656_p11 = pnand %p4654_p4, %p6176_p8  ;;  %p4663_p3 = por %p4662_p5, %p4661_p10 }
 0x172   : > { %p4657_p0 = pneg %p4656_p11 }
 0x174   : > { %p4664_p6 = pnand %p4663_p3, %p4657_p0 }
 0x176   : > { %4667 = shalt.err (!%p4664_p6)
}
 0x177   : > { %4193 = dma.hbm_to_vmem [thread:$0]  (!%p6177_p9), %s6080_s6, 4096, %s553_s23, [#allocation17], %s6170_s7, %s6170_s7, %s6169_s5  }
 0x178   : > { %s4668_s30 = scalar_lea.hbm %s6082_s8, 2048 }
 0x179   : > { %p4669_p13 = scmp.ne.s32.totalorder %s6082_s8, %s4668_s30  ;;  %p4675_p2 = scmp.lt.u32.totalorder %s4668_s30, %s6082_s8 }
 0x17b   : > { %p4671_p7 = pnand %p4669_p13, %p6176_p8 }
 0x17d   : > { %p4672_p1 = pneg %p4671_p7 }
 0x17f   : > { %p4677_p12 = pnand %p4675_p2, %p4672_p1 }
 0x181   : > { %4680 = shalt.err (!%p4677_p12)
}
 0x182   : > { %s4681_s25 = scalar_lea.vmem %s577_s26, 2048  ;;  %p4689_p10 = scmp.lt.s32.totalorder %s577_s26, %s577_s26 }
 0x183   : > { %p4682_p4 = scmp.ne.s32.totalorder %s577_s26, %s4681_s25  ;;  %p4690_p5 = scmp.lt.s32.totalorder %s4681_s25, %s4681_s25 }
 0x185   : > { %p4684_p11 = pnand %p4682_p4, %p6176_p8  ;;  %p4691_p3 = por %p4690_p5, %p4689_p10 }
 0x187   : > { %p4685_p0 = pneg %p4684_p11 }
 0x189   : > { %p4692_p6 = pnand %p4691_p3, %p4685_p0 }
 0x18b   : > { %4695 = shalt.err (!%p4692_p6)
}
 0x18c   : > { %4199 = dma.hbm_to_vmem [thread:$0]  (!%p6177_p9), %s6082_s8, 2048, %s577_s26, [#allocation20], %s6170_s7, %s6170_s7, %s6169_s5  }
 0x18d   : > { %s6181_s0 = sld [smem:[#allocation59_spill]]  ;;  %s615_s1 = scalar_lea.vmem [#allocation24], %s5217_s29 }
 0x18e   : > { %s622_s15 = sshll.u32 %s615_s1, 4  ;;  %p6182_p13 = scmp.ne.s32.totalorder %s6168_s21, 0  ;;  %s5475_s15 = int_to_ptr.vmem [resolvable:$true] %s622_s15 }
 0x193   : > { %s5472_s3 = scalar_lea.hbm %s6181_s0, %s5253_s12  ;;  %s4701_s16 = scalar_lea.hbm %s6181_s0, 16384 }
 0x194   : > { %s4696_s30 = scalar_lea.hbm %s5472_s3, 4096  ;;  %p4702_p9 = scmp.lt.u32.totalorder %s5472_s3, %s6181_s0 }
 0x195   : > { %p4697_p8 = scmp.ne.s32.totalorder %s5472_s3, %s4696_s30  ;;  %p4703_p2 = scmp.lt.u32.totalorder %s4701_s16, %s4696_s30 }
 0x196   : > { %p4705_p4 = scmp.lt.u32.totalorder %s4696_s30, %s5472_s3 }
 0x197   : > { %p4699_p7 = pnand %p4697_p8, %p6182_p13  ;;  %p4704_p12 = por %p4703_p2, %p4702_p9 }
 0x199   : > { %p4700_p1 = pneg %p4699_p7  ;;  %p4706_p11 = por %p4705_p4, %p4704_p12 }
 0x19b   : > { %p4707_p0 = pnand %p4706_p11, %p4700_p1 }
 0x19d   : > { %4710 = shalt.err (!%p4707_p0)
}
 0x19e   : > { %s4711_s25 = scalar_lea.vmem %s5475_s15, 4096  ;;  %s4931_s23 = smov [#allocation24]  }
 0x19f   : > { %p4712_p10 = scmp.ne.s32.totalorder %s5475_s15, %s4711_s25  ;;  %s4716_s28 = sshll.u32 %s4931_s23, 4  ;;  %s4717_s28 = int_to_ptr.vmem [resolvable:$false] %s4716_s28 }
 0x1a0   : > { %s4718_s18 = scalar_lea.vmem %s4717_s28, 8192  ;;  %p4719_p6 = scmp.lt.s32.totalorder %s5475_s15, %s4717_s28 }
 0x1a1   : > { %p4714_p5 = pnand %p4712_p10, %p6182_p13  ;;  %p4720_p8 = scmp.lt.s32.totalorder %s4718_s18, %s4711_s25 }
 0x1a3   : > { %p4715_p3 = pneg %p4714_p5  ;;  %p4721_p7 = por %p4720_p8, %p4719_p6 }
 0x1a5   : > { %p4722_p9 = pnand %p4721_p7, %p4715_p3 }
 0x1a7   : > { %4725 = shalt.err (!%p4722_p9)
}
 0x1a8   : > { %p6183_p1 = scmp.ne.s32.totalorder %s6167_s17, 0  ;;  %s6184_s2 = scalar_lea.sflag [#allocation23], %s5192_s22 }
 0x1a9   : > { %s6185_s13 = sld [smem:[#allocation61_spill]]  ;;  %s657_s16 = scalar_lea.vmem [#allocation27], %s5217_s29 }
 0x1aa   : > { %4206 = dma.hbm_to_vmem [thread:$0]  (!%p6183_p1), %s5472_s3, 4096, %s5475_s15, %s6184_s2, %s6170_s7, %s6170_s7, %s6169_s5  }
 0x1ab   : > { %s664_s11 = sshll.u32 %s657_s16, 4  ;;  %s5510_s11 = int_to_ptr.vmem [resolvable:$true] %s664_s11 }
 0x1af   : > { %s5507_s26 = scalar_lea.hbm %s6185_s13, %s5253_s12  ;;  %s4731_s15 = scalar_lea.hbm %s6185_s13, 16384 }
 0x1b0   : > { %s4726_s9 = scalar_lea.hbm %s5507_s26, 4096  ;;  %p4732_p11 = scmp.lt.u32.totalorder %s5507_s26, %s6185_s13 }
 0x1b1   : > { %p4727_p2 = scmp.ne.s32.totalorder %s5507_s26, %s4726_s9  ;;  %p4733_p0 = scmp.lt.u32.totalorder %s4731_s15, %s4726_s9 }
 0x1b2   : > { %p4735_p5 = scmp.lt.u32.totalorder %s4726_s9, %s5507_s26 }
 0x1b3   : > { %p4729_p12 = pnand %p4727_p2, %p6182_p13  ;;  %p4734_p10 = por %p4733_p0, %p4732_p11 }
 0x1b5   : > { %p4730_p4 = pneg %p4729_p12  ;;  %p4736_p3 = por %p4735_p5, %p4734_p10 }
 0x1b7   : > { %p4737_p6 = pnand %p4736_p3, %p4730_p4 }
 0x1b9   : > { %4740 = shalt.err (!%p4737_p6)
}
 0x1ba   : > { %s4741_s29 = scalar_lea.vmem %s5510_s11, 4096  ;;  %s4932_s28 = smov [#allocation27]  }
 0x1bb   : > { %p4742_p8 = scmp.ne.s32.totalorder %s5510_s11, %s4741_s29  ;;  %s4746_s18 = sshll.u32 %s4932_s28, 4  ;;  %s4747_s18 = int_to_ptr.vmem [resolvable:$false] %s4746_s18 }
 0x1bc   : > { %s4748_s2 = scalar_lea.vmem %s4747_s18, 8192  ;;  %p4749_p2 = scmp.lt.s32.totalorder %s5510_s11, %s4747_s18 }
 0x1bd   : > { %p4744_p7 = pnand %p4742_p8, %p6182_p13  ;;  %p4750_p12 = scmp.lt.s32.totalorder %s4748_s2, %s4741_s29 }
 0x1bf   : > { %p4745_p9 = pneg %p4744_p7  ;;  %p4751_p11 = por %p4750_p12, %p4749_p2 }
 0x1c1   : > { %p4752_p0 = pnand %p4751_p11, %p4745_p9 }
 0x1c3   : > { %4755 = shalt.err (!%p4752_p0)
}
 0x1c4   : > { %s6186_s1 = scalar_lea.sflag [#allocation26], %s5192_s22  ;;  %s6187_s9 = sld [smem:[#allocation63_spill]] }
 0x1c5   : > { %4212 = dma.hbm_to_vmem [thread:$0]  (!%p6183_p1), %s5507_s26, 4096, %s5510_s11, %s6186_s1, %s6180_s20, %s6180_s20, %s6179_s10  }
 0x1c6   : > { %s699_s3 = scalar_lea.vmem [#allocation30], %s5198_s19  ;;  %s3330_s23 = sshll.u32 %s5195_s14, 3 }
 0x1c7   : > { %s706_s15 = sshll.u32 %s699_s3, 4  ;;  %s5545_s15 = int_to_ptr.vmem [resolvable:$true] %s706_s15 }
 0x1ca   : > { %s5542_s25 = scalar_lea.hbm %s6187_s9, %s5201_s24  ;;  %s4761_s26 = scalar_lea.hbm %s6187_s9, 8192 }
 0x1cb   : > { %s4756_s12 = scalar_lea.hbm %s5542_s25, 2048  ;;  %p4762_p3 = scmp.lt.u32.totalorder %s5542_s25, %s6187_s9 }
 0x1cc   : > { %p4757_p4 = scmp.ne.s32.totalorder %s5542_s25, %s4756_s12  ;;  %p4763_p6 = scmp.lt.u32.totalorder %s4761_s26, %s4756_s12 }
 0x1cd   : > { %p4765_p7 = scmp.lt.u32.totalorder %s4756_s12, %s5542_s25 }
 0x1ce   : > { %p4759_p10 = pnand %p4757_p4, %p6182_p13  ;;  %p4764_p8 = por %p4763_p6, %p4762_p3 }
 0x1d0   : > { %p4760_p5 = pneg %p4759_p10  ;;  %p4766_p9 = por %p4765_p7, %p4764_p8 }
 0x1d2   : > { %p4767_p2 = pnand %p4766_p9, %p4760_p5 }
 0x1d4   : > { %4770 = shalt.err (!%p4767_p2)
}
 0x1d5   : > { %s4771_s19 = scalar_lea.vmem %s5545_s15, 2048  ;;  %s4933_s29 = smov [#allocation30]  }
 0x1d6   : > { %p4772_p12 = scmp.ne.s32.totalorder %s5545_s15, %s4771_s19  ;;  %s4776_s28 = sshll.u32 %s4933_s29, 4  ;;  %s4777_s28 = int_to_ptr.vmem [resolvable:$false] %s4776_s28 }
 0x1d7   : > { %s4778_s18 = scalar_lea.vmem %s4777_s28, 4096  ;;  %p4779_p4 = scmp.lt.s32.totalorder %s5545_s15, %s4777_s28 }
 0x1d8   : > { %p4774_p11 = pnand %p4772_p12, %p6182_p13  ;;  %p4780_p10 = scmp.lt.s32.totalorder %s4778_s18, %s4771_s19 }
 0x1da   : > { %p4775_p0 = pneg %p4774_p11  ;;  %p4781_p3 = por %p4780_p10, %p4779_p4 }
 0x1dc   : > { %p4782_p6 = pnand %p4781_p3, %p4775_p0 }
 0x1de   : > { %4785 = shalt.err (!%p4782_p6)
}
 0x1df   : > { %s6188_s2 = scalar_lea.sflag [#allocation29], %s5192_s22  ;;  %s3331_s1 = sshll.u32 %s4912_s27, 7 }
 0x1e0   : > { %4218 = dma.hbm_to_vmem [thread:$0]  (!%p6183_p1), %s5542_s25, 2048, %s5545_s15, %s6188_s2, %s6170_s7, %s6170_s7, %s6169_s5  }
 0x1e1   : > { %s6189_s3 = sld [smem:[#allocation65_spill]]  ;;  %s741_s10 = scalar_lea.vmem [#allocation33], %s3330_s23 }
 0x1e2   : > { %s748_s20 = sshll.u32 %s741_s10, 4  ;;  %s749_s20 = int_to_ptr.vmem [resolvable:$true] %s748_s20 }
 0x1e7   : > { %s5578_s12 = scalar_lea.hbm %s6189_s3, %s3331_s1  ;;  %s4791_s7 = scalar_lea.hbm %s6189_s3, 512 }
 0x1e8   : > { %s4786_s26 = scalar_lea.hbm %s5578_s12, 128  ;;  %p4792_p9 = scmp.lt.u32.totalorder %s5578_s12, %s6189_s3 }
 0x1e9   : > { %p4787_p5 = scmp.ne.s32.totalorder %s5578_s12, %s4786_s26  ;;  %p4793_p2 = scmp.lt.u32.totalorder %s4791_s7, %s4786_s26 }
 0x1ea   : > { %p4795_p11 = scmp.lt.u32.totalorder %s4786_s26, %s5578_s12 }
 0x1eb   : > { %p4789_p8 = pnand %p4787_p5, %p6182_p13  ;;  %p4794_p12 = por %p4793_p2, %p4792_p9 }
 0x1ed   : > { %p4790_p7 = pneg %p4789_p8  ;;  %p4796_p0 = por %p4795_p11, %p4794_p12 }
 0x1ef   : > { %p4797_p4 = pnand %p4796_p0, %p4790_p7 }
 0x1f1   : > { %4800 = shalt.err (!%p4797_p4)
}
 0x1f2   : > { %s4801_s14 = scalar_lea.vmem %s749_s20, 128  ;;  %s4934_s23 = smov [#allocation33]  }
 0x1f3   : > { %p4802_p10 = scmp.ne.s32.totalorder %s749_s20, %s4801_s14  ;;  %s4806_s24 = sshll.u32 %s4934_s23, 4  ;;  %s4807_s24 = int_to_ptr.vmem [resolvable:$false] %s4806_s24 }
 0x1f4   : > { %s4808_s11 = scalar_lea.vmem %s4807_s24, 256  ;;  %p4809_p5 = scmp.lt.s32.totalorder %s749_s20, %s4807_s24 }
 0x1f5   : > { %p4804_p3 = pnand %p4802_p10, %p6182_p13  ;;  %p4810_p8 = scmp.lt.s32.totalorder %s4808_s11, %s4801_s14 }
 0x1f7   : > { %p4805_p6 = pneg %p4804_p3  ;;  %p4811_p1 = por %p4810_p8, %p4809_p5 }
 0x1f9   : > { %p4812_p2 = pnand %p4811_p1, %p4805_p6 }
 0x1fb   : > { %4815 = shalt.err (!%p4812_p2)
}
 0x1fc   : > { %p6190_p9 = scmp.ne.s32.totalorder %s6167_s17, 0  ;;  %s6191_s19 = scalar_lea.sflag [#allocation32], %s5192_s22 }
 0x1fd   : > { %s6192_s29 = sld [smem:[#allocation48_spill]] }
 0x1fe   : > { %4224 = dma.hbm_to_vmem [thread:$0]  (!%p6190_p9), %s5578_s12, 128, %s749_s20, %s6191_s19  }
 0x203   : > { %p6193_p7 = scmp.ne.s32.totalorder %s6192_s29, 0 }
 0x204   : > { %s6194_s21 = sld [smem:[#allocation47_spill]] (!%p6193_p7) }
 0x205   : > { %757 = sbr.rel (%p6193_p7) target bundleno = 3960 (0xf78), region = 88 }
 0x20a   : > { %p6195_p13 = scmp.eq.s32.totalorder (!%p6193_p7), %s6194_s21, 0 }
 0x20c   : > { %4859 = dma.done.wait (%p6195_p13), [#allocation8], 256   ;;  %p6196_p12 = pmov %p6195_p13 }
 0x20e   : > { %4861 = vsyncadd (%p6196_p12), [#allocation8], 4294967040  ;;  %p6197_p11 = pmov %p6196_p12 }
 0x210   : > { %4863 = dma.done.wait (%p6197_p11), [#allocation11], 64   ;;  %p6198_p1 = pmov %p6197_p11 }
 0x212   : > { %4865 = vsyncadd (%p6198_p1), [#allocation11], 4294967232  ;;  %p6199_p0 = pmov %p6198_p1 }
 0x214   : > { %4867 = dma.done.wait (%p6199_p0), [#allocation14], 4128   ;;  %p6200_p4 = pmov %p6199_p0 }
 0x215   : > { %p6201_p10 = pmov %p6199_p0 }
 0x216   : > { %4869 = vsyncadd (%p6200_p4), [#allocation14], 4294963168 }
 0x217   : > { %4871 = dma.done.wait (%p6201_p10), [#allocation17], 6144   ;;  %p6202_p3 = pmov %p6199_p0 }
 0x218   : > { %p6203_p6 = pmov %p6199_p0 }
 0x219   : > { %4873 = vsyncadd (%p6202_p3), [#allocation17], 4294961152 }
 0x21a   : > { %4875 = dma.done.wait (%p6203_p6), [#allocation20], 2064   ;;  %p6204_p5 = pmov %p6199_p0 }
 0x21b   : > { %s6205_s22 = sld [smem:[#allocation45_spill]]  ;;  %s6206_s17 = sld [smem:[#allocation51_spill]] }
 0x21c   : > { %4877 = vsyncadd (%p6204_p5), [#allocation20], 4294965232  ;;  %s795_s28 = sand.u32 1, %s6194_s21  }
 0x21d   : > { %s796_s1 = scalar_lea.sflag [#allocation23], %s795_s28 }
 0x221   : > { %s797_s18 = sand.u32 1, %s6205_s22   ;;  %p6207_p8 = scmp.ne.s32.totalorder %s6206_s17, 0 }
 0x222   : > { %s3342_s2 = sshll.u32 %s797_s18, 7 }
 0x223   : > { %s5625_s30 = scalar_lea.vmem [#allocation22], %s3342_s2 }
 0x224   : > { %4879 = dma.done.wait (%p6207_p8), %s796_s1, 6144  }
 0x225   : > { %4881 = vsyncadd (%p6207_p8), %s796_s1, 4294961152  ;;  %s3343_s16 = sshll.u32 %s797_s18, 8  ;;  %s814_s10 = scalar_lea.sflag [#allocation26], %s795_s28 }
 0x226   : > { %s5631_s12 = scalar_lea.vmem [#allocation24], %s3343_s16  ;;  %s5633_s20 = scalar_lea.vmem [#allocation25], %s3343_s16 }
 0x227   : > { %4883 = dma.done.wait (%p6207_p8), %s814_s10, 8192  }
 0x228   : > { %4885 = vsyncadd (%p6207_p8), %s814_s10, 4294959104  ;;  %s5639_s26 = scalar_lea.vmem [#allocation27], %s3343_s16  ;;  %s832_s5 = scalar_lea.sflag [#allocation29], %s795_s28 }
 0x229   : > { %s5641_s27 = scalar_lea.vmem [#allocation28], %s3342_s2 }
 0x22a   : > { %4887 = dma.done.wait (%p6207_p8), %s832_s5, 4096  }
 0x22b   : > { %4889 = vsyncadd (%p6207_p8), %s832_s5, 4294963200  ;;  %s5647_s7 = scalar_lea.vmem [#allocation30], %s3342_s2  ;;  %s850_s25 = scalar_lea.sflag [#allocation32], %s795_s28 }
 0x22c   : > { %s5649_s15 = scalar_lea.vmem [#allocation31], %s3343_s16 }
 0x22d   : > { %4891 = dma.done.wait (%p6207_p8), %s850_s25, 4224  }
 0x22e   : > { %4893 = vsyncadd (%p6207_p8), %s850_s25, 4294963072  ;;  %s3349_s14 = sshll.u32 %s797_s18, 3  ;;  %p6208_p2 = scmp.ne.s32.totalorder %s6194_s21, 0 }
 0x22f   : > { %s5655_s23 = scalar_lea.vmem [#allocation33], %s3349_s14  ;;  %v950_v0 = vld [vmem:[#allocation15 + $0x8] sm:$0xff] (!%p6208_p2)  ;;  %v952_v1 = vld [vmem:[#allocation15 + $0x18] sm:$0xff] (!%p6208_p2)  ;;  %v949_v2 = vld [vmem:[#allocation15] sm:$0xff] (!%p6208_p2)  ;;  %v4935_v7 = vmov (!%p6208_p2), 0.0|0.0   ;;  %v4936_v8 = vmov (!%p6208_p2), 0.0  }
 0x230   : > { %946 = sbr.rel (%p6208_p2) target bundleno = 812 (0x32c), region = 160  ;;  %v3796_v3 = vpack.c.bf16 (!%p6208_p2), %v952_v1, %v950_v0  ;;  %v951_v4 = vld [vmem:[#allocation15 + $0x10] sm:$0xff] (!%p6208_p2)  ;;  %v954_v5 = vld [vmem:[#allocation15 + $0x28] sm:$0xff] (!%p6208_p2)  ;;  %v956_v6 = vld [vmem:[#allocation15 + $0x38] sm:$0xff] (!%p6208_p2)  ;;  %3828 = vmatprep.subr.bf16.mxu1 (!%p6208_p2), %v4935_v7  ;;  %1045 = vmatprep.mubr.f32.mxu0 (!%p6208_p2), %v4936_v8  ;;  %1150 = vst [vmem:[#allocation5] sm:$0x3] (!%p6208_p2), %v4936_v8 }
 0x231   : > { %1151 = vst [vmem:[#allocation5 + $0x2] sm:$0x3] (!%p6208_p2), %v4936_v8  ;;  %1152 = vst [vmem:[#allocation5 + $0x4] sm:$0x3] (!%p6208_p2), %v4936_v8  ;;  %v3798_v9 = vpack.c.bf16 (!%p6208_p2), %v951_v4, %v949_v2  ;;  %v3800_v10 = vpack.c.bf16 (!%p6208_p2), %v956_v6, %v954_v5  ;;  %v953_v11 = vld [vmem:[#allocation15 + $0x20] sm:$0xff] (!%p6208_p2)  ;;  %v955_v12 = vld [vmem:[#allocation15 + $0x30] sm:$0xff] (!%p6208_p2) }
 0x232   : > { %1153 = vst [vmem:[#allocation5 + $0x6] sm:$0x3] (!%p6208_p2), %v4936_v8  ;;  %1154 = vst [vmem:[#allocation5 + $0x8] sm:$0x3] (!%p6208_p2), %v4936_v8  ;;  %v1063_v13 = vld [vmem:[#allocation16] sm:$0xff] (!%p6208_p2)  ;;  %vm4937_vm0 = vmmov (!%p6208_p2), 0   ;;  %3797 = vmatprep.subr.bf16.mxu0 (!%p6208_p2), %v3796_v3  ;;  %v3802_v17 = vpack.c.bf16 (!%p6208_p2), %v955_v12, %v953_v11 }
 0x233   : > { %1155 = vst [vmem:[#allocation6] sm:$0x3] (!%p6208_p2), %v4936_v8  ;;  %1156 = vst [vmem:[#allocation6 + $0x2] sm:$0x3] (!%p6208_p2), %v4936_v8  ;;  %3613 = vmatprep.mubr.msk.f32.mxu1 (!%p6208_p2), %vm4937_vm0, %v4936_v8  ;;  %v1064_v14 = vld [vmem:[#allocation16 + $0x8] sm:$0xff] (!%p6208_p2)  ;;  %v960_v16 = vld [vmem:[#allocation15 + $0x58] sm:$0xff] (!%p6208_p2)  ;;  %3799 = vmatpush1.bf16.msra.mxu0 (!%p6208_p2), %v3798_v9 }
 0x234   : > { %1157 = vst [vmem:[#allocation6 + $0x4] sm:$0x3] (!%p6208_p2), %v4936_v8  ;;  %1158 = vst [vmem:[#allocation6 + $0x6] sm:$0x3] (!%p6208_p2), %v4936_v8  ;;  %v958_v15 = vld [vmem:[#allocation15 + $0x48] sm:$0xff] (!%p6208_p2)  ;;  %v3829_v18 = vpack.c.bf16 (!%p6208_p2), %v1064_v14, %v1063_v13  ;;  %v1065_v19 = vld [vmem:[#allocation16 + $0x10] sm:$0xff] (!%p6208_p2)  ;;  %3801 = vmatprep.subr.bf16.mxu0 (!%p6208_p2), %v3800_v10 }
 0x235   : > { %1159 = vst [vmem:[#allocation6 + $0x8] sm:$0x3] (!%p6208_p2), %v4936_v8  ;;  %v3804_v20 = vpack.c.bf16 (!%p6208_p2), %v960_v16, %v958_v15  ;;  %v957_v21 = vld [vmem:[#allocation15 + $0x40] sm:$0xff] (!%p6208_p2)  ;;  %v959_v22 = vld [vmem:[#allocation15 + $0x50] sm:$0xff] (!%p6208_p2)  ;;  %v1066_v23 = vld [vmem:[#allocation16 + $0x18] sm:$0xff] (!%p6208_p2) }
 0x236   : > { %3830 = vmatpush3.bf16.msra.mxu1 (!%p6208_p2), %v3829_v18  ;;  %v3832_v24 = vpack.c.bf16 (!%p6208_p2), %v1066_v23, %v1065_v19  ;;  %v962_v25 = vld [vmem:[#allocation15 + $0x68] sm:$0xff] (!%p6208_p2)  ;;  %v964_v26 = vld [vmem:[#allocation15 + $0x78] sm:$0xff] (!%p6208_p2)  ;;  %v1067_v27 = vld [vmem:[#allocation16 + $0x20] sm:$0xff] (!%p6208_p2)  ;;  %v3806_v29 = vpack.c.bf16 (!%p6208_p2), %v959_v22, %v957_v21 }
 0x237   : > { %3831 = vmatprep.subr.bf16.mxu1 %v4935_v7  ;;  %v1068_v28 = vld [vmem:[#allocation16 + $0x28] sm:$0xff]  ;;  %3803 = vmatpush1.bf16.msra.mxu0 %v3802_v17  ;;  %v3808_v30 = vpack.c.bf16 %v964_v26, %v962_v25  ;;  %v961_v31 = vld [vmem:[#allocation15 + $0x60] sm:$0xff]  ;;  %v963_v32 = vld [vmem:[#allocation15 + $0x70] sm:$0xff] }
 0x238   : > { %3805 = vmatprep.subr.bf16.mxu0 %v3804_v20  ;;  %v3835_v33 = vpack.c.bf16 %v1068_v28, %v1067_v27  ;;  %v966_v34 = vld [vmem:[#allocation15 + $0x88] sm:$0xff]  ;;  %v968_v35 = vld [vmem:[#allocation15 + $0x98] sm:$0xff]  ;;  %v1069_v36 = vld [vmem:[#allocation16 + $0x30] sm:$0xff]  ;;  %v3810_v38 = vpack.c.bf16 %v963_v32, %v961_v31 }
 0x239   : > { %v1070_v37 = vld [vmem:[#allocation16 + $0x38] sm:$0xff]  ;;  %v3812_v39 = vpack.c.bf16 %v968_v35, %v966_v34  ;;  %v965_v40 = vld [vmem:[#allocation15 + $0x80] sm:$0xff]  ;;  %v967_v41 = vld [vmem:[#allocation15 + $0x90] sm:$0xff] }
 0x23a   : > { %3833 = vmatpush3.bf16.msra.mxu1 %v3832_v24  ;;  %v3838_v42 = vpack.c.bf16 %v1070_v37, %v1069_v36  ;;  %v970_v43 = vld [vmem:[#allocation15 + $0xa8] sm:$0xff]  ;;  %v972_v44 = vld [vmem:[#allocation15 + $0xb8] sm:$0xff]  ;;  %v1071_v45 = vld [vmem:[#allocation16 + $0x40] sm:$0xff]  ;;  %v3814_v49 = vpack.c.bf16 %v967_v41, %v965_v40 }
 0x23b   : > { %3834 = vmatprep.subr.bf16.mxu1 %v4935_v7  ;;  %3807 = vmatpush1.bf16.msra.mxu0 %v3806_v29  ;;  %v1072_v46 = vld [vmem:[#allocation16 + $0x48] sm:$0xff]  ;;  %v1160_v47 = vld [vmem:[#allocation12] sm:$0x3]  ;;  %v1162_v48 = vld [vmem:[#allocation13] sm:$0x3]  ;;  %v3816_v50 = vpack.c.bf16 %v972_v44, %v970_v43 }
 0x23c   : > { %3809 = vmatprep.subr.bf16.mxu0 %v3808_v30  ;;  %1161 = vst [vmem:[#allocation5] sm:$0x3] %v1160_v47  ;;  %1163 = vst [vmem:[#allocation6] sm:$0x3] %v1162_v48  ;;  %v969_v51 = vld [vmem:[#allocation15 + $0xa0] sm:$0xff]  ;;  %v971_v52 = vld [vmem:[#allocation15 + $0xb0] sm:$0xff]  ;;  %v3841_v53 = vpack.c.bf16 %v1072_v46, %v1071_v45 }
 0x23d   : > { %v974_v54 = vld [vmem:[#allocation15 + $0xc8] sm:$0xff]  ;;  %v976_v55 = vld [vmem:[#allocation15 + $0xd8] sm:$0xff]  ;;  %v1073_v56 = vld [vmem:[#allocation16 + $0x50] sm:$0xff]  ;;  %v3818_v58 = vpack.c.bf16 %v971_v52, %v969_v51 }
 0x23e   : > { %3836 = vmatpush3.bf16.msra.mxu1 %v3835_v33  ;;  %v1074_v57 = vld [vmem:[#allocation16 + $0x58] sm:$0xff]  ;;  %v3820_v59 = vpack.c.bf16 %v976_v55, %v974_v54  ;;  %v973_v60 = vld [vmem:[#allocation15 + $0xc0] sm:$0xff]  ;;  %v975_v61 = vld [vmem:[#allocation15 + $0xd0] sm:$0xff] }
 0x23f   : > { %3837 = vmatprep.subr.bf16.mxu1 %v4935_v7  ;;  %3811 = vmatpush1.bf16.msra.mxu0 %v3810_v38  ;;  %v3844_v62 = vpack.c.bf16 %v1074_v57, %v1073_v56  ;;  %v978_v63 = vld [vmem:[#allocation15 + $0xe8] sm:$0xff]  ;;  %v980_v0 = vld [vmem:[#allocation15 + $0xf8] sm:$0xff]  ;;  %v1075_v1 = vld [vmem:[#allocation16 + $0x60] sm:$0xff]  ;;  %v3822_v3 = vpack.c.bf16 %v975_v61, %v973_v60 }
 0x240   : > { %3813 = vmatprep.subr.bf16.mxu0 %v3812_v39  ;;  %v1076_v2 = vld [vmem:[#allocation16 + $0x68] sm:$0xff]  ;;  %v3824_v4 = vpack.c.bf16 %v980_v0, %v978_v63  ;;  %v977_v5 = vld [vmem:[#allocation15 + $0xe0] sm:$0xff]  ;;  %v979_v6 = vld [vmem:[#allocation15 + $0xf0] sm:$0xff] }
 0x241   : > { %v3847_v9 = vpack.c.bf16 %v1076_v2, %v1075_v1  ;;  %v1077_v10 = vld [vmem:[#allocation16 + $0x70] sm:$0xff]  ;;  %v1078_v11 = vld [vmem:[#allocation16 + $0x78] sm:$0xff]  ;;  %v3826_v12 = vpack.c.bf16 %v979_v6, %v977_v5 }
 0x242   : > { %3839 = vmatpush3.bf16.msra.mxu1 %v3838_v42  ;;  %v3850_v13 = vpack.c.bf16 %v1078_v11, %v1077_v10  ;;  %v947_v14 = vld [vmem:[#allocation7] sm:$0xff]  ;;  %v1062_v15 = vld [vmem:[#allocation10] sm:$0x3]  ;;  %v948_v16 = vld [vmem:[#allocation7 + $0x8] sm:$0xff] }
 0x243   : > { %3840 = vmatprep.subr.bf16.mxu1 %v4935_v7  ;;  %3815 = vmatpush1.bf16.msra.mxu0 %v3814_v49 }
 0x244   : > { %3817 = vmatprep.subr.bf16.mxu0 %v3816_v50 }
 0x246   : > { %3842 = vmatpush3.bf16.msra.mxu1 %v3841_v53 }
 0x247   : > { %3843 = vmatprep.subr.bf16.mxu1 %v4935_v7  ;;  %3819 = vmatpush1.bf16.msra.mxu0 %v3818_v58 }
 0x248   : > { %3821 = vmatprep.subr.bf16.mxu0 %v3820_v59 }
 0x24a   : > { %3845 = vmatpush3.bf16.msra.mxu1 %v3844_v62 }
 0x24b   : > { %3846 = vmatprep.subr.bf16.mxu1 %v4935_v7  ;;  %3823 = vmatpush1.bf16.msra.mxu0 %v3822_v3 }
 0x24c   : > { %3825 = vmatprep.subr.bf16.mxu0 %v3824_v4 }
 0x24e   : > { %3848 = vmatpush3.bf16.msra.mxu1 %v3847_v9 }
 0x24f   : > { %3849 = vmatprep.subr.bf16.mxu1 %v4935_v7  ;;  %3827 = vmatpush1.bf16.msra.mxu0 %v3826_v12 }
 0x252   : > { %3851 = vmatpush3.bf16.msra.mxu1 %v3850_v13  ;;  %1046 = vmatmul.mubr.f32.vlgmr.msra.gmra.mrb[0].mxu0 %v947_v14 }
 0x253   : > { %1051 = vmatprep.mubr.f32.mxu0 %v4936_v8 }
 0x255   : > { %3614 = vmatmul.mubr.f32.vlgmr.msra.gmra.mrb[0].mxu1 %v1062_v15 }
 0x256   : > { %1052 = vmatmul.mubr.f32.gmra.mrb[2].mxu0 %v948_v16 }
 0x325   : > { %v1047_v17 = vpop.f32.mrb[0].mxu0 }
 0x326   : > { %1058 = vst [vmem:[#allocation2] sm:$0xff] %v1047_v17  ;;  %v1049_v18 = vpop.f32.mrb[1].mxu0 }
 0x327   : > { %1060 = vst [vmem:[#allocation3] sm:$0xff] %v1049_v18 }
 0x328   : > { %v1145_v19 = vpop.f32.mrb[0].mxu1 }
 0x329   : > { %1149 = vst [vmem:[#allocation4] sm:$0x3] %v1145_v19  ;;  %v3615_v20 = vpop.f32.mrb[1].mxu1  ;;  %v1053_v21 = vpop.f32.mrb[2].mxu0 }
 0x32a   : > { %1059 = vst [vmem:[#allocation2 + $0x8] sm:$0xff] %v1053_v21  ;;  %v1055_v7 = vpop.f32.mrb[3].mxu0 }
 0x32b   : > { %1061 = vst [vmem:[#allocation3 + $0x8] sm:$0xff] %v1055_v7 }
 0x32c PF: > { %v1175_v8 = vld [vmem:[%s5625_s30] sm:$0xff]  ;;  %v1176_v22 = vld [vmem:[%s5625_s30 + $0x8] sm:$0xff]  ;;  %v1177_v23 = vld [vmem:[%s5625_s30 + $0x10] sm:$0xff]  ;;  %v4938_v24 = vmov 0.0|0.0   ;;  %vm4939_vm1 = vmmov 0   ;;  %v4940_v27 = vmov 0.0  }
 0x32d   : > { %3852 = vmatprep.subr.bf16.mxu0 %v4938_v24  ;;  %v3853_v25 = vpack.c.bf16 %v1176_v22, %v1175_v8  ;;  %v1178_v26 = vld [vmem:[%s5625_s30 + $0x18] sm:$0xff]  ;;  %3648 = vmatprep.mubr.msk.f32.mxu0 %vm4939_vm1, %v4940_v27  ;;  %v1179_v29 = vld [vmem:[%s5625_s30 + $0x20] sm:$0xff]  ;;  %v1180_v30 = vld [vmem:[%s5625_s30 + $0x28] sm:$0xff]  ;;  %s6209_s24 = sld [smem:[#allocation47_spill]]  ;;  %vm1540_vm2 = vcmask 1041409   ;;  %vm1543_vm3 = vcmask 58368  }
 0x32e   : > { %v3856_v28 = vpack.c.bf16 %v1178_v26, %v1177_v23  ;;  %v1281_v31 = vld [vmem:[%s5631_s12 + $0x80] sm:$0xff]  ;;  %v1181_v32 = vld [vmem:[%s5625_s30 + $0x30] sm:$0xff]  ;;  %v1182_v33 = vld [vmem:[%s5625_s30 + $0x38] sm:$0xff]  ;;  %v3859_v37 = vpack.c.bf16 %v1180_v30, %v1179_v29  ;;  %vm1573_vm4 = vcmask 64512   ;;  %vm2548_vm5 = vcmask 1041408  }
 0x32f   : > { %3854 = vmatpush3.bf16.msra.mxu0 %v3853_v25  ;;  %v1282_v34 = vld [vmem:[%s5631_s12 + $0x88] sm:$0xff]  ;;  %v1265_v35 = vld [vmem:[%s5631_s12] sm:$0xff]  ;;  %v1283_v40 = vld [vmem:[%s5631_s12 + $0x90] sm:$0xff]  ;;  %v3862_v48 = vpack.c.bf16 %v1182_v33, %v1181_v32  ;;  %vm2596_vm6 = vcmask 1042434   ;;  %vm2598_vm7 = vcmask 1043459   ;;  %vm2600_vm8 = vcmask 1044484  }
 0x330   : > { %3855 = vmatprep.subr.bf16.mxu0 %v4938_v24  ;;  %v1266_v36 = vld [vmem:[%s5631_s12 + $0x8] sm:$0xff]  ;;  %v3876_v38 = vpack.c.bf16 %v1282_v34, %v1281_v31  ;;  %v1284_v41 = vld [vmem:[%s5631_s12 + $0x98] sm:$0xff]  ;;  %v1267_v42 = vld [vmem:[%s5631_s12 + $0x10] sm:$0xff]  ;;  %v1191_v34 = vlaneseq  ;;  %vm2604_vm10 = vcmask 12288  }
 0x331   : > { %v3878_v39 = vpack.c.bf16 %v1266_v36, %v1265_v35  ;;  %v3880_v43 = vpack.c.bf16 %v1284_v41, %v1283_v40  ;;  %v1268_v44 = vld [vmem:[%s5631_s12 + $0x18] sm:$0xff]  ;;  %v1285_v45 = vld [vmem:[%s5631_s12 + $0xa0] sm:$0xff]  ;;  %v1286_v46 = vld [vmem:[%s5631_s12 + $0xa8] sm:$0xff] }
 0x332   : > { %3877 = vmatprep.subr.bf16.mxu1 %v3876_v38  ;;  %v3882_v47 = vpack.c.bf16 %v1268_v44, %v1267_v42  ;;  %v1183_v49 = vld [vmem:[%s5625_s30 + $0x40] sm:$0xff]  ;;  %v3884_v50 = vpack.c.bf16 %v1286_v46, %v1285_v45  ;;  %v1270_v52 = vld [vmem:[%s5631_s12 + $0x28] sm:$0xff]  ;;  %v1287_v54 = vld [vmem:[%s5631_s12 + $0xb0] sm:$0xff]  ;;  %v5746_v35 = vshrl.u32 %v1191_v34, 7  ;;  %v4941_v44 = vmov 1966171168  }
 0x333   : > { %3857 = vmatpush3.bf16.msra.mxu0 %v3856_v28  ;;  %3879 = vmatpush3.bf16.msra.mxu1 %v3878_v39  ;;  %v1269_v51 = vld [vmem:[%s5631_s12 + $0x20] sm:$0xff]  ;;  %v1184_v53 = vld [vmem:[%s5625_s30 + $0x48] sm:$0xff]  ;;  %v1288_v55 = vld [vmem:[%s5631_s12 + $0xb8] sm:$0xff]  ;;  %s3351_s11 = sshll.u32 %s6209_s24, 1  ;;  %v1374_v45 = vunpack.c.l.s4 %v4941_v44  ;;  %p3360_p9 = scmp.ne.s32.totalorder %s6209_s24, 3 }
 0x334   : > { %3858 = vmatprep.subr.bf16.mxu0 %v4938_v24  ;;  %3881 = vmatprep.subr.bf16.mxu1 %v3880_v43  ;;  %v3886_v56 = vpack.c.bf16 %v1270_v52, %v1269_v51  ;;  %v3865_v57 = vpack.c.bf16 %v1184_v53, %v1183_v49  ;;  %v1185_v58 = vld [vmem:[%s5625_s30 + $0x50] sm:$0xff]  ;;  %v3888_v59 = vpack.c.bf16 %v1288_v55, %v1287_v54  ;;  %v1272_v61 = vld [vmem:[%s5631_s12 + $0x38] sm:$0xff]  ;;  %v1289_v63 = vld [vmem:[%s5631_s12 + $0xc0] sm:$0xff]  ;;  %v5749_v36 = vsub.s32 0, %v5746_v35  ;;  %s5759_s19 = scalar_lea.vmem [#allocation5], %s3351_s11  ;;  %s5854_s29 = scalar_lea.vmem [#allocation6], %s3351_s11 }
 0x335   : > { %v1271_v60 = vld [vmem:[%s5631_s12 + $0x30] sm:$0xff]  ;;  %v1186_v62 = vld [vmem:[%s5625_s30 + $0x58] sm:$0xff]  ;;  %v1290_v0 = vld [vmem:[%s5631_s12 + $0xc8] sm:$0xff]  ;;  %v1369_v46 = vsub.s32 1, %v5746_v35  ;;  %vm4943_vm11 = vmmov (!%p3360_p9), 0   ;;  %vm2991_vm13 = vcmask (!%p3360_p9), 25600  }
 0x336   : > { %v3890_v1 = vpack.c.bf16 %v1272_v61, %v1271_v60  ;;  %v3868_v2 = vpack.c.bf16 %v1186_v62, %v1185_v58  ;;  %v1187_v3 = vld [vmem:[%s5625_s30 + $0x60] sm:$0xff]  ;;  %v3892_v4 = vpack.c.bf16 %v1290_v0, %v1289_v63  ;;  %v1274_v6 = vld [vmem:[%s5631_s12 + $0x48] sm:$0xff]  ;;  %v1291_v10 = vld [vmem:[%s5631_s12 + $0xd0] sm:$0xff] }
 0x337   : > { %3860 = vmatpush3.bf16.msra.mxu0 %v3859_v37  ;;  %3883 = vmatpush3.bf16.msra.mxu1 %v3882_v47  ;;  %v1273_v5 = vld [vmem:[%s5631_s12 + $0x40] sm:$0xff]  ;;  %v1188_v9 = vld [vmem:[%s5625_s30 + $0x68] sm:$0xff]  ;;  %v1292_v11 = vld [vmem:[%s5631_s12 + $0xd8] sm:$0xff]  ;;  %v1375_v47 = vunpack.c.0.s8 %v1374_v45 }
 0x338   : > { %3861 = vmatprep.subr.bf16.mxu0 %v4938_v24  ;;  %3885 = vmatprep.subr.bf16.mxu1 %v3884_v50  ;;  %v3894_v12 = vpack.c.bf16 %v1274_v6, %v1273_v5  ;;  %v3871_v13 = vpack.c.bf16 %v1188_v9, %v1187_v3  ;;  %v1189_v14 = vld [vmem:[%s5625_s30 + $0x70] sm:$0xff]  ;;  %v3896_v15 = vpack.c.bf16 %v1292_v11, %v1291_v10  ;;  %v1276_v17 = vld [vmem:[%s5631_s12 + $0x58] sm:$0xff]  ;;  %v1293_v19 = vld [vmem:[%s5631_s12 + $0xe0] sm:$0xff] }
 0x339   : > { %v1275_v16 = vld [vmem:[%s5631_s12 + $0x50] sm:$0xff]  ;;  %v1190_v18 = vld [vmem:[%s5625_s30 + $0x78] sm:$0xff]  ;;  %v1294_v20 = vld [vmem:[%s5631_s12 + $0xe8] sm:$0xff]  ;;  %v5770_v52 = vsub.s32 %v1375_v47, %v5746_v35 }
 0x33a   : > { %v3898_v21 = vpack.c.bf16 %v1276_v17, %v1275_v16  ;;  %v3874_v7 = vpack.c.bf16 %v1190_v18, %v1189_v14  ;;  %v3900_v8 = vpack.c.bf16 %v1294_v20, %v1293_v19  ;;  %v1277_v22 = vld [vmem:[%s5631_s12 + $0x60] sm:$0xff]  ;;  %v1278_v23 = vld [vmem:[%s5631_s12 + $0x68] sm:$0xff]  ;;  %v5734_v26 = vld [vmem:[#allocation4] sm:$0x3] }
 0x33b   : > { %3863 = vmatpush3.bf16.msra.mxu0 %v3862_v48  ;;  %3887 = vmatpush3.bf16.msra.mxu1 %v3886_v56  ;;  %v3902_v25 = vpack.c.bf16 %v1278_v23, %v1277_v22  ;;  %v1295_v28 = vld [vmem:[%s5631_s12 + $0xf0] sm:$0xff]  ;;  %v1296_v29 = vld [vmem:[%s5631_s12 + $0xf8] sm:$0xff]  ;;  %v5752_v37 = vld [vmem:[%s5655_s23] sm:$0xff] }
 0x33c   : > { %3864 = vmatprep.subr.bf16.mxu0 %v4938_v24  ;;  %3889 = vmatprep.subr.bf16.mxu1 %v3888_v59  ;;  %v3904_v30 = vpack.c.bf16 %v1296_v29, %v1295_v28  ;;  %v1279_v31 = vld [vmem:[%s5631_s12 + $0x70] sm:$0xff]  ;;  %v1280_v32 = vld [vmem:[%s5631_s12 + $0x78] sm:$0xff]  ;;  %v1194_v38 = vrot.slane %v5752_v37, %v5749_v36  ;;  %v1166_v43 = vld [vmem:[#allocation3] sm:$0xff]  ;;  %v1370_v49 = vrot.slane %v5752_v37, %v1369_v46 }
 0x33d   : > { %v3906_v33 = vpack.c.bf16 %v1280_v32, %v1279_v31  ;;  %v1171_v42 = vld [vmem:[%s5759_s19] sm:$0x3]  ;;  %v1723_v16 = vld [vmem:[%s5633_s20 + $0x18] sm:$0xff]  ;;  %v1824_v18 = vld [vmem:[%s5639_s26 + $0x8] sm:$0xff] }
 0x33e   : > { %v1826_v19 = vld [vmem:[%s5639_s26 + $0x18] sm:$0xff]  ;;  %v1722_v22 = vld [vmem:[%s5633_s20 + $0x10] sm:$0xff]  ;;  %v1725_v23 = vld [vmem:[%s5633_s20 + $0x28] sm:$0xff] }
 0x33f   : > { %3866 = vmatpush3.bf16.msra.mxu0 %v3865_v57  ;;  %3891 = vmatpush3.bf16.msra.mxu1 %v3890_v1  ;;  %v1167_v57 = vld [vmem:[#allocation3 + $0x8] sm:$0xff]  ;;  %v3940_v20 = vpack.c.bf16 %v1826_v19, %v1824_v18  ;;  %v1823_v28 = vld [vmem:[%s5639_s26] sm:$0xff]  ;;  %v1731_v45 = vld [vmem:[%s5633_s20 + $0x58] sm:$0xff] }
 0x340   : > { %3867 = vmatprep.subr.bf16.mxu0 %v4938_v24  ;;  %3893 = vmatprep.subr.bf16.mxu1 %v3892_v4  ;;  %v1825_v29 = vld [vmem:[%s5639_s26 + $0x10] sm:$0xff]  ;;  %v1828_v32 = vld [vmem:[%s5639_s26 + $0x28] sm:$0xff]  ;;  %v1736_v18 = vld [vmem:[%s5633_s20 + $0x80] sm:$0xff] }
 0x341   : > { %v1729_v44 = vld [vmem:[%s5633_s20 + $0x48] sm:$0xff]  ;;  %v1738_v19 = vld [vmem:[%s5633_s20 + $0x90] sm:$0xff] }
 0x343   : > { %3869 = vmatpush3.bf16.msra.mxu0 %v3868_v2  ;;  %3895 = vmatpush3.bf16.msra.mxu1 %v3894_v12 }
 0x344   : > { %3870 = vmatprep.subr.bf16.mxu0 %v4938_v24  ;;  %3897 = vmatprep.subr.bf16.mxu1 %v3896_v15  ;;  %v1721_v15 = vld [vmem:[%s5633_s20 + $0x8] sm:$0xff] }
 0x345   : > { %v3908_v17 = vpack.c.bf16 %v1723_v16, %v1721_v15  ;;  %v1840_v15 = vld [vmem:[%s5639_s26 + $0x88] sm:$0xff]  ;;  %v1842_v16 = vld [vmem:[%s5639_s26 + $0x98] sm:$0xff] }
 0x347   : > { %3872 = vmatpush3.bf16.msra.mxu0 %v3871_v13  ;;  %3899 = vmatpush3.bf16.msra.mxu1 %v3898_v21 }
 0x348   : > { %3873 = vmatprep.subr.bf16.mxu0 %v4938_v24  ;;  %3901 = vmatprep.subr.bf16.mxu1 %v3900_v8  ;;  %v1720_v8 = vld [vmem:[%s5633_s20] sm:$0xff] }
 0x349   : > { %v3910_v31 = vpack.c.bf16 %v1722_v22, %v1720_v8  ;;  %v3956_v8 = vpack.c.bf16 %v1842_v16, %v1840_v15  ;;  %v1839_v22 = vld [vmem:[%s5639_s26 + $0x80] sm:$0xff] }
 0x34a   : > { %v1971_v16 = vld [vmem:[%s5641_s27 + $0x20] sm:$0xff] }
 0x34b   : > { %3875 = vmatpush3.bf16.msra.mxu0 %v3874_v7  ;;  %3903 = vmatpush3.bf16.msra.mxu1 %v3902_v25  ;;  %v1727_v25 = vld [vmem:[%s5633_s20 + $0x38] sm:$0xff] }
 0x34c   : > { %3661 = vmatprep.subr.mxu0 %v4940_v27  ;;  %3905 = vmatprep.subr.bf16.mxu1 %v3904_v30 }
 0x34e   : > { %3649 = vmatmul.mubr.f32.vlgmr.msra.gmra.mrb[0].mxu0 %v5734_v26 }
 0x34f   : > { %3663 = vmatprep.mubr.msk.f32.mxu0 %vm4939_vm1, %v4940_v27  ;;  %3907 = vmatpush3.bf16.msra.mxu1 %v3906_v33  ;;  %v1830_v33 = vld [vmem:[%s5639_s26 + $0x38] sm:$0xff] }
 0x350   : > { %3651 = vmatprep.subr.mxu1 %v4940_v27  ;;  %3662 = vmatpush3.msra.mxu0 %v1166_v43 }
 0x351   : > { %3909 = vmatprep.subr.bf16.mxu0 %v3908_v17 }
 0x421   : > { %v1261_v39 = vpop.f32.mrb[0].mxu0 }
 0x422   : > { %v3650_v40 = vpop.f32.mrb[1].mxu0  ;;  %v1262_v41 = vadd.f32 %v1261_v39, %v1194_v38  ;;  %v3912_v39 = vpack.c.bf16 %v1727_v25, %v1725_v23  ;;  %v1841_v23 = vld [vmem:[%s5639_s26 + $0x90] sm:$0xff]  ;;  %v3926_v25 = vpack.c.bf16 %v1738_v19, %v1736_v18 }
 0x423   : > { %v1724_v40 = vld [vmem:[%s5633_s20 + $0x20] sm:$0xff]  ;;  %v1973_v19 = vld [vmem:[%s5641_s27 + $0x30] sm:$0xff] }
 0x424   : > { %1361 = vmatprep.mubr.f32.mxu1 %v1262_v41  ;;  %v1726_v41 = vld [vmem:[%s5633_s20 + $0x30] sm:$0xff] }
 0x425   : > { %1362 = vmatmul.mubr.f32.vlgmr.msra.gmra.mrb[0].mxu1 %v1171_v42 }
 0x426   : > { %3653 = vmatprep.mubr.msk.f32.mxu1 %vm4939_vm1, %v4940_v27  ;;  %3652 = vmatpush3.xpose.msra.mxu1 %v1166_v43  ;;  %v3942_v43 = vpack.c.bf16 %v1825_v29, %v1823_v28  ;;  %v1844_v28 = vld [vmem:[%s5639_s26 + $0xa8] sm:$0xff]  ;;  %v1846_v29 = vld [vmem:[%s5639_s26 + $0xb8] sm:$0xff] }
 0x427   : > { %3656 = vmatprep.subr.mxu1 %v4940_v27 }
 0x4f8   : > { %v3440_v48 = vpop.f32.mrb[0].mxu1 }
 0x4f9   : > { %v3441_v50 = vpop.f32.mrb[1].mxu1 }
 0x4fa   : > { %v3442_v51 = vadd.f32 %v3441_v50, %v3440_v48  ;;  %v3944_v48 = vpack.c.bf16 %v1830_v33, %v1828_v32  ;;  %v1829_v50 = vld [vmem:[%s5639_s26 + $0x30] sm:$0xff]  ;;  %v3958_v33 = vpack.c.bf16 %v1841_v23, %v1839_v22 }
 0x4fb   : > { %v1742_v32 = vld [vmem:[%s5633_s20 + $0xb0] sm:$0xff] }
 0x4fc   : > { %v1371_v53 = vmul.f32 %v3442_v51, %v1370_v49  ;;  %v1827_v49 = vld [vmem:[%s5639_s26 + $0x20] sm:$0xff]  ;;  %v3914_v51 = vpack.c.bf16 %v1726_v41, %v1724_v40  ;;  %v3960_v40 = vpack.c.bf16 %v1846_v29, %v1844_v28  ;;  %v1977_v23 = vld [vmem:[%s5641_s27 + $0x50] sm:$0xff] }
 0x4fd   : > { %v1843_v41 = vld [vmem:[%s5639_s26 + $0xa0] sm:$0xff] }
 0x4fe   : > { %v1379_v54 = vrot.slane %v1371_v53, %v5770_v52  ;;  %v1832_v53 = vld [vmem:[%s5639_s26 + $0x48] sm:$0xff]  ;;  %v1979_v29 = vld [vmem:[%s5641_s27 + $0x60] sm:$0xff] }
 0x500   : > { %v1380_v55 = vcombine.high %v1379_v54, %v1379_v54  ;;  %v1387_v56 = vrot.slane %v1379_v54, %v5770_v52  ;;  %v1834_v54 = vld [vmem:[%s5639_s26 + $0x58] sm:$0xff] }
 0x502   : > { %3654 = vmatmul.mubr.f32.vlgmr.msra.gmra.mrb[2].mxu1 %v1387_v56  ;;  %v1394_v58 = vrot.slane %v1380_v55, %v5770_v52  ;;  %v3916_v55 = vpack.c.bf16 %v1731_v45, %v1729_v44  ;;  %v1728_v56 = vld [vmem:[%s5633_s20 + $0x40] sm:$0xff]  ;;  %v1848_v44 = vld [vmem:[%s5639_s26 + $0xc8] sm:$0xff]  ;;  %v1850_v45 = vld [vmem:[%s5639_s26 + $0xd8] sm:$0xff] }
 0x503   : > { %3657 = vmatpush3.xpose.msra.mxu1 %v1167_v57  ;;  %3658 = vmatprep.mubr.msk.f32.mxu1 %vm4939_vm1, %v4940_v27 }
 0x504   : > { %3666 = vmatprep.subr.mxu1 %v4940_v27 }
 0x506   : > { %3659 = vmatmul.mubr.f32.vlgmr.msra.gmra.mrb[4].mxu1 %v1394_v58  ;;  %v3946_v58 = vpack.c.bf16 %v1829_v50, %v1827_v49  ;;  %v1746_v49 = vld [vmem:[%s5633_s20 + $0xd0] sm:$0xff] }
 0x507   : > { %3667 = vmatpush3.msra.mxu1 %v1167_v57  ;;  %3668 = vmatprep.mubr.msk.f32.mxu1 %vm4939_vm1, %v4940_v27  ;;  %v1730_v57 = vld [vmem:[%s5633_s20 + $0x50] sm:$0xff] }
 0x508   : > { %3941 = vmatprep.subr.bf16.mxu1 %v3940_v20 }
 0x5d5   : > { %v1463_v59 = vpop.f32.mrb[2].mxu1 }
 0x5d6   : > { %v3655_v60 = vpop.f32.mrb[3].mxu1 }
 0x5d7   : > { %v1735_v60 = vld [vmem:[%s5633_s20 + $0x78] sm:$0xff] }
 0x5d9   : > { %v1533_v61 = vpop.f32.mrb[4].mxu1 }
 0x5da   : > { %v1539_v62 = vrot.slane %v1533_v61, 7  ;;  %v3660_v63 = vpop.f32.mrb[5].mxu1 }
 0x5db   : > { %v1833_v63 = vld [vmem:[%s5639_s26 + $0x50] sm:$0xff] }
 0x5dc   : > { %v1541_v0 = vsel %vm1540_vm2, %v1539_v62, %v1463_v59  ;;  %v1831_v62 = vld [vmem:[%s5639_s26 + $0x40] sm:$0xff] }
 0x5dd   : > { %v1544_v1 = vsel %vm1543_vm3, %v1541_v0, -inf  ;;  %v3918_v0 = vpack.c.bf16 %v1730_v57, %v1728_v56  ;;  %v1849_v56 = vld [vmem:[%s5639_s26 + $0xd0] sm:$0xff] }
 0x5de   : > { %1545 = vmax.xlane.f32.xlu0 %v1544_v1  ;;  %v1836_v1 = vld [vmem:[%s5639_s26 + $0x68] sm:$0xff] }
 0x66b   : > { %v1546_v2 = vpop.xlane.xlu0 %1545 }
 0x66c   : > { %v1548_v3 = vrot.slane %v1546_v2, 1  ;;  %v1551_v4 = vsub.f32 %v1463_v59, %v1546_v2  ;;  %v1733_v59 = vld [vmem:[%s5633_s20 + $0x68] sm:$0xff]  ;;  %v1838_v2 = vld [vmem:[%s5639_s26 + $0x78] sm:$0xff] }
 0x66e   : > { %v1552_v5 = vsub.f32 %v1533_v61, %v1548_v3  ;;  %v1553_v6 = vmul.f32 1.442695, %v1551_v4  ;;  %v3948_v61 = vpack.c.bf16 %v1834_v54, %v1832_v53  ;;  %v3920_v3 = vpack.c.bf16 %v1735_v60, %v1733_v59  ;;  %v1732_v4 = vld [vmem:[%s5633_s20 + $0x60] sm:$0xff]  ;;  %v1751_v53 = vld [vmem:[%s5633_s20 + $0xf8] sm:$0xff] }
 0x66f   : > { %v3964_v54 = vpack.c.bf16 %v1850_v45, %v1848_v44  ;;  %v1854_v59 = vld [vmem:[%s5639_s26 + $0xf8] sm:$0xff]  ;;  %v2478_v44 = vld [vmem:[#allocation5 + $0x2] sm:$0x3] }
 0x670   : > { %v1555_v9 = vmul.f32 1.442695, %v1552_v5  ;;  %v1734_v5 = vld [vmem:[%s5633_s20 + $0x70] sm:$0xff]  ;;  %v2480_v45 = vld [vmem:[#allocation5 + $0x6] sm:$0x3] }
 0x672   : > { %4302 = vpow2.f32 %v1555_v9  ;;  %v1737_v9 = vld [vmem:[%s5633_s20 + $0x88] sm:$0xff] }
 0x673   : > { %4304 = vpow2.f32 %v1553_v6  ;;  %v3950_v6 = vpack.c.bf16 %v1833_v63, %v1831_v62  ;;  %v1750_v62 = vld [vmem:[%s5633_s20 + $0xf0] sm:$0xff] }
 0x67c   : > { %v4303_v10 = vpop.eup %4302 }
 0x67d   : > { %v1559_v11 = vrot.slane %v4303_v10, 7  ;;  %v4305_v12 = vpop.eup %4304 }
 0x67f   : > { %v1560_v13 = vsel %vm1540_vm2, %v1559_v11, %v4305_v12  ;;  %v3952_v11 = vpack.c.bf16 %v1838_v2, %v1836_v1  ;;  %v1851_v1 = vld [vmem:[%s5639_s26 + $0xe0] sm:$0xff]  ;;  %v1853_v2 = vld [vmem:[%s5639_s26 + $0xf0] sm:$0xff] }
 0x680   : > { %v1562_v14 = vsel %vm1543_vm3, %v1560_v13, 0.0  ;;  %v1837_v13 = vld [vmem:[%s5639_s26 + $0x70] sm:$0xff] }
 0x681   : > { %1563 = vadd.xlane.f32.xlu0 %v1562_v14  ;;  %v3922_v14 = vpack.c.bf16 %v1734_v5, %v1732_v4  ;;  %v3970_v4 = vpack.c.bf16 %v1853_v2, %v1851_v1  ;;  %v1173_v5 = vld [vmem:[%s5854_s29] sm:$0x3] }
 0x70e   : > { %v1564_v21 = vpop.xlane.xlu0 %1563 }
 0x70f   : > { %v1566_v7 = vrot.slane %v1564_v21, 1  ;;  %4306 = vrcp.f32 %v1564_v21  ;;  %v1741_v21 = vld [vmem:[%s5633_s20 + $0xa8] sm:$0xff] }
 0x711   : > { %4308 = vrcp.f32 %v1566_v7  ;;  %v1743_v7 = vld [vmem:[%s5633_s20 + $0xb8] sm:$0xff] }
 0x719   : > { %v4307_v30 = vpop.eup %4306 }
 0x71a   : > { %v1570_v38 = vmul.f32 %v4307_v30, %v4305_v12  ;;  %v1835_v12 = vld [vmem:[%s5639_s26 + $0x60] sm:$0xff]  ;;  %v3928_v30 = vpack.c.bf16 %v1743_v7, %v1741_v21 }
 0x71b   : > { %v4309_v42 = vpop.eup %4308  ;;  %v3954_v20 = vpack.c.bf16 %v1837_v13, %v1835_v12  ;;  %v1969_v13 = vld [vmem:[%s5641_s27 + $0x10] sm:$0xff]  ;;  %v1975_v21 = vld [vmem:[%s5641_s27 + $0x40] sm:$0xff] }
 0x71c   : > { %3664 = vmatmul.mubr.msk.f32.vlgmr.msra.gmra.mrb[2].mxu0 %vm1573_vm4, %v1570_v38  ;;  %v1572_v47 = vmul.f32 %v4309_v42, %v4303_v10  ;;  %v1739_v10 = vld [vmem:[%s5633_s20 + $0x98] sm:$0xff]  ;;  %v1745_v38 = vld [vmem:[%s5633_s20 + $0xc8] sm:$0xff]  ;;  %v1845_v42 = vld [vmem:[%s5639_s26 + $0xb0] sm:$0xff] }
 0x71d   : > { %3911 = vmatpush1.bf16.msra.mxu0 %v3910_v31  ;;  %1816 = vmatprep.mubr.f32.mxu0 %v4940_v27  ;;  %v3924_v17 = vpack.c.bf16 %v1739_v10, %v1737_v9  ;;  %v1740_v31 = vld [vmem:[%s5633_s20 + $0xa0] sm:$0xff]  ;;  %v3962_v50 = vpack.c.bf16 %v1845_v42, %v1843_v41  ;;  %v2477_v41 = vld [vmem:[#allocation5] sm:$0x3]  ;;  %v2479_v42 = vld [vmem:[#allocation5 + $0x4] sm:$0x3] }
 0x71e   : > { %3669 = vmatmul.mubr.msk.f32.vlgmr.msra.gmra.mrb[6].mxu1 %vm1573_vm4, %v1572_v47  ;;  %3913 = vmatprep.subr.bf16.mxu0 %v3912_v39  ;;  %v1747_v39 = vld [vmem:[%s5633_s20 + $0xd8] sm:$0xff]  ;;  %v1967_v10 = vld [vmem:[%s5641_s27] sm:$0xff] }
 0x71f   : > { %3943 = vmatpush1.bf16.msra.mxu1 %v3942_v43  ;;  %1919 = vmatprep.mubr.f32.mxu1 %v4940_v27  ;;  %v3930_v43 = vpack.c.bf16 %v1742_v32, %v1740_v31  ;;  %v3932_v47 = vpack.c.bf16 %v1747_v39, %v1745_v38  ;;  %v5862_v9 = vld [vmem:[#allocation2 + $0x8] sm:$0xff]  ;;  %v1981_v32 = vld [vmem:[%s5641_s27 + $0x70] sm:$0xff]  ;;  %v2489_v39 = vsub.s32 3, %v5746_v35 }
 0x720   : > { %3945 = vmatprep.subr.bf16.mxu1 %v3944_v48  ;;  %v1744_v48 = vld [vmem:[%s5633_s20 + $0xc0] sm:$0xff] }
 0x721   : > { %3915 = vmatpush1.bf16.msra.mxu0 %v3914_v51  ;;  %v1749_v51 = vld [vmem:[%s5633_s20 + $0xe8] sm:$0xff]  ;;  %v3934_v57 = vpack.c.bf16 %v1746_v49, %v1744_v48  ;;  %v2498_v49 = vrot.slane %v2477_v41, 1 }
 0x722   : > { %3917 = vmatprep.subr.bf16.mxu0 %v3916_v55  ;;  %v1847_v55 = vld [vmem:[%s5639_s26 + $0xc0] sm:$0xff]  ;;  %v3936_v60 = vpack.c.bf16 %v1751_v53, %v1749_v51 }
 0x723   : > { %3947 = vmatpush1.bf16.msra.mxu1 %v3946_v58  ;;  %v1852_v58 = vld [vmem:[%s5639_s26 + $0xe8] sm:$0xff]  ;;  %v3966_v63 = vpack.c.bf16 %v1849_v56, %v1847_v55  ;;  %v2499_v55 = vrot.slane %v2478_v44, 1  ;;  %v2501_v56 = vrot.slane %v2480_v45, 1 }
 0x724   : > { %3949 = vmatprep.subr.bf16.mxu1 %v3948_v61  ;;  %v1748_v61 = vld [vmem:[%s5633_s20 + $0xe0] sm:$0xff] }
 0x725   : > { %3919 = vmatpush1.bf16.msra.mxu0 %v3918_v0  ;;  %v3968_v0 = vpack.c.bf16 %v1854_v59, %v1852_v58 }
 0x726   : > { %3921 = vmatprep.subr.bf16.mxu0 %v3920_v3  ;;  %v3938_v3 = vpack.c.bf16 %v1750_v62, %v1748_v61 }
 0x727   : > { %3951 = vmatpush1.bf16.msra.mxu1 %v3950_v6  ;;  %v5857_v6 = vld [vmem:[#allocation2] sm:$0xff] }
 0x728   : > { %3953 = vmatprep.subr.bf16.mxu1 %v3952_v11  ;;  %v1968_v11 = vld [vmem:[%s5641_s27 + $0x8] sm:$0xff] }
 0x729   : > { %3923 = vmatpush1.bf16.msra.mxu0 %v3922_v14  ;;  %v3972_v12 = vpack.c.bf16 %v1968_v11, %v1967_v10  ;;  %v1970_v14 = vld [vmem:[%s5641_s27 + $0x18] sm:$0xff] }
 0x72a   : > { %3925 = vmatprep.subr.bf16.mxu0 %v3924_v17  ;;  %v3976_v15 = vpack.c.bf16 %v1970_v14, %v1969_v13  ;;  %v1972_v17 = vld [vmem:[%s5641_s27 + $0x28] sm:$0xff] }
 0x72b   : > { %3955 = vmatpush1.bf16.msra.mxu1 %v3954_v20  ;;  %v3980_v18 = vpack.c.bf16 %v1972_v17, %v1971_v16  ;;  %v1974_v20 = vld [vmem:[%s5641_s27 + $0x38] sm:$0xff] }
 0x72c   : > { %3957 = vmatprep.subr.bf16.mxu1 %v3956_v8  ;;  %v3984_v7 = vpack.c.bf16 %v1974_v20, %v1973_v19  ;;  %v1976_v8 = vld [vmem:[%s5641_s27 + $0x48] sm:$0xff] }
 0x72d   : > { %3927 = vmatpush1.bf16.msra.mxu0 %v3926_v25  ;;  %v3988_v22 = vpack.c.bf16 %v1976_v8, %v1975_v21  ;;  %v1978_v25 = vld [vmem:[%s5641_s27 + $0x58] sm:$0xff] }
 0x72e   : > { %3929 = vmatprep.subr.bf16.mxu0 %v3928_v30  ;;  %v3992_v28 = vpack.c.bf16 %v1978_v25, %v1977_v23  ;;  %v1980_v30 = vld [vmem:[%s5641_s27 + $0x68] sm:$0xff] }
 0x72f   : > { %3959 = vmatpush1.bf16.msra.mxu1 %v3958_v33  ;;  %v3996_v31 = vpack.c.bf16 %v1980_v30, %v1979_v29  ;;  %v1982_v33 = vld [vmem:[%s5641_s27 + $0x78] sm:$0xff] }
 0x730   : > { %3961 = vmatprep.subr.bf16.mxu1 %v3960_v40  ;;  %v4000_v38 = vpack.c.bf16 %v1982_v33, %v1981_v32  ;;  %v2490_v40 = vrot.slane %v5752_v37, %v2489_v39 }
 0x731   : > { %3931 = vmatpush1.bf16.msra.mxu0 %v3930_v43  ;;  %v2481_v43 = vld [vmem:[#allocation5 + $0x8] sm:$0x3] }
 0x732   : > { %3933 = vmatprep.subr.bf16.mxu0 %v3932_v47  ;;  %v2502_v51 = vrot.slane %v2481_v43, 1 }
 0x733   : > { %3963 = vmatpush1.bf16.msra.mxu1 %v3962_v50  ;;  %v2500_v50 = vrot.slane %v2479_v42, 1 }
 0x734   : > { %3965 = vmatprep.subr.bf16.mxu1 %v3964_v54 }
 0x735   : > { %3935 = vmatpush1.bf16.msra.mxu0 %v3934_v57 }
 0x736   : > { %3937 = vmatprep.subr.bf16.mxu0 %v3936_v60 }
 0x737   : > { %3967 = vmatpush1.bf16.msra.mxu1 %v3966_v63 }
 0x738   : > { %3969 = vmatprep.subr.bf16.mxu1 %v3968_v0 }
 0x739   : > { %3939 = vmatpush1.bf16.msra.mxu0 %v3938_v3 }
 0x73a   : > { %3973 = vmatprep.subr.bf16.mxu0 %v3972_v12 }
 0x73b   : > { %3971 = vmatpush1.bf16.msra.mxu1 %v3970_v4 }
 0x73c   : > { %1817 = vmatmul.mubr.f32.vlgmr.msra.gmra.mrb[4].mxu0 %v1173_v5  ;;  %3706 = vmatprep.subr.mxu1 %v4940_v27 }
 0x73d   : > { %3975 = vmatpush3.bf16.msra.mxu0 %v3972_v12 }
 0x73e   : > { %1920 = vmatmul.mubr.f32.vlgmr.msra.gmra.mrb[8].mxu1 %v5857_v6  ;;  %3977 = vmatprep.subr.bf16.mxu0 %v3976_v15 }
 0x73f   : > { %1925 = vmatprep.mubr.f32.mxu1 %v4940_v27 }
 0x741   : > { %3979 = vmatpush3.bf16.msra.mxu0 %v3976_v15 }
 0x742   : > { %1926 = vmatmul.mubr.f32.gmra.mrb[10].mxu1 %v5862_v9  ;;  %3981 = vmatprep.subr.bf16.mxu0 %v3980_v18 }
 0x743   : > { %3708 = vmatprep.mubr.msk.f32.mxu1 %vm4939_vm1, %v4940_v27 }
 0x745   : > { %3983 = vmatpush3.bf16.msra.mxu0 %v3980_v18 }
 0x746   : > { %3985 = vmatprep.subr.bf16.mxu0 %v3984_v7 }
 0x749   : > { %3987 = vmatpush3.bf16.msra.mxu0 %v3984_v7 }
 0x74a   : > { %3989 = vmatprep.subr.bf16.mxu0 %v3988_v22 }
 0x74d   : > { %3991 = vmatpush3.bf16.msra.mxu0 %v3988_v22 }
 0x74e   : > { %3993 = vmatprep.subr.bf16.mxu0 %v3992_v28 }
 0x751   : > { %3995 = vmatpush3.bf16.msra.mxu0 %v3992_v28 }
 0x752   : > { %3997 = vmatprep.subr.bf16.mxu0 %v3996_v31 }
 0x755   : > { %3999 = vmatpush3.bf16.msra.mxu0 %v3996_v31 }
 0x756   : > { %4001 = vmatprep.subr.bf16.mxu0 %v4000_v38 }
 0x759   : > { %4003 = vmatpush3.bf16.msra.mxu0 %v4000_v38 }
 0x7ef   : > { %v5887_v47 = vpop.f32.mrb[2].mxu0 }
 0x7f0   : > { %v3665_v48 = vpop.f32.mrb[3].mxu0  ;;  %v2491_v53 = vmul.f32 %v2490_v40, %v5887_v47 }
 0x7f1   : > { %v5890_v54 = vpop.f32.mrb[6].mxu1 }
 0x7f2   : > { %v2492_v57 = vmul.f32 %v2490_v40, %v5890_v54  ;;  %v2778_v58 = vrot.slane %v5890_v54, 7  ;;  %v3670_v59 = vpop.f32.mrb[7].mxu1  ;;  %v2513_v0 = vmul.f32 %v2491_v53, %v2477_v41  ;;  %v2517_v1 = vmul.f32 %v2491_v53, %v2479_v42 }
 0x7f3   : > { %v2521_v10 = vmul.f32 %v2491_v53, %v2481_v43  ;;  %v2515_v12 = vmul.f32 %v2491_v53, %v2478_v44  ;;  %v2519_v18 = vmul.f32 %v2491_v53, %v2480_v45  ;;  %v2062_v44 = vsub.s32 2, %v5746_v35 }
 0x7f4   : > { %v2779_v60 = vsel %vm1540_vm2, %v2778_v58, %v5887_v47  ;;  %v2514_v61 = vmul.f32 %v2498_v49, %v2492_v57  ;;  %v2518_v62 = vmul.f32 %v2500_v50, %v2492_v57  ;;  %v2522_v63 = vmul.f32 %v2502_v51, %v2492_v57 }
 0x7f5   : > { %v2516_v2 = vmul.f32 %v2499_v55, %v2492_v57  ;;  %v2520_v3 = vmul.f32 %v2501_v56, %v2492_v57  ;;  %3357 = vst [vmem:[%s5759_s19 + $0x2] sm:$0x3] %v2779_v60  ;;  %v2063_v48 = vrot.slane %v5752_v37, %v2062_v44 }
 0x7f6   : > { %v2533_v4 = vrot.slane %v2514_v61, 7  ;;  %v2537_v5 = vrot.slane %v2518_v62, 7  ;;  %v2541_v11 = vrot.slane %v2522_v63, 7 }
 0x7f7   : > { %v2535_v13 = vrot.slane %v2516_v2, 7  ;;  %v2539_v14 = vrot.slane %v2520_v3, 7  ;;  %v2065_v53 = vmul.f32 %v2063_v48, %v5890_v54 }
 0x7f8   : > { %v2534_v15 = vsel %vm1540_vm2, %v2533_v4, %v2513_v0  ;;  %v2538_v16 = vsel %vm1540_vm2, %v2537_v5, %v2517_v1  ;;  %v2542_v17 = vsel %vm1540_vm2, %v2541_v11, %v2521_v10 }
 0x7f9   : > { %v2549_v19 = vsel %vm2548_vm5, %v2534_v15, 0.0  ;;  %v5902_v20 = vsel %vm1540_vm2, %v2535_v13, %v2515_v12  ;;  %v5905_v21 = vsel %vm1540_vm2, %v2539_v14, %v2519_v18  ;;  %v2555_v7 = vsel %vm2548_vm5, %v2538_v16, 0.0 }
 0x7fa   : > { %2550 = vadd.xlane.f32.xlu0 %v2549_v19  ;;  %v2561_v8 = vsel %vm2548_vm5, %v2542_v17, 0.0  ;;  %v2552_v5 = vsel %vm2548_vm5, %v5902_v20, 0.0  ;;  %v2558_v10 = vsel %vm2548_vm5, %v5905_v21, 0.0  ;;  %v2574_v12 = vand.u32 127, %v1191_v34 }
 0x7fc   : > { %v2577_v14 = vsub.s32 %v2574_v12, %v5746_v35  ;;  %v2395_v12 = vld [vmem:[%s5647_s7 + $0x48] sm:$0xff] }
 0x7fe   : > { %2556 = vadd.xlane.f32.xlu0 %v2555_v7 }
 0x802   : > { %2562 = vadd.xlane.f32.xlu0 %v2561_v8  ;;  %v2566_v8 = vstv %s6209_s24 }
 0x803   : > { %vm2567_vm9 = vcmp.le.s32.totalorder %v5746_v35, %v2566_v8 }
 0x80f   : > { %v1818_v22 = vpop.f32.mrb[4].mxu0 }
 0x810   : > { %v1939_v23 = vrot.slane %v1818_v22, %v5770_v52  ;;  %v5910_v25 = vpop.f32.mrb[5].mxu0 }
 0x811   : > { %v1921_v28 = vpop.f32.mrb[8].mxu1 }
 0x812   : > { %v1940_v29 = vcombine.high %v1939_v23, %v1939_v23  ;;  %v1947_v30 = vrot.slane %v1939_v23, %v5770_v52  ;;  %v1923_v31 = vpop.f32.mrb[9].mxu1 }
 0x814   : > { %v1958_v32 = vrot.slane %v1947_v30, %v5749_v36  ;;  %v1954_v33 = vrot.slane %v1940_v29, %v5770_v52  ;;  %v2064_v52 = vmul.f32 %v2063_v48, %v5887_v47 }
 0x815   : > { %v1927_v38 = vpop.f32.mrb[10].mxu1 }
 0x816   : > { %v1965_v40 = vmul.f32 %v1958_v32, %v1921_v28  ;;  %v1962_v41 = vrot.slane %v1954_v33, %v5749_v36  ;;  %v1929_v42 = vpop.f32.mrb[11].mxu1 }
 0x818   : > { %v1966_v43 = vmul.f32 %v1962_v41, %v1927_v38  ;;  %3703 = vmatprep.mubr.f32.mxu0 %v1965_v40 }
 0x81a   : > { %3704 = vmatmul.mubr.f32.vlgmr.msra.gmra.mrb[6].mxu0 %v1966_v43 }
 0x887   : > { %v2551_v11 = vpop.xlane.xlu0 %2550 }
 0x888   : > { %v2578_v18 = vrot.slane %v2551_v11, %v2577_v14  ;;  %v2393_v11 = vld [vmem:[%s5647_s7 + $0x38] sm:$0xff] }
 0x88b   : > { %v2557_v15 = vpop.xlane.xlu0 %2556 }
 0x88c   : > { %v2586_v21 = vrot.slane %v2557_v15, %v2577_v14  ;;  %v2397_v15 = vld [vmem:[%s5647_s7 + $0x58] sm:$0xff] }
 0x88f   : > { %v2563_v20 = vpop.xlane.xlu0 %2562 }
 0x890   : > { %v2594_v23 = vrot.slane %v2563_v20, %v2577_v14  ;;  %v2400_v20 = vld [vmem:[%s5647_s7 + $0x70] sm:$0xff] }
 0x8ed   : > { %v3705_v45 = vpop.f32.mrb[6].mxu0 }
 0x8ee   : > { %v2059_v49 = vadd.f32 %v3705_v45, %v1929_v42  ;;  %v2049_v50 = vpop.f32.mrb[7].mxu0 }
 0x8ef   : > { %v2058_v51 = vadd.f32 %v2049_v50, %v1923_v31 }
 0x8f1   : > { %3707 = vmatpush3.xpose.msra.mxu1 %v2058_v51 }
 0x8f2   : > { %3711 = vmatprep.subr.mxu1 %v4940_v27 }
 0x8f4   : > { %3709 = vmatmul.mubr.f32.vlgmr.msra.gmra.mrb[12].mxu1 %v2064_v52 }
 0x8f5   : > { %3712 = vmatpush3.xpose.msra.mxu1 %v2059_v49  ;;  %3713 = vmatprep.mubr.msk.f32.mxu1 %vm4939_vm1, %v4940_v27 }
 0x8f6   : > { %3716 = vmatprep.subr.mxu1 %v4940_v27 }
 0x8f8   : > { %3714 = vmatmul.mubr.f32.vlgmr.msra.gmra.mrb[14].mxu1 %v2065_v53 }
 0x8f9   : > { %3717 = vmatpush3.msra.mxu1 %v5857_v6  ;;  %3718 = vmatprep.mubr.msk.f32.mxu1 %vm4939_vm1, %v4940_v27 }
 0x8fa   : > { %3721 = vmatprep.subr.mxu1 %v4940_v27 }
 0x9c7   : > { %v2132_v37 = vpop.f32.mrb[12].mxu1 }
 0x9c8   : > { %v3710_v47 = vpop.f32.mrb[13].mxu1 }
 0x9cb   : > { %v2202_v55 = vpop.f32.mrb[14].mxu1 }
 0x9cc   : > { %v2208_v56 = vrot.slane %v2202_v55, 7  ;;  %v3715_v57 = vpop.f32.mrb[15].mxu1 }
 0x9ce   : > { %v2209_v58 = vsel %vm1540_vm2, %v2208_v56, %v2132_v37 }
 0x9cf   : > { %v2211_v59 = vsel %vm1543_vm3, %v2209_v58, -inf }
 0x9d0   : > { %2212 = vmax.xlane.f32.xlu1 %v2211_v59 }
 0xa5d   : > { %v2213_v54 = vpop.xlane.xlu1 %2212 }
 0xa5e   : > { %v2215_v60 = vrot.slane %v2213_v54, 1  ;;  %v2218_v61 = vsub.f32 %v2132_v37, %v2213_v54 }
 0xa60   : > { %v2219_v62 = vsub.f32 %v2202_v55, %v2215_v60  ;;  %v2220_v6 = vmul.f32 1.442695, %v2218_v61 }
 0xa62   : > { %v2222_v63 = vmul.f32 1.442695, %v2219_v62  ;;  %v2386_v62 = vld [vmem:[%s5647_s7] sm:$0xff] }
 0xa64   : > { %4310 = vpow2.f32 %v2222_v63 }
 0xa65   : > { %4312 = vpow2.f32 %v2220_v6  ;;  %v2387_v6 = vld [vmem:[%s5647_s7 + $0x8] sm:$0xff] }
 0xa66   : > { %v4005_v63 = vpack.c.bf16 %v2387_v6, %v2386_v62  ;;  %v2701_v62 = vld [vmem:[%s5649_s15 + $0xe0] sm:$0xff]  ;;  %v2702_v6 = vld [vmem:[%s5649_s15 + $0xe8] sm:$0xff] }
 0xa6e   : > { %v4311_v0 = vpop.eup %4310 }
 0xa6f   : > { %v2226_v1 = vrot.slane %v4311_v0, 7  ;;  %v4313_v2 = vpop.eup %4312 }
 0xa71   : > { %v2227_v3 = vsel %vm1540_vm2, %v2226_v1, %v4313_v2  ;;  %v2389_v1 = vld [vmem:[%s5647_s7 + $0x18] sm:$0xff] }
 0xa72   : > { %v2229_v4 = vsel %vm1543_vm3, %v2227_v3, 0.0  ;;  %v2391_v3 = vld [vmem:[%s5647_s7 + $0x28] sm:$0xff] }
 0xa73   : > { %2230 = vadd.xlane.f32.xlu1 %v2229_v4 }
 0xa77   : > { %2553 = vadd.xlane.f32.xlu1 %v2552_v5 }
 0xa7b   : > { %2559 = vadd.xlane.f32.xlu1 %v2558_v10  ;;  %v2392_v10 = vld [vmem:[%s5647_s7 + $0x30] sm:$0xff] }
 0xb00   : > { %v2231_v13 = vpop.xlane.xlu1 %2230 }
 0xb01   : > { %v2233_v16 = vrot.slane %v2231_v13, 1  ;;  %4314 = vrcp.f32 %v2231_v13 }
 0xb03   : > { %4316 = vrcp.f32 %v2233_v16 }
 0xb04   : > { %v2554_v17 = vpop.xlane.xlu1 %2553 }
 0xb05   : > { %v2582_v19 = vrot.slane %v2554_v17, %v2577_v14  ;;  %v2398_v17 = vld [vmem:[%s5647_s7 + $0x60] sm:$0xff] }
 0xb07   : > { %v2595_v7 = vsel %vm1540_vm2, %v2582_v19, %v2578_v18  ;;  %v2399_v18 = vld [vmem:[%s5647_s7 + $0x68] sm:$0xff] }
 0xb08   : > { %v2560_v22 = vpop.xlane.xlu1 %2559  ;;  %v2597_v28 = vsel %vm2596_vm6, %v2586_v21, %v2595_v7  ;;  %v4023_v19 = vpack.c.bf16 %v2399_v18, %v2398_v17  ;;  %v2401_v7 = vld [vmem:[%s5647_s7 + $0x78] sm:$0xff]  ;;  %v2689_v21 = vld [vmem:[%s5649_s15 + $0x80] sm:$0xff] }
 0xb09   : > { %v2590_v34 = vrot.slane %v2560_v22, %v2577_v14  ;;  %v2396_v14 = vld [vmem:[%s5647_s7 + $0x50] sm:$0xff]  ;;  %v4026_v8 = vpack.c.bf16 %v2401_v7, %v2400_v20  ;;  %v2690_v22 = vld [vmem:[%s5649_s15 + $0x88] sm:$0xff] }
 0xb0a   : > { %v4020_v16 = vpack.c.bf16 %v2397_v15, %v2396_v14  ;;  %v2485_v15 = vld [vmem:[#allocation6 + $0x6] sm:$0x3] }
 0xb0b   : > { %v4315_v29 = vpop.eup %4314  ;;  %v2599_v30 = vsel %vm2598_vm7, %v2590_v34, %v2597_v28  ;;  %v2673_v34 = vld [vmem:[%s5649_s15] sm:$0xff]  ;;  %v2674_v28 = vld [vmem:[%s5649_s15 + $0x8] sm:$0xff] }
 0xb0c   : > { %v2601_v31 = vsel %vm2600_vm8, %v2594_v23, %v2599_v30  ;;  %v2237_v32 = vmul.f32 %v4315_v29, %v4313_v2  ;;  %v4028_v23 = vpack.c.bf16 %v2690_v22, %v2689_v21  ;;  %v2691_v29 = vld [vmem:[%s5649_s15 + $0x90] sm:$0xff]  ;;  %v2692_v30 = vld [vmem:[%s5649_s15 + $0x98] sm:$0xff] }
 0xb0d   : > { %v4317_v33 = vpop.eup %4316  ;;  %v2603_v38 = vsel %vm2567_vm9, %v2601_v31, -1e+30  ;;  %v4030_v31 = vpack.c.bf16 %v2674_v28, %v2673_v34 }
 0xb0e   : > { %v2605_v40 = vsel %vm2604_vm10, %v2603_v38, -inf  ;;  %3719 = vmatmul.mubr.msk.f32.vlgmr.msra.gmra.mrb[16].mxu1 %vm1573_vm4, %v2237_v32  ;;  %v2239_v42 = vmul.f32 %v4317_v33, %v4311_v0  ;;  %v2388_v0 = vld [vmem:[%s5647_s7 + $0x10] sm:$0xff]  ;;  %v4032_v32 = vpack.c.bf16 %v2692_v30, %v2691_v29  ;;  %v2676_v33 = vld [vmem:[%s5649_s15 + $0x18] sm:$0xff]  ;;  %4029 = vmatprep.subr.bf16.mxu0 %v4028_v23 }
 0xb0f   : > { %v2606_v41 = vrot.slane %v2605_v40, 4  ;;  %3722 = vmatpush3.msra.mxu1 %v5862_v9  ;;  %3723 = vmatprep.mubr.msk.f32.mxu1 %vm4939_vm1, %v4940_v27  ;;  %v4008_v2 = vpack.c.bf16 %v2389_v1, %v2388_v0  ;;  %v4052_v0 = vpack.c.bf16 %v2702_v6, %v2701_v62  ;;  %v2685_v1 = vld [vmem:[%s5649_s15 + $0x60] sm:$0xff] }
 0xb10   : > { %4004 = vmatprep.subr.bf16.mxu1 %v4938_v24  ;;  %4031 = vmatpush3.bf16.msra.mxu0 %v4030_v31 }
 0xb11   : > { %v2607_v43 = vmax.f32 %v2605_v40, %v2606_v41  ;;  %v2694_v40 = vld [vmem:[%s5649_s15 + $0xa8] sm:$0xff]  ;;  %4033 = vmatprep.subr.bf16.mxu0 %v4032_v32 }
 0xb12   : > { %3724 = vmatmul.mubr.msk.f32.vlgmr.msra.gmra.mrb[18].mxu1 %vm1573_vm4, %v2239_v42 }
 0xb13   : > { %v2608_v45 = vrot.slane %v2607_v43, 2  ;;  %3758 = vmatprep.mubr.msk.f32.mxu1 %vm4939_vm1, %v4940_v27  ;;  %4006 = vmatpush3.bf16.msra.mxu1 %v4005_v63 }
 0xb14   : > { %4007 = vmatprep.subr.bf16.mxu1 %v4938_v24 }
 0xb15   : > { %v2609_v48 = vmax.f32 %v2607_v43, %v2608_v45  ;;  %v2677_v43 = vld [vmem:[%s5649_s15 + $0x20] sm:$0xff]  ;;  %v2678_v45 = vld [vmem:[%s5649_s15 + $0x28] sm:$0xff] }
 0xb17   : > { %v2610_v49 = vrot.slane %v2609_v48, 1  ;;  %4009 = vmatpush3.bf16.msra.mxu1 %v4008_v2  ;;  %v2686_v2 = vld [vmem:[%s5649_s15 + $0x68] sm:$0xff] }
 0xb18   : > { %4010 = vmatprep.subr.bf16.mxu1 %v4938_v24 }
 0xb19   : > { %v2611_v50 = vmax.f32 %v2609_v48, %v2610_v49  ;;  %v2695_v48 = vld [vmem:[%s5649_s15 + $0xb0] sm:$0xff]  ;;  %v2696_v49 = vld [vmem:[%s5649_s15 + $0xb8] sm:$0xff] }
 0xb1b   : > { %v2612_v51 = vsub.f32 %v2603_v38, %v2611_v50  ;;  %v2693_v38 = vld [vmem:[%s5649_s15 + $0xa0] sm:$0xff]  ;;  %v4038_v50 = vpack.c.bf16 %v2678_v45, %v2677_v43 }
 0xb1c   : > { %v4036_v42 = vpack.c.bf16 %v2694_v40, %v2693_v38 }
 0xb1d   : > { %v2613_v52 = vmul.f32 1.442695, %v2612_v51  ;;  %v4040_v51 = vpack.c.bf16 %v2696_v49, %v2695_v48 }
 0xb1f   : > { %4318 = vpow2.f32 %v2613_v52  ;;  %v2679_v52 = vld [vmem:[%s5649_s15 + $0x30] sm:$0xff] }
 0xb29   : > { %v4319_v9 = vpop.eup %4318 }
 0xb2a   : > { %v2615_v53 = vsel %vm2604_vm10, %v4319_v9, 0.0 }
 0xb2b   : > { %v2616_v37 = vrot.slane %v2615_v53, 4 }
 0xb2d   : > { %v2617_v47 = vadd.f32 %v2616_v37, %v2615_v53  ;;  %v2697_v53 = vld [vmem:[%s5649_s15 + $0xc0] sm:$0xff]  ;;  %v2698_v37 = vld [vmem:[%s5649_s15 + $0xc8] sm:$0xff] }
 0xb2f   : > { %v2618_v55 = vrot.slane %v2617_v47, 2 }
 0xb31   : > { %v2619_v56 = vadd.f32 %v2618_v55, %v2617_v47  ;;  %v4044_v55 = vpack.c.bf16 %v2698_v37, %v2697_v53  ;;  %v2807_v53 = vld [vmem:[#allocation18 + $0x88] sm:$0xff] (!%p3360_p9)  ;;  %v2790_v37 = vld [vmem:[#allocation18] sm:$0xff] (!%p3360_p9) }
 0xb33   : > { %v2620_v57 = vrot.slane %v2619_v56, 1 }
 0xb35   : > { %v2621_v58 = vadd.f32 %v2620_v57, %v2619_v56  ;;  %v2681_v56 = vld [vmem:[%s5649_s15 + $0x40] sm:$0xff]  ;;  %v2682_v57 = vld [vmem:[%s5649_s15 + $0x48] sm:$0xff] }
 0xb37   : > { %4320 = vrcp.f32 %v2621_v58  ;;  %v2699_v58 = vld [vmem:[%s5649_s15 + $0xd0] sm:$0xff] }
 0xb41   : > { %v4321_v27 = vpop.eup %4320 }
 0xb42   : > { %v2623_v59 = vmul.f32 %v4321_v27, %v4319_v9  ;;  %v2680_v9 = vld [vmem:[%s5649_s15 + $0x38] sm:$0xff] }
 0xb43   : > { %v4042_v47 = vpack.c.bf16 %v2680_v9, %v2679_v52  ;;  %v2700_v27 = vld [vmem:[%s5649_s15 + $0xd8] sm:$0xff] }
 0xb44   : > { %v2634_v54 = vrot.slane %v2623_v59, %v1369_v46  ;;  %v2627_v60 = vrot.slane %v2623_v59, %v5749_v36  ;;  %v2641_v61 = vrot.slane %v2623_v59, %v2062_v44  ;;  %v2648_v46 = vrot.slane %v2623_v59, %v2489_v39  ;;  %v2390_v44 = vld [vmem:[%s5647_s7 + $0x20] sm:$0xff] }
 0xb45   : > { %v2654_v36 = vsub.s32 4, %v5746_v35  ;;  %v4011_v4 = vpack.c.bf16 %v2391_v3, %v2390_v44  ;;  %v4014_v35 = vpack.c.bf16 %v2393_v11, %v2392_v10  ;;  %v2394_v39 = vld [vmem:[%s5647_s7 + $0x40] sm:$0xff]  ;;  %v4054_v44 = vpack.c.bf16 %v2686_v2, %v2685_v1  ;;  %v2482_v10 = vld [vmem:[#allocation6] sm:$0x3]  ;;  %v2813_v1 = vld [vmem:[#allocation18 + $0xb8] sm:$0xff] (!%p3360_p9) }
 0xb46   : > { %2636 = vbcast.lane.b32.xlu0 %v2634_v54, 256  ;;  %2629 = vbcast.lane.b32.xlu1 %v2627_v60, 256  ;;  %v4017_v13 = vpack.c.bf16 %v2395_v12, %v2394_v39  ;;  %v4048_v54 = vpack.c.bf16 %v2700_v27, %v2699_v58  ;;  %v2683_v60 = vld [vmem:[%s5649_s15 + $0x50] sm:$0xff]  ;;  %v2806_v9 = vld [vmem:[#allocation18 + $0x80] sm:$0xff] (!%p3360_p9) }
 0xb47   : > { %v2655_v5 = vrot.slane %v2623_v59, %v2654_v36  ;;  %4012 = vmatpush3.bf16.msra.mxu1 %v4011_v4  ;;  %v4046_v59 = vpack.c.bf16 %v2682_v57, %v2681_v56  ;;  %v2704_v36 = vld [vmem:[%s5649_s15 + $0xf8] sm:$0xff]  ;;  %v2483_v4 = vld [vmem:[#allocation6 + $0x2] sm:$0x3]  ;;  %v2808_v56 = vld [vmem:[#allocation18 + $0x90] sm:$0xff] (!%p3360_p9)  ;;  %v4942_v57 = vmov (!%p3360_p9), 0.0|0.0  }
 0xb48   : > { %4013 = vmatprep.subr.bf16.mxu1 %v4938_v24 }
 0xb4a   : > { %2643 = vbcast.lane.b32.xlu1 %v2641_v61, 256  ;;  %v2684_v61 = vld [vmem:[%s5649_s15 + $0x58] sm:$0xff] }
 0xb4b   : > { %4015 = vmatpush3.bf16.msra.mxu1 %v4014_v35  ;;  %v4050_v63 = vpack.c.bf16 %v2684_v61, %v2683_v60  ;;  %v2484_v35 = vld [vmem:[#allocation6 + $0x4] sm:$0x3]  ;;  %v2811_v61 = vld [vmem:[#allocation18 + $0xa8] sm:$0xff] (!%p3360_p9) }
 0xb4c   : > { %4016 = vmatprep.subr.bf16.mxu1 %v4938_v24  ;;  %v2810_v60 = vld [vmem:[#allocation18 + $0xa0] sm:$0xff] (!%p3360_p9) }
 0xb4d   : > { %v4068_v6 = vpack.c.bf16 (!%p3360_p9), %v2811_v61, %v2810_v60  ;;  %v3361_v60 = vld [vmem:[#allocation19] ss:$0 sm:$0xff] (!%p3360_p9) }
 0xb4e   : > { %2650 = vbcast.lane.b32.xlu1 %v2648_v46, 256  ;;  %v2703_v46 = vld [vmem:[%s5649_s15 + $0xf0] sm:$0xff] }
 0xb4f   : > { %4018 = vmatpush3.bf16.msra.mxu1 %v4017_v13  ;;  %v4056_v3 = vpack.c.bf16 %v2704_v36, %v2703_v46  ;;  %v2796_v36 = vld [vmem:[#allocation18 + $0x30] sm:$0xff] (!%p3360_p9) }
 0xb50   : > { %4019 = vmatprep.subr.bf16.mxu1 %v4938_v24 }
 0xb52   : > { %2657 = vbcast.lane.b32.xlu1 %v2655_v5, 256 }
 0xb53   : > { %4021 = vmatpush3.bf16.msra.mxu1 %v4020_v16 }
 0xb54   : > { %4022 = vmatprep.subr.bf16.mxu1 %v4938_v24 }
 0xb57   : > { %4024 = vmatpush3.bf16.msra.mxu1 %v4023_v19 }
 0xb58   : > { %4025 = vmatprep.subr.bf16.mxu1 %v4938_v24  ;;  %v2675_v24 = vld [vmem:[%s5649_s15 + $0x10] sm:$0xff] }
 0xb59   : > { %v4034_v41 = vpack.c.bf16 %v2676_v33, %v2675_v24 }
 0xb5b   : > { %4027 = vmatpush3.bf16.msra.mxu1 %v4026_v8  ;;  %4035 = vmatpush3.bf16.msra.mxu0 %v4034_v41  ;;  %v2486_v8 = vld [vmem:[#allocation6 + $0x8] sm:$0x3]  ;;  %v2687_v41 = vld [vmem:[%s5649_s15 + $0x70] sm:$0xff] }
 0xb5c   : > { %4037 = vmatprep.subr.bf16.mxu0 %v4036_v42  ;;  %v2688_v42 = vld [vmem:[%s5649_s15 + $0x78] sm:$0xff]  ;;  %4092 = vmatprep.subr.bf16.mxu1 (!%p3360_p9), %v4942_v57 }
 0xb5d   : > { %v4058_v43 = vpack.c.bf16 %v2688_v42, %v2687_v41  ;;  %v2909_v41 = vld [vmem:[#allocation21 + $0x20] sm:$0xff] (!%p3360_p9)  ;;  %v2910_v42 = vld [vmem:[#allocation21 + $0x28] sm:$0xff] (!%p3360_p9) }
 0xb5f   : > { %4039 = vmatpush3.bf16.msra.mxu0 %v4038_v50 }
 0xb60   : > { %4041 = vmatprep.subr.bf16.mxu0 %v4040_v51 }
 0xb63   : > { %4043 = vmatpush3.bf16.msra.mxu0 %v4042_v47  ;;  %v4060_v47 = vpack.c.bf16 (!%p3360_p9), %v2807_v53, %v2806_v9  ;;  %v2915_v53 = vld [vmem:[#allocation21 + $0x50] sm:$0xff] (!%p3360_p9) }
 0xb64   : > { %4045 = vmatprep.subr.bf16.mxu0 %v4044_v55  ;;  %v2791_v55 = vld [vmem:[#allocation18 + $0x8] sm:$0xff] (!%p3360_p9) }
 0xb65   : > { %v4062_v58 = vpack.c.bf16 (!%p3360_p9), %v2791_v55, %v2790_v37  ;;  %v2917_v37 = vld [vmem:[#allocation21 + $0x60] sm:$0xff] (!%p3360_p9)  ;;  %v2918_v55 = vld [vmem:[#allocation21 + $0x68] sm:$0xff] (!%p3360_p9) }
 0xb67   : > { %4047 = vmatpush3.bf16.msra.mxu0 %v4046_v59  ;;  %v2792_v59 = vld [vmem:[#allocation18 + $0x10] sm:$0xff] (!%p3360_p9) }
 0xb68   : > { %4049 = vmatprep.subr.bf16.mxu0 %v4048_v54  ;;  %v2793_v54 = vld [vmem:[#allocation18 + $0x18] sm:$0xff] (!%p3360_p9) }
 0xb69   : > { %v4066_v62 = vpack.c.bf16 (!%p3360_p9), %v2793_v54, %v2792_v59 }
 0xb6b   : > { %4051 = vmatpush3.bf16.msra.mxu0 %v4050_v63  ;;  %v2794_v63 = vld [vmem:[#allocation18 + $0x20] sm:$0xff] (!%p3360_p9) }
 0xb6c   : > { %4053 = vmatprep.subr.bf16.mxu0 %v4052_v0  ;;  %v2812_v0 = vld [vmem:[#allocation18 + $0xb0] sm:$0xff] (!%p3360_p9) }
 0xb6d   : > { %v4072_v46 = vpack.c.bf16 (!%p3360_p9), %v2813_v1, %v2812_v0 }
 0xb6f   : > { %4055 = vmatpush3.bf16.msra.mxu0 %v4054_v44  ;;  %v2797_v44 = vld [vmem:[#allocation18 + $0x38] sm:$0xff] (!%p3360_p9) }
 0xb70   : > { %4057 = vmatprep.subr.bf16.mxu0 %v4056_v3  ;;  %v2814_v3 = vld [vmem:[#allocation18 + $0xc0] sm:$0xff] (!%p3360_p9) }
 0xb73   : > { %4059 = vmatpush3.bf16.msra.mxu0 %v4058_v43  ;;  %v4099_v43 = vpack.c.bf16 (!%p3360_p9), %v2910_v42, %v2909_v41 }
 0xb74   : > { %4061 = vmatprep.subr.bf16.mxu0 (!%p3360_p9), %v4060_v47 }
 0xbb8   : > { %v2637_v5 = vpop.permute.xlu0 %2636  ;;  %v2630_v11 = vpop.permute.xlu1 %2629 }
 0xbb9   : > { %v2660_v39 = vmul.f32 %v2637_v5, %v2483_v4  ;;  %v2659_v12 = vmul.f32 %v2630_v11, %v2482_v10  ;;  %v2815_v4 = vld [vmem:[#allocation18 + $0xc8] sm:$0xff] (!%p3360_p9)  ;;  %v2907_v11 = vld [vmem:[#allocation21 + $0x10] sm:$0xff] (!%p3360_p9) }
 0xbba   : > { %v2905_v5 = vld [vmem:[#allocation21] sm:$0xff] (!%p3360_p9)  ;;  %v2906_v10 = vld [vmem:[#allocation21 + $0x8] sm:$0xff] (!%p3360_p9) }
 0xbbb   : > { %v2665_v16 = vsel %vm2548_vm5, %v2660_v39, 0.0  ;;  %v2664_v17 = vsel %vm2548_vm5, %v2659_v12, 0.0  ;;  %v4074_v39 = vpack.c.bf16 (!%p3360_p9), %v2797_v44, %v2796_v36  ;;  %v4093_v12 = vpack.c.bf16 (!%p3360_p9), %v2906_v10, %v2905_v5 }
 0xbbc   : > { %v2644_v13 = vpop.permute.xlu1 %2643  ;;  %v2666_v7 = vadd.f32 %v2665_v16, %v2664_v17  ;;  %v2816_v16 = vld [vmem:[#allocation18 + $0xd0] sm:$0xff] (!%p3360_p9)  ;;  %v2817_v17 = vld [vmem:[#allocation18 + $0xd8] sm:$0xff] (!%p3360_p9) }
 0xbbd   : > { %v2661_v14 = vmul.f32 %v2644_v13, %v2484_v35  ;;  %v2908_v35 = vld [vmem:[#allocation21 + $0x18] sm:$0xff] (!%p3360_p9)  ;;  %v4076_v13 = vpack.c.bf16 (!%p3360_p9), %v2815_v4, %v2814_v3 }
 0xbbf   : > { %v2667_v19 = vsel %vm2548_vm5, %v2661_v14, 0.0  ;;  %v2798_v14 = vld [vmem:[#allocation18 + $0x40] sm:$0xff] (!%p3360_p9) }
 0xbc0   : > { %v2651_v18 = vpop.permute.xlu1 %2650  ;;  %v2668_v22 = vadd.f32 %v2667_v19, %v2666_v7  ;;  %v2800_v7 = vld [vmem:[#allocation18 + $0x50] sm:$0xff] (!%p3360_p9) }
 0xbc1   : > { %v2662_v20 = vmul.f32 %v2651_v18, %v2485_v15  ;;  %v2799_v15 = vld [vmem:[#allocation18 + $0x48] sm:$0xff] (!%p3360_p9)  ;;  %v4096_v18 = vpack.c.bf16 (!%p3360_p9), %v2908_v35, %v2907_v11 }
 0xbc2   : > { %v4078_v19 = vpack.c.bf16 (!%p3360_p9), %v2799_v15, %v2798_v14 }
 0xbc3   : > { %v2669_v21 = vsel %vm2548_vm5, %v2662_v20, 0.0  ;;  %v4080_v20 = vpack.c.bf16 (!%p3360_p9), %v2817_v17, %v2816_v16 }
 0xbc4   : > { %v2658_v34 = vpop.permute.xlu1 %2657  ;;  %v2670_v28 = vadd.f32 %v2669_v21, %v2668_v22  ;;  %v2818_v21 = vld [vmem:[#allocation18 + $0xe0] sm:$0xff] (!%p3360_p9)  ;;  %v2819_v22 = vld [vmem:[#allocation18 + $0xe8] sm:$0xff] (!%p3360_p9) }
 0xbc5   : > { %v2663_v23 = vmul.f32 %v2658_v34, %v2486_v8  ;;  %v2801_v8 = vld [vmem:[#allocation18 + $0x58] sm:$0xff] (!%p3360_p9) }
 0xbc6   : > { %v4082_v34 = vpack.c.bf16 (!%p3360_p9), %v2801_v8, %v2800_v7 }
 0xbc7   : > { %v2671_v29 = vsel %vm2548_vm5, %v2663_v23, 0.0  ;;  %v4084_v23 = vpack.c.bf16 (!%p3360_p9), %v2819_v22, %v2818_v21 }
 0xbc8   : > { %v2672_v30 = vadd.f32 %v2671_v29, %v2670_v28  ;;  %v2802_v28 = vld [vmem:[#allocation18 + $0x60] sm:$0xff] (!%p3360_p9)  ;;  %v2803_v29 = vld [vmem:[#allocation18 + $0x68] sm:$0xff] (!%p3360_p9) }
 0xbca   : > { %2769 = vmatprep.mubr.f32.mxu0 %v2672_v30  ;;  %v2820_v30 = vld [vmem:[#allocation18 + $0xf0] sm:$0xff] (!%p3360_p9) }
 0xbe1   : > { %v2309_v31 = vpop.f32.mrb[16].mxu1 }
 0xbe2   : > { %v3720_v32 = vpop.f32.mrb[17].mxu1 }
 0xbe3   : > { %v4086_v32 = vpack.c.bf16 (!%p3360_p9), %v2803_v29, %v2802_v28 }
 0xbe5   : > { %v2382_v24 = vpop.f32.mrb[18].mxu1 }
 0xbe6   : > { %v2404_v33 = vrot.slane %v2382_v24, 7  ;;  %v3725_v38 = vpop.f32.mrb[19].mxu1 }
 0xbe7   : > { %v2805_v38 = vld [vmem:[#allocation18 + $0x78] sm:$0xff] (!%p3360_p9) }
 0xbe8   : > { %v2405_v40 = vsel %vm1540_vm2, %v2404_v33, %v2309_v31  ;;  %v2821_v31 = vld [vmem:[#allocation18 + $0xf8] sm:$0xff] (!%p3360_p9)  ;;  %v2804_v33 = vld [vmem:[#allocation18 + $0x70] sm:$0xff] (!%p3360_p9) }
 0xbe9   : > { %3759 = vmatmul.mubr.f32.vlgmr.msra.gmra.mrb[20].mxu1 %v2405_v40  ;;  %v4088_v24 = vpack.c.bf16 (!%p3360_p9), %v2821_v31, %v2820_v30  ;;  %v4090_v40 = vpack.c.bf16 (!%p3360_p9), %v2805_v38, %v2804_v33 }
 0xbea   : > { %4094 = vmatpush3.bf16.msra.mxu1 (!%p3360_p9), %v4093_v12 }
 0xbeb   : > { %4095 = vmatprep.subr.bf16.mxu1 (!%p3360_p9), %v4942_v57 }
 0xbee   : > { %4097 = vmatpush3.bf16.msra.mxu1 (!%p3360_p9), %v4096_v18 }
 0xbef   : > { %4098 = vmatprep.subr.bf16.mxu1 (!%p3360_p9), %v4942_v57 }
 0xbf2   : > { %4100 = vmatpush3.bf16.msra.mxu1 (!%p3360_p9), %v4099_v43 }
 0xbf3   : > { %4101 = vmatprep.subr.bf16.mxu1 (!%p3360_p9), %v4942_v57 }
 0xcbc   : > { %v2473_v45 = vpop.f32.mrb[20].mxu1 }
 0xcbd   : > { %v2474_v48 = vadd.f32 %v2473_v45, %v5910_v25  ;;  %v3760_v49 = vpop.f32.mrb[21].mxu1  ;;  %v2809_v25 = vld [vmem:[#allocation18 + $0x98] sm:$0xff] (!%p3360_p9) }
 0xcbe   : > { %v4064_v27 = vpack.c.bf16 (!%p3360_p9), %v2809_v25, %v2808_v56  ;;  %v2911_v45 = vld [vmem:[#allocation21 + $0x30] sm:$0xff] (!%p3360_p9)  ;;  %v4944_v56 = vmov (!%p3360_p9), 0.0   ;;  %v4111_v25 = vpack.c.bf16 (!%p3360_p9), %v2918_v55, %v2917_v37 }
 0xcbf   : > { %2770 = vmatmul.mubr.f32.vlgmr.msra.gmra.mrb[8].mxu0 %v2474_v48  ;;  %v2912_v48 = vld [vmem:[#allocation21 + $0x38] sm:$0xff] (!%p3360_p9)  ;;  %3793 = vmatprep.mubr.msk.f32.mxu1 (!%p3360_p9), %vm4943_vm11, %v4944_v56 }
 0xcc0   : > { %2893 = vmatprep.mubr.f32.mxu0 (!%p3360_p9), %v5734_v26  ;;  %4063 = vmatpush3.bf16.msra.mxu0 (!%p3360_p9), %v4062_v58  ;;  %v2795_v26 = vld [vmem:[#allocation18 + $0x28] sm:$0xff] (!%p3360_p9)  ;;  %v4102_v49 = vpack.c.bf16 (!%p3360_p9), %v2912_v48, %v2911_v45  ;;  %v2919_v58 = vld [vmem:[#allocation21 + $0x70] sm:$0xff] (!%p3360_p9) }
 0xcc1   : > { %4065 = vmatprep.subr.bf16.mxu0 (!%p3360_p9), %v4064_v27  ;;  %v4070_v2 = vpack.c.bf16 (!%p3360_p9), %v2795_v26, %v2794_v63  ;;  %v2920_v27 = vld [vmem:[#allocation21 + $0x78] sm:$0xff] (!%p3360_p9) }
 0xcc2   : > { %4103 = vmatpush3.bf16.msra.mxu1 (!%p3360_p9), %v4102_v49  ;;  %v4114_v59 = vpack.c.bf16 (!%p3360_p9), %v2920_v27, %v2919_v58 }
 0xcc3   : > { %4104 = vmatprep.subr.bf16.mxu1 (!%p3360_p9), %v4942_v57 }
 0xcc4   : > { %4067 = vmatpush3.bf16.msra.mxu0 (!%p3360_p9), %v4066_v62 }
 0xcc5   : > { %4069 = vmatprep.subr.bf16.mxu0 (!%p3360_p9), %v4068_v6 }
 0xcc8   : > { %4071 = vmatpush3.bf16.msra.mxu0 (!%p3360_p9), %v4070_v2 }
 0xcc9   : > { %4073 = vmatprep.subr.bf16.mxu0 (!%p3360_p9), %v4072_v46 }
 0xccc   : > { %4075 = vmatpush3.bf16.msra.mxu0 (!%p3360_p9), %v4074_v39 }
 0xccd   : > { %4077 = vmatprep.subr.bf16.mxu0 (!%p3360_p9), %v4076_v13 }
 0xcd0   : > { %4079 = vmatpush3.bf16.msra.mxu0 (!%p3360_p9), %v4078_v19 }
 0xcd1   : > { %4081 = vmatprep.subr.bf16.mxu0 (!%p3360_p9), %v4080_v20 }
 0xcd4   : > { %4083 = vmatpush3.bf16.msra.mxu0 (!%p3360_p9), %v4082_v34 }
 0xcd5   : > { %4085 = vmatprep.subr.bf16.mxu0 (!%p3360_p9), %v4084_v23 }
 0xcd8   : > { %4087 = vmatpush3.bf16.msra.mxu0 (!%p3360_p9), %v4086_v32 }
 0xcd9   : > { %4089 = vmatprep.subr.bf16.mxu0 (!%p3360_p9), %v4088_v24 }
 0xcdc   : > { %4091 = vmatpush3.bf16.msra.mxu0 (!%p3360_p9), %v4090_v40 }
 0xd90   : > { %2789 = sbr.rel (%p3360_p9) target bundleno = 3926 (0xf56), region = 164 }
 0xd92   : > { %v3526_v50 = vpop.f32.mrb[8].mxu0 }
 0xd93   : > { %v3527_v51 = vpop.f32.mrb[9].mxu0 }
 0xd94   : > { %v6023_v52 = vadd.f32 %v3527_v51, %v3526_v50  ;;  %v2913_v50 = vld [vmem:[#allocation21 + $0x40] sm:$0xff] (!%p3360_p9)  ;;  %v2914_v51 = vld [vmem:[#allocation21 + $0x48] sm:$0xff] (!%p3360_p9) }
 0xd95   : > { %v4105_v9 = vpack.c.bf16 (!%p3360_p9), %v2914_v51, %v2913_v50 }
 0xd96   : > { %3359 = vst [vmem:[%s5854_s29 + $0x2] sm:$0x3] %v6023_v52  ;;  %2894 = vmatmul.mubr.f32.vlgmr.msra.gmra.mrb[0].mxu0 (!%p3360_p9), %v6023_v52  ;;  %v2916_v52 = vld [vmem:[#allocation21 + $0x58] sm:$0xff] (!%p3360_p9) }
 0xd97   : > { %4106 = vmatpush3.bf16.msra.mxu1 %v4105_v9  ;;  %v4108_v47 = vpack.c.bf16 %v2916_v52, %v2915_v53 }
 0xd98   : > { %4107 = vmatprep.subr.bf16.mxu1 %v4942_v57 }
 0xd9b   : > { %4109 = vmatpush3.bf16.msra.mxu1 %v4108_v47 }
 0xd9c   : > { %4110 = vmatprep.subr.bf16.mxu1 %v4942_v57 }
 0xd9f   : > { %4112 = vmatpush3.bf16.msra.mxu1 %v4111_v25 }
 0xda0   : > { %4113 = vmatprep.subr.bf16.mxu1 %v4942_v57 }
 0xda3   : > { %4115 = vmatpush3.bf16.msra.mxu1 %v4114_v59 }
 0xe69   : > { %v3561_v54 = vpop.f32.mrb[0].mxu0 }
 0xe6a   : > { %v3562_v61 = vpop.f32.mrb[1].mxu0 }
 0xe6b   : > { %v3563_v62 = vadd.f32 %v3562_v61, %v3561_v54 }
 0xe6d   : > { %v2896_v6 = vadd.f32 %v3563_v62, %v3361_v60 }
 0xe6f   : > { %v2900_v63 = vmin.f32 %v2896_v6, 0.0  ;;  %vm2899_vm12 = vcmp.gt.f32.partialorder %v2896_v6, 0.0 }
 0xe71   : > { %v2901_v26 = vmul.f32 1.442695, %v2900_v63 }
 0xe73   : > { %4322 = vpow2.f32 %v2901_v26 }
 0xe7d   : > { %v4323_v0 = vpop.eup %4322 }
 0xe7e   : > { %v3362_v1 = vadd.f32 -1.0, %v4323_v0 }
 0xe80   : > { %v2904_v2 = vsel %vm2899_vm12, %v2896_v6, %v3362_v1 }
 0xe81   : > { %3794 = vmatmul.mubr.f32.vlgmr.msra.gmra.mrb[0].mxu1 %v2904_v2 }
 0xf54   : > { %v2987_v46 = vpop.f32.mrb[0].mxu1 }
 0xf55   : > { %2992 = vst.msk [vmem:[#allocation34] sm:$0x3] %vm2991_vm13, %v2987_v46  ;;  %v3795_v36 = vpop.f32.mrb[1].mxu1 }
 0xf56 PF: > { %s6210_s21 = sld [smem:[#allocation47_spill]]  ;;  %s4945_s22 = smov [#allocation34]  }
 0xf57   : > { %s3000_s17 = sshll.u32 %s4945_s22, 4  ;;  %s3001_s17 = int_to_ptr.vmem [resolvable:$true] %s3000_s17 }
 0xf58   : > { %s4816_s28 = scalar_lea.vmem %s3001_s17, 32  ;;  %p4823_p1 = scmp.lt.s32.totalorder %s3001_s17, %s3001_s17 }
 0xf59   : > { %p4817_p13 = scmp.ne.s32.totalorder %s3001_s17, %s4816_s28  ;;  %p4824_p0 = scmp.lt.s32.totalorder %s4816_s28, %s4816_s28 }
 0xf5b   : > { %p4825_p4 = por %p4824_p0, %p4823_p1 }
 0xf5c   : > { %p4244_p7 = scmp.eq.s32.totalorder %s6210_s21, 3 }
 0xf5e   : > { %p4818_p12 = pnand %p4817_p13, %p4244_p7 }
 0xf60   : > { %p4819_p11 = pneg %p4818_p12 }
 0xf62   : > { %p4826_p10 = pnand %p4825_p4, %p4819_p11 }
 0xf64   : > { %4829 = shalt.err (!%p4826_p10)
}
 0xf65   : > { %s6211_s1 = sld [smem:[#allocation66_spill]] }
 0xf6b   : > { %s4830_s30 = scalar_lea.hbm %s6211_s1, 32 }
 0xf6c   : > { %p4831_p3 = scmp.ne.s32.totalorder %s6211_s1, %s4830_s30  ;;  %p4836_p8 = scmp.lt.u32.totalorder %s4830_s30, %s6211_s1 }
 0xf6e   : > { %p4832_p6 = pnand %p4831_p3, %p4244_p7 }
 0xf70   : > { %p4833_p5 = pneg %p4832_p6 }
 0xf72   : > { %p4838_p2 = pnand %p4836_p8, %p4833_p5 }
 0xf74   : > { %4841 = shalt.err (!%p4838_p2)
}
 0xf75   : > { %4169 = dma.vmem_to_hbm [thread:$0]  (%p4244_p7), %s3001_s17, 32, %s6211_s1, [#allocation9]  }
 0xf76   : > { %4895 = dma.done.wait (%p4244_p7), [#allocation9], 32  }
 0xf77   : > { %4897 = vsyncadd (%p4244_p7), [#allocation9], 4294967264 }
 0xf78 PF: > { %s6212_s27 = sld [smem:[#allocation49_spill]]  ;;  %s6213_s24 = sld [smem:[#allocation45_spill]] }
 0xf79   : > { %s6214_s25 = sld [smem:[#allocation46_spill]]  ;;  %s6215_s26 = sld [smem:[#allocation50_spill]] }
 0xf7e   : > { %p42_p9 = scmp.ge.s32.totalorder %s6212_s27, 6  }
 0xf80   :  { %44 = sbr.rel (!%p42_p9) target bundleno = 31 (0x1f), region = 257 }
 0xf87   :  { %3013 = vsyncpa [#allocation8], 1 }
 0xf88   :  { %3015 = vsyncpa [#allocation8 + $0x1], 1 }
 0xf89   :  { %3016 = vsyncpa [#allocation11], 1 }
 0xf8a   :  { %3017 = vsyncpa [#allocation14], 1 }
 0xf8b   :  { %3018 = vsyncpa [#allocation17], 1 }
 0xf8c   :  { %3019 = vsyncpa [#allocation20], 1 }
 0xf8d   :  { %3020 = vsyncpa [#allocation23], 1 }
 0xf8e   :  { %3022 = vsyncpa [#allocation23 + $0x1], 1 }
 0xf8f   :  { %3023 = vsyncpa [#allocation26], 1 }
 0xf90   :  { %3025 = vsyncpa [#allocation26 + $0x1], 1 }
 0xf91   :  { %3026 = vsyncpa [#allocation29], 1 }
 0xf92   :  { %3028 = vsyncpa [#allocation29 + $0x1], 1 }
 0xf93   :  { %3029 = vsyncpa [#allocation32], 1 }
 0xf94   :  { %3031 = vsyncpa [#allocation32 + $0x1], 1 }
 0xf95   :  { %3032 = vsyncpa [#allocation9], 1 }
 0xf96   :  { %3034 = vsyncpa [#allocation9 + $0x1], 1 }

</bundles_post_ra>
